<compile_context>
chip_gen: v7x
topology: tpu7x:2x2x1
jax: 0.10.0
libtpu: 0.0.40
codegen_flags: <defaults>
</compile_context>

<pallas_src>
import jax
import jax.numpy as jnp
from jax.experimental import pallas as pl
from jax.experimental.pallas import tpu as pltpu

# ---- fixed hyper-parameters implied by the module defaults -----------------
GRID_SIZE = 5          # KANLinear grid_size
SPLINE_ORDER = 3       # KANLinear spline_order
NUM_BASES = GRID_SIZE + SPLINE_ORDER          # = 8 B-spline basis functions
DEGREE = 3             # ChebyKANLayer degree
N_EXPERT = 3
GATE_ROWS = 8          # gate padded to one sublane tile (pad rows bias -1e30)
GRID_RANGE = (-1.0, 1.0)
_H = (GRID_RANGE[1] - GRID_RANGE[0]) / GRID_SIZE
# knot vector: arange(-spline_order, grid_size + spline_order + 1) * h + lo
GRID_VALS = tuple(
    float(i) * _H + GRID_RANGE[0]
    for i in range(-SPLINE_ORDER, GRID_SIZE + SPLINE_ORDER + 1)
)  # 12 knots, identical for every input feature (as in the PyTorch buffer)

K_TOTAL = 2 + NUM_BASES + (DEGREE + 1)   # silu + 8 spline bases + x + 4 cheby = 14


def _round_up(a, b):
    return (a + b - 1) // b * b


def _choose_tile_m(M, cap=512):
    """Row tile lives on the LANE dim -> must be a multiple of 128.

    Pick the multiple of 128 (<= cap) minimizing padding; tie-break larger.
    For large M this gives grid = M/512 (typically even, so both v7x
    TensorCores stay busy under dimension_semantics=("parallel",)); for small
    M it bounds padded work to < 1 tile.
    """
    m128 = _round_up(max(M, 1), 128)
    best = None
    t = 128
    while t <= min(cap, m128):
        pad = _round_up(M, t) - M
        if best is None or pad < best[0] or (pad == best[0] and t > best[1]):
            best = (pad, t)
        t += 128
    return best[1]


def _kan_mixer_kernel(x_ref, w_ref, lin_b_ref, gate_w_ref, gate_b_ref,
                      out_ref, lhs_ref):
    x = x_ref[...]                                   # (L, TM) f32, feature-major
    L = x.shape[0]

    # ---- gate: softmax over expert rows (sublane axis, 8-row padded) --------
    logits = jnp.dot(gate_w_ref[...], x,
                     preferred_element_type=jnp.float32) + gate_b_ref[...]
    m = jnp.max(logits, axis=0, keepdims=True)
    e = jnp.exp(logits - m)                          # pad rows underflow to 0
    inv = pl.reciprocal(jnp.sum(e, axis=0, keepdims=True), approx=True)
    score = e * inv                                  # (8, TM)
    s0 = jnp.broadcast_to(score[0:1, :], x.shape)    # hoisted sublane broadcasts
    s1 = score[1:2, :]
    s2 = jnp.broadcast_to(score[2:3, :], x.shape)

    def put(j, blk):
        # one-pass LHS build: sublane-aligned 32-row writes, scaled + bf16 cast
        lhs_ref[j * L:(j + 1) * L, :] = blk.astype(lhs_ref.dtype)

    # ---- expert 0: SiLU + B-spline bases (Cox-de-Boor, uniform grid) --------
    put(0, s0 * (x * jax.nn.sigmoid(x)))
    bases = [jnp.where((x >= GRID_VALS[j]) & (x < GRID_VALS[j + 1]), 1.0, 0.0)
             for j in range(len(GRID_VALS) - 1)]
    for k in range(1, SPLINE_ORDER + 1):
        c = 1.0 / (k * _H)                           # uniform grid: denominators = k*h
        bases = [((x - GRID_VALS[j]) * bases[j]
                  - (x - GRID_VALS[j + k + 1]) * bases[j + 1]) * c
                 for j in range(len(bases) - 1)]
    for j in range(NUM_BASES):
        put(1 + j, s0 * bases[j])

    # ---- expert 1: plain linear features (bias added after the matmul) ------
    put(1 + NUM_BASES, jnp.broadcast_to(s1, x.shape) * x)

    # ---- expert 2: Chebyshev T_0..T_D of tanh(x) via recurrence --------------
    xt = jnp.tanh(x)
    t_prev, t_cur = jnp.ones_like(x), xt
    put(2 + NUM_BASES, s2 * t_prev)
    put(3 + NUM_BASES, s2 * t_cur)
    for d in range(2, DEGREE + 1):
        t_prev, t_cur = t_cur, 2.0 * xt * t_cur - t_prev
        put(2 + NUM_BASES + d, s2 * t_cur)

    # ---- single fused bf16 matmul; gate scores already folded into the LHS ---
    out = jnp.dot(w_ref[...], lhs_ref[...], preferred_element_type=jnp.float32)
    out = out + lin_b_ref[...] * s1                  # gated expert-1 bias
    out_ref[...] = out.astype(out_ref.dtype)         # (O, TM) lane-dense store


def kan_mixer_forward(x, params, *, tile_m_cap=512):
    """x: (B, N, L) float32.  Returns (B, N, out_features)."""
    B, N, L = x.shape
    M = B * N
    O = params["base_weight"].shape[0]
    KL = K_TOTAL * L

    # -------- host weight prep: one (O, 14*L) matrix in the kernel K-block order
    base_w = params["base_weight"].astype(jnp.float32)                       # (O, L)
    scaled_spline = (params["spline_weight"]
                     * params["spline_scaler"][..., None]).astype(jnp.float32)  # (O, L, 8)
    spline_w = jnp.transpose(scaled_spline, (0, 2, 1)).reshape(O, NUM_BASES * L)
    lin_w = params["lin_weight"].astype(jnp.float32)                         # (O, L)
    cheby_w = jnp.transpose(params["cheby_coeffs"].astype(jnp.float32),
                            (1, 2, 0)).reshape(O, (DEGREE + 1) * L)
    w_all = jnp.concatenate([base_w, spline_w, lin_w, cheby_w],
                            axis=1).astype(jnp.bfloat16)                     # (O, 14L)

    lin_b = params["lin_bias"].reshape(O, 1).astype(jnp.float32)

    # gate padded to 8 sublane rows; pad rows: weight 0, bias -1e30 (softmax-ignored)
    gate_w_p = jnp.zeros((GATE_ROWS, L), jnp.float32)
    gate_w_p = gate_w_p.at[:N_EXPERT].set(params["gate_weight"].astype(jnp.float32))
    gate_b_p = jnp.full((GATE_ROWS, 1), -1e30, jnp.float32)
    gate_b_p = gate_b_p.at[:N_EXPERT, 0].set(params["gate_bias"].astype(jnp.float32))

    # -------- feature-major input: (L, M), rows padded on the lane dim ----------
    x_t = x.reshape(M, L).astype(jnp.float32).T                              # (L, M)
    tile_m = _choose_tile_m(M, tile_m_cap)
    M_pad = _round_up(M, tile_m)
    if M_pad != M:
        x_t = jnp.pad(x_t, ((0, 0), (0, M_pad - M)))

    # -------- VMEM budget (capped below v7x's 64 MiB) & cost estimate -----------
    need_bytes = (
        4 * 2 * L * tile_m            # x tile (double-buffered)
        + 4 * 2 * O * tile_m          # out tile (double-buffered)
        + 2 * 2 * O * KL              # bf16 fused weight (double-buffered)
        + 2 * KL * tile_m             # bf16 LHS scratch
        + 4 * 24 * L * tile_m         # live f32 temporaries headroom
        + 4 * 4 * (O + GATE_ROWS * (L + 1))
    )
    vmem_limit = int(min(48 << 20, max(need_bytes + (8 << 20), 16 << 20)))

    cost = pl.CostEstimate(
        flops=2 * M_pad * KL * O + 2 * M_pad * L * GATE_ROWS,
        transcendentals=M_pad * (2 * L + GATE_ROWS),
        bytes_accessed=4 * M_pad * (L + O) + 2 * O * KL
        + 4 * (O + GATE_ROWS * (L + 1)),
    )

    in_specs = [
        pl.BlockSpec((L, tile_m), lambda i: (0, i)),        # x (feature-major)
        pl.BlockSpec((O, KL), lambda i: (0, 0)),            # fused weight (bf16)
        pl.BlockSpec((O, 1), lambda i: (0, 0)),             # expert-1 bias
        pl.BlockSpec((GATE_ROWS, L), lambda i: (0, 0)),     # gate weight
        pl.BlockSpec((GATE_ROWS, 1), lambda i: (0, 0)),     # gate bias
    ]
    out_specs = pl.BlockSpec((O, tile_m), lambda i: (0, i))

    out_t = pl.pallas_call(
        _kan_mixer_kernel,
        out_shape=jax.ShapeDtypeStruct((O, M_pad), jnp.float32),
        grid_spec=pltpu.PrefetchScalarGridSpec(
            num_scalar_prefetch=0,
            grid=(M_pad // tile_m,),
            in_specs=in_specs,
            out_specs=out_specs,
            scratch_shapes=[pltpu.VMEM((KL, tile_m), jnp.bfloat16)],
        ),
        compiler_params=pltpu.CompilerParams(
            dimension_semantics=("parallel",),
            vmem_limit_bytes=vmem_limit,
        ),
        cost_estimate=cost,
    )(x_t, w_all, lin_b, gate_w_p, gate_b_p)

    return out_t[:, :M].T.reshape(B, N, O)


# ------------------------- pure-JAX reference (for checking) -----------------
def _reference(x, params):
    B, N, L = x.shape
    x2 = x.reshape(B * N, L).astype(jnp.float32)
    grid = jnp.array(GRID_VALS, jnp.float32)

    # gate
    logits = x2 @ params["gate_weight"].T + params["gate_bias"]
    score = jax.nn.softmax(logits, axis=-1)

    # expert 0: KANLinear
    base_out = (x2 * jax.nn.sigmoid(x2)) @ params["base_weight"].T
    xe = x2[:, :, None]
    bases = ((xe >= grid[None, None, :-1]) & (xe < grid[None, None, 1:])).astype(jnp.float32)
    for k in range(1, SPLINE_ORDER + 1):
        bases = ((xe - grid[None, None, :-(k + 1)])
                 / (grid[None, None, k:-1] - grid[None, None, :-(k + 1)]) * bases[:, :, :-1]
                 + (grid[None, None, k + 1:] - xe)
                 / (grid[None, None, k + 1:] - grid[None, None, 1:-k]) * bases[:, :, 1:])
    scaled = params["spline_weight"] * params["spline_scaler"][..., None]
    spline_out = bases.reshape(x2.shape[0], -1) @ scaled.reshape(scaled.shape[0], -1).T
    e0 = base_out + spline_out

    # expert 1
    e1 = x2 @ params["lin_weight"].T + params["lin_bias"]

    # expert 2
    theta = jnp.arccos(jnp.tanh(x2))
    cb = jnp.cos(theta[:, :, None] * jnp.arange(DEGREE + 1, dtype=jnp.float32))
    e2 = jnp.einsum("bid,iod->bo", cb, params["cheby_coeffs"])

    experts = jnp.stack([e0, e1, e2], axis=-1)
    out = jnp.einsum("ble,be->bl", experts, score)
    return out.reshape(B, N, -1)


if __name__ == "__main__":
    B, N = 4, 96
    in_features, out_features = 32, 32

    key = jax.random.PRNGKey(0)
    ks = jax.random.split(key, 9)
    params = {
        "base_weight":  jax.random.normal(ks[0], (out_features, in_features), jnp.float32) * 0.1,
        "spline_weight": jax.random.normal(ks[1], (out_features, in_features, NUM_BASES), jnp.float32) * 0.1,
        "spline_scaler": jax.random.normal(ks[2], (out_features, in_features), jnp.float32) * 0.1 + 1.0,
        "lin_weight":   jax.random.normal(ks[3], (out_features, in_features), jnp.float32) * 0.1,
        "lin_bias":     jax.random.normal(ks[4], (out_features,), jnp.float32) * 0.1,
        "cheby_coeffs": jax.random.normal(ks[5], (in_features, out_features, DEGREE + 1), jnp.float32)
                        * (1.0 / (in_features * (DEGREE + 1))),
        "gate_weight":  jax.random.normal(ks[6], (N_EXPERT, in_features), jnp.float32) * 0.1,
        "gate_bias":    jax.random.normal(ks[7], (N_EXPERT,), jnp.float32) * 0.1,
    }
    x = jax.random.normal(ks[8], (B, N, in_features), jnp.float32)

    out = jax.block_until_ready(kan_mixer_forward(x, params))
    ref = jax.block_until_ready(_reference(x, params))
    assert out.shape == (B, N, out_features)
    err = float(jnp.max(jnp.abs(out - ref)))
    assert jnp.allclose(out, ref, atol=2e-2, rtol=2e-2), f"max abs err {err}"
    print("KERNEL_OK")
</pallas_src>

<mosaic_0001>
module attributes {stable_mosaic.version = 11 : i64} {
  func.func @_kan_mixer_kernel(%arg0: i32, %arg1: memref<32x384xf32, #tpu.memory_space<vmem>>, %arg2: memref<32x448xbf16, #tpu.memory_space<vmem>>, %arg3: memref<32x1xf32, #tpu.memory_space<vmem>>, %arg4: memref<8x32xf32, #tpu.memory_space<vmem>>, %arg5: memref<8x1xf32, #tpu.memory_space<vmem>>, %arg6: memref<32x384xf32, #tpu.memory_space<vmem>>, %arg7: memref<448x384xbf16, #tpu.memory_space<vmem>>) attributes {dimension_semantics = [#tpu.dimension_semantics<parallel>], iteration_bounds = array<i64: 1>, scalar_prefetch = 0 : i64, scratch_operands = 1 : i64, tpu.core_type = #tpu.core_type<tc>, window_params = [{transform_indices = @transform_0, window_bounds = array<i64: 32, 384>}, {pipeline_mode = #tpu.pipeline_mode<synchronous>, transform_indices = @transform_1, window_bounds = array<i64: 32, 448>}, {pipeline_mode = #tpu.pipeline_mode<synchronous>, transform_indices = @transform_2, window_bounds = array<i64: 32, 1>}, {pipeline_mode = #tpu.pipeline_mode<synchronous>, transform_indices = @transform_3, window_bounds = array<i64: 8, 32>}, {pipeline_mode = #tpu.pipeline_mode<synchronous>, transform_indices = @transform_4, window_bounds = array<i64: 8, 1>}, {transform_indices = @transform_5, window_bounds = array<i64: 32, 384>}]} {
    %c0 = arith.constant 0 : index
    %c0_0 = arith.constant 0 : index
    %0 = vector.load %arg1[%c0, %c0_0] : memref<32x384xf32, #tpu.memory_space<vmem>>, vector<32x384xf32>
    %c0_1 = arith.constant 0 : index
    %c0_2 = arith.constant 0 : index
    %1 = vector.load %arg4[%c0_1, %c0_2] : memref<8x32xf32, #tpu.memory_space<vmem>>, vector<8x32xf32>
    %cst = arith.constant dense<0.000000e+00> : vector<8x384xf32>
    %2 = tpu.matmul %1, %0, %cst {dimension_numbers = #tpu.dot_dimension_numbers<[1], [0], [0], [1], [0, 0, 1, 1], [], []>} : vector<8x32xf32>, vector<32x384xf32>, vector<8x384xf32> -> vector<8x384xf32>
    %c0_3 = arith.constant 0 : index
    %c0_4 = arith.constant 0 : index
    %3 = vector.load %arg5[%c0_3, %c0_4] : memref<8x1xf32, #tpu.memory_space<vmem>>, vector<8x1xf32>
    %4 = vector.broadcast %3 : vector<8x1xf32> to vector<8x384xf32>
    %5 = arith.addf %2, %4 : vector<8x384xf32>
    %cst_5 = arith.constant dense<0xFF800000> : vector<384xf32>
    %6 = vector.multi_reduction <maximumf>, %5, %cst_5 [0] : vector<8x384xf32> to vector<384xf32>
    %7 = vector.shape_cast %6 : vector<384xf32> to vector<1x384xf32>
    %8 = vector.broadcast %7 : vector<1x384xf32> to vector<8x384xf32>
    %9 = arith.subf %5, %8 : vector<8x384xf32>
    %10 = math.exp %9 : vector<8x384xf32>
    %cst_6 = arith.constant dense<0.000000e+00> : vector<384xf32>
    %11 = vector.multi_reduction <add>, %10, %cst_6 [0] : vector<8x384xf32> to vector<384xf32>
    %12 = vector.shape_cast %11 : vector<384xf32> to vector<1x384xf32>
    %13 = tpu.reciprocal %12 {approx = true} : vector<1x384xf32> -> vector<1x384xf32>
    %14 = vector.broadcast %13 : vector<1x384xf32> to vector<8x384xf32>
    %15 = arith.mulf %10, %14 : vector<8x384xf32>
    %16 = vector.extract_strided_slice %15 {offsets = [0, 0], sizes = [1, 384], strides = [1, 1]} : vector<8x384xf32> to vector<1x384xf32>
    %17 = vector.shape_cast %16 : vector<1x384xf32> to vector<1x384xf32>
    %18 = vector.broadcast %17 : vector<1x384xf32> to vector<32x384xf32>
    %19 = vector.extract_strided_slice %15 {offsets = [1, 0], sizes = [1, 384], strides = [1, 1]} : vector<8x384xf32> to vector<1x384xf32>
    %20 = vector.extract_strided_slice %15 {offsets = [2, 0], sizes = [1, 384], strides = [1, 1]} : vector<8x384xf32> to vector<1x384xf32>
    %21 = vector.shape_cast %20 : vector<1x384xf32> to vector<1x384xf32>
    %22 = vector.broadcast %21 : vector<1x384xf32> to vector<32x384xf32>
    %23 = arith.negf %0 : vector<32x384xf32>
    %24 = math.exp %23 : vector<32x384xf32>
    %cst_7 = arith.constant 1.000000e+00 : f32
    %25 = vector.broadcast %cst_7 : f32 to vector<32x384xf32>
    %26 = arith.addf %25, %24 : vector<32x384xf32>
    %27 = arith.divf %25, %26 : vector<32x384xf32>
    %28 = arith.mulf %0, %27 : vector<32x384xf32>
    %29 = arith.mulf %18, %28 : vector<32x384xf32>
    %30 = arith.truncf %29 : vector<32x384xf32> to vector<32x384xbf16>
    %c0_8 = arith.constant 0 : index
    %c0_9 = arith.constant 0 : index
    %31 = vector.load %arg7[%c0_8, %c0_9] : memref<448x384xbf16, #tpu.memory_space<vmem>>, vector<32x384xbf16>
    tpu.vector_store %arg7[%c0_8, %c0_9], %30 {strides = array<i32>} : memref<448x384xbf16, #tpu.memory_space<vmem>>, vector<32x384xbf16>,
    %cst_10 = arith.constant -2.200000e+00 : f32
    %32 = vector.broadcast %cst_10 : f32 to vector<32x384xf32>
    %33 = arith.cmpf oge, %0, %32 : vector<32x384xf32>
    %cst_11 = arith.constant -1.800000e+00 : f32
    %34 = vector.broadcast %cst_11 : f32 to vector<32x384xf32>
    %35 = arith.cmpf olt, %0, %34 : vector<32x384xf32>
    %36 = arith.andi %33, %35 : vector<32x384xi1>
    %cst_12 = arith.constant 1.000000e+00 : f32
    %cst_13 = arith.constant 0.000000e+00 : f32
    %37 = vector.broadcast %cst_12 : f32 to vector<32x384xf32>
    %38 = vector.broadcast %cst_13 : f32 to vector<32x384xf32>
    %39 = arith.select %36, %37, %38 : vector<32x384xi1>, vector<32x384xf32>
    %cst_14 = arith.constant -1.800000e+00 : f32
    %40 = vector.broadcast %cst_14 : f32 to vector<32x384xf32>
    %41 = arith.cmpf oge, %0, %40 : vector<32x384xf32>
    %cst_15 = arith.constant -1.400000e+00 : f32
    %42 = vector.broadcast %cst_15 : f32 to vector<32x384xf32>
    %43 = arith.cmpf olt, %0, %42 : vector<32x384xf32>
    %44 = arith.andi %41, %43 : vector<32x384xi1>
    %cst_16 = arith.constant 1.000000e+00 : f32
    %cst_17 = arith.constant 0.000000e+00 : f32
    %45 = vector.broadcast %cst_16 : f32 to vector<32x384xf32>
    %46 = vector.broadcast %cst_17 : f32 to vector<32x384xf32>
    %47 = arith.select %44, %45, %46 : vector<32x384xi1>, vector<32x384xf32>
    %cst_18 = arith.constant -1.400000e+00 : f32
    %48 = vector.broadcast %cst_18 : f32 to vector<32x384xf32>
    %49 = arith.cmpf oge, %0, %48 : vector<32x384xf32>
    %cst_19 = arith.constant -1.000000e+00 : f32
    %50 = vector.broadcast %cst_19 : f32 to vector<32x384xf32>
    %51 = arith.cmpf olt, %0, %50 : vector<32x384xf32>
    %52 = arith.andi %49, %51 : vector<32x384xi1>
    %cst_20 = arith.constant 1.000000e+00 : f32
    %cst_21 = arith.constant 0.000000e+00 : f32
    %53 = vector.broadcast %cst_20 : f32 to vector<32x384xf32>
    %54 = vector.broadcast %cst_21 : f32 to vector<32x384xf32>
    %55 = arith.select %52, %53, %54 : vector<32x384xi1>, vector<32x384xf32>
    %cst_22 = arith.constant -1.000000e+00 : f32
    %56 = vector.broadcast %cst_22 : f32 to vector<32x384xf32>
    %57 = arith.cmpf oge, %0, %56 : vector<32x384xf32>
    %cst_23 = arith.constant -6.000000e-01 : f32
    %58 = vector.broadcast %cst_23 : f32 to vector<32x384xf32>
    %59 = arith.cmpf olt, %0, %58 : vector<32x384xf32>
    %60 = arith.andi %57, %59 : vector<32x384xi1>
    %cst_24 = arith.constant 1.000000e+00 : f32
    %cst_25 = arith.constant 0.000000e+00 : f32
    %61 = vector.broadcast %cst_24 : f32 to vector<32x384xf32>
    %62 = vector.broadcast %cst_25 : f32 to vector<32x384xf32>
    %63 = arith.select %60, %61, %62 : vector<32x384xi1>, vector<32x384xf32>
    %cst_26 = arith.constant -6.000000e-01 : f32
    %64 = vector.broadcast %cst_26 : f32 to vector<32x384xf32>
    %65 = arith.cmpf oge, %0, %64 : vector<32x384xf32>
    %cst_27 = arith.constant -2.000000e-01 : f32
    %66 = vector.broadcast %cst_27 : f32 to vector<32x384xf32>
    %67 = arith.cmpf olt, %0, %66 : vector<32x384xf32>
    %68 = arith.andi %65, %67 : vector<32x384xi1>
    %cst_28 = arith.constant 1.000000e+00 : f32
    %cst_29 = arith.constant 0.000000e+00 : f32
    %69 = vector.broadcast %cst_28 : f32 to vector<32x384xf32>
    %70 = vector.broadcast %cst_29 : f32 to vector<32x384xf32>
    %71 = arith.select %68, %69, %70 : vector<32x384xi1>, vector<32x384xf32>
    %cst_30 = arith.constant -2.000000e-01 : f32
    %72 = vector.broadcast %cst_30 : f32 to vector<32x384xf32>
    %73 = arith.cmpf oge, %0, %72 : vector<32x384xf32>
    %cst_31 = arith.constant 2.000000e-01 : f32
    %74 = vector.broadcast %cst_31 : f32 to vector<32x384xf32>
    %75 = arith.cmpf olt, %0, %74 : vector<32x384xf32>
    %76 = arith.andi %73, %75 : vector<32x384xi1>
    %cst_32 = arith.constant 1.000000e+00 : f32
    %cst_33 = arith.constant 0.000000e+00 : f32
    %77 = vector.broadcast %cst_32 : f32 to vector<32x384xf32>
    %78 = vector.broadcast %cst_33 : f32 to vector<32x384xf32>
    %79 = arith.select %76, %77, %78 : vector<32x384xi1>, vector<32x384xf32>
    %cst_34 = arith.constant 2.000000e-01 : f32
    %80 = vector.broadcast %cst_34 : f32 to vector<32x384xf32>
    %81 = arith.cmpf oge, %0, %80 : vector<32x384xf32>
    %cst_35 = arith.constant 6.000000e-01 : f32
    %82 = vector.broadcast %cst_35 : f32 to vector<32x384xf32>
    %83 = arith.cmpf olt, %0, %82 : vector<32x384xf32>
    %84 = arith.andi %81, %83 : vector<32x384xi1>
    %cst_36 = arith.constant 1.000000e+00 : f32
    %cst_37 = arith.constant 0.000000e+00 : f32
    %85 = vector.broadcast %cst_36 : f32 to vector<32x384xf32>
    %86 = vector.broadcast %cst_37 : f32 to vector<32x384xf32>
    %87 = arith.select %84, %85, %86 : vector<32x384xi1>, vector<32x384xf32>
    %cst_38 = arith.constant 6.000000e-01 : f32
    %88 = vector.broadcast %cst_38 : f32 to vector<32x384xf32>
    %89 = arith.cmpf oge, %0, %88 : vector<32x384xf32>
    %cst_39 = arith.constant 1.000000e+00 : f32
    %90 = vector.broadcast %cst_39 : f32 to vector<32x384xf32>
    %91 = arith.cmpf olt, %0, %90 : vector<32x384xf32>
    %92 = arith.andi %89, %91 : vector<32x384xi1>
    %cst_40 = arith.constant 1.000000e+00 : f32
    %cst_41 = arith.constant 0.000000e+00 : f32
    %93 = vector.broadcast %cst_40 : f32 to vector<32x384xf32>
    %94 = vector.broadcast %cst_41 : f32 to vector<32x384xf32>
    %95 = arith.select %92, %93, %94 : vector<32x384xi1>, vector<32x384xf32>
    %cst_42 = arith.constant 1.000000e+00 : f32
    %96 = vector.broadcast %cst_42 : f32 to vector<32x384xf32>
    %97 = arith.cmpf oge, %0, %96 : vector<32x384xf32>
    %cst_43 = arith.constant 1.400000e+00 : f32
    %98 = vector.broadcast %cst_43 : f32 to vector<32x384xf32>
    %99 = arith.cmpf olt, %0, %98 : vector<32x384xf32>
    %100 = arith.andi %97, %99 : vector<32x384xi1>
    %cst_44 = arith.constant 1.000000e+00 : f32
    %cst_45 = arith.constant 0.000000e+00 : f32
    %101 = vector.broadcast %cst_44 : f32 to vector<32x384xf32>
    %102 = vector.broadcast %cst_45 : f32 to vector<32x384xf32>
    %103 = arith.select %100, %101, %102 : vector<32x384xi1>, vector<32x384xf32>
    %cst_46 = arith.constant 1.400000e+00 : f32
    %104 = vector.broadcast %cst_46 : f32 to vector<32x384xf32>
    %105 = arith.cmpf oge, %0, %104 : vector<32x384xf32>
    %cst_47 = arith.constant 1.800000e+00 : f32
    %106 = vector.broadcast %cst_47 : f32 to vector<32x384xf32>
    %107 = arith.cmpf olt, %0, %106 : vector<32x384xf32>
    %108 = arith.andi %105, %107 : vector<32x384xi1>
    %cst_48 = arith.constant 1.000000e+00 : f32
    %cst_49 = arith.constant 0.000000e+00 : f32
    %109 = vector.broadcast %cst_48 : f32 to vector<32x384xf32>
    %110 = vector.broadcast %cst_49 : f32 to vector<32x384xf32>
    %111 = arith.select %108, %109, %110 : vector<32x384xi1>, vector<32x384xf32>
    %cst_50 = arith.constant 1.800000e+00 : f32
    %112 = vector.broadcast %cst_50 : f32 to vector<32x384xf32>
    %113 = arith.cmpf oge, %0, %112 : vector<32x384xf32>
    %cst_51 = arith.constant 2.200000e+00 : f32
    %114 = vector.broadcast %cst_51 : f32 to vector<32x384xf32>
    %115 = arith.cmpf olt, %0, %114 : vector<32x384xf32>
    %116 = arith.andi %113, %115 : vector<32x384xi1>
    %cst_52 = arith.constant 1.000000e+00 : f32
    %cst_53 = arith.constant 0.000000e+00 : f32
    %117 = vector.broadcast %cst_52 : f32 to vector<32x384xf32>
    %118 = vector.broadcast %cst_53 : f32 to vector<32x384xf32>
    %119 = arith.select %116, %117, %118 : vector<32x384xi1>, vector<32x384xf32>
    %cst_54 = arith.constant -2.200000e+00 : f32
    %120 = vector.broadcast %cst_54 : f32 to vector<32x384xf32>
    %121 = arith.subf %0, %120 : vector<32x384xf32>
    %122 = arith.mulf %121, %39 : vector<32x384xf32>
    %cst_55 = arith.constant -1.400000e+00 : f32
    %123 = vector.broadcast %cst_55 : f32 to vector<32x384xf32>
    %124 = arith.subf %0, %123 : vector<32x384xf32>
    %125 = arith.mulf %124, %47 : vector<32x384xf32>
    %126 = arith.subf %122, %125 : vector<32x384xf32>
    %cst_56 = arith.constant 2.500000e+00 : f32
    %127 = vector.broadcast %cst_56 : f32 to vector<32x384xf32>
    %128 = arith.mulf %126, %127 : vector<32x384xf32>
    %cst_57 = arith.constant -1.800000e+00 : f32
    %129 = vector.broadcast %cst_57 : f32 to vector<32x384xf32>
    %130 = arith.subf %0, %129 : vector<32x384xf32>
    %131 = arith.mulf %130, %47 : vector<32x384xf32>
    %cst_58 = arith.constant -1.000000e+00 : f32
    %132 = vector.broadcast %cst_58 : f32 to vector<32x384xf32>
    %133 = arith.subf %0, %132 : vector<32x384xf32>
    %134 = arith.mulf %133, %55 : vector<32x384xf32>
    %135 = arith.subf %131, %134 : vector<32x384xf32>
    %cst_59 = arith.constant 2.500000e+00 : f32
    %136 = vector.broadcast %cst_59 : f32 to vector<32x384xf32>
    %137 = arith.mulf %135, %136 : vector<32x384xf32>
    %cst_60 = arith.constant -1.400000e+00 : f32
    %138 = vector.broadcast %cst_60 : f32 to vector<32x384xf32>
    %139 = arith.subf %0, %138 : vector<32x384xf32>
    %140 = arith.mulf %139, %55 : vector<32x384xf32>
    %cst_61 = arith.constant -6.000000e-01 : f32
    %141 = vector.broadcast %cst_61 : f32 to vector<32x384xf32>
    %142 = arith.subf %0, %141 : vector<32x384xf32>
    %143 = arith.mulf %142, %63 : vector<32x384xf32>
    %144 = arith.subf %140, %143 : vector<32x384xf32>
    %cst_62 = arith.constant 2.500000e+00 : f32
    %145 = vector.broadcast %cst_62 : f32 to vector<32x384xf32>
    %146 = arith.mulf %144, %145 : vector<32x384xf32>
    %cst_63 = arith.constant -1.000000e+00 : f32
    %147 = vector.broadcast %cst_63 : f32 to vector<32x384xf32>
    %148 = arith.subf %0, %147 : vector<32x384xf32>
    %149 = arith.mulf %148, %63 : vector<32x384xf32>
    %cst_64 = arith.constant -2.000000e-01 : f32
    %150 = vector.broadcast %cst_64 : f32 to vector<32x384xf32>
    %151 = arith.subf %0, %150 : vector<32x384xf32>
    %152 = arith.mulf %151, %71 : vector<32x384xf32>
    %153 = arith.subf %149, %152 : vector<32x384xf32>
    %cst_65 = arith.constant 2.500000e+00 : f32
    %154 = vector.broadcast %cst_65 : f32 to vector<32x384xf32>
    %155 = arith.mulf %153, %154 : vector<32x384xf32>
    %cst_66 = arith.constant -6.000000e-01 : f32
    %156 = vector.broadcast %cst_66 : f32 to vector<32x384xf32>
    %157 = arith.subf %0, %156 : vector<32x384xf32>
    %158 = arith.mulf %157, %71 : vector<32x384xf32>
    %cst_67 = arith.constant 2.000000e-01 : f32
    %159 = vector.broadcast %cst_67 : f32 to vector<32x384xf32>
    %160 = arith.subf %0, %159 : vector<32x384xf32>
    %161 = arith.mulf %160, %79 : vector<32x384xf32>
    %162 = arith.subf %158, %161 : vector<32x384xf32>
    %cst_68 = arith.constant 2.500000e+00 : f32
    %163 = vector.broadcast %cst_68 : f32 to vector<32x384xf32>
    %164 = arith.mulf %162, %163 : vector<32x384xf32>
    %cst_69 = arith.constant -2.000000e-01 : f32
    %165 = vector.broadcast %cst_69 : f32 to vector<32x384xf32>
    %166 = arith.subf %0, %165 : vector<32x384xf32>
    %167 = arith.mulf %166, %79 : vector<32x384xf32>
    %cst_70 = arith.constant 6.000000e-01 : f32
    %168 = vector.broadcast %cst_70 : f32 to vector<32x384xf32>
    %169 = arith.subf %0, %168 : vector<32x384xf32>
    %170 = arith.mulf %169, %87 : vector<32x384xf32>
    %171 = arith.subf %167, %170 : vector<32x384xf32>
    %cst_71 = arith.constant 2.500000e+00 : f32
    %172 = vector.broadcast %cst_71 : f32 to vector<32x384xf32>
    %173 = arith.mulf %171, %172 : vector<32x384xf32>
    %cst_72 = arith.constant 2.000000e-01 : f32
    %174 = vector.broadcast %cst_72 : f32 to vector<32x384xf32>
    %175 = arith.subf %0, %174 : vector<32x384xf32>
    %176 = arith.mulf %175, %87 : vector<32x384xf32>
    %cst_73 = arith.constant 1.000000e+00 : f32
    %177 = vector.broadcast %cst_73 : f32 to vector<32x384xf32>
    %178 = arith.subf %0, %177 : vector<32x384xf32>
    %179 = arith.mulf %178, %95 : vector<32x384xf32>
    %180 = arith.subf %176, %179 : vector<32x384xf32>
    %cst_74 = arith.constant 2.500000e+00 : f32
    %181 = vector.broadcast %cst_74 : f32 to vector<32x384xf32>
    %182 = arith.mulf %180, %181 : vector<32x384xf32>
    %cst_75 = arith.constant 6.000000e-01 : f32
    %183 = vector.broadcast %cst_75 : f32 to vector<32x384xf32>
    %184 = arith.subf %0, %183 : vector<32x384xf32>
    %185 = arith.mulf %184, %95 : vector<32x384xf32>
    %cst_76 = arith.constant 1.400000e+00 : f32
    %186 = vector.broadcast %cst_76 : f32 to vector<32x384xf32>
    %187 = arith.subf %0, %186 : vector<32x384xf32>
    %188 = arith.mulf %187, %103 : vector<32x384xf32>
    %189 = arith.subf %185, %188 : vector<32x384xf32>
    %cst_77 = arith.constant 2.500000e+00 : f32
    %190 = vector.broadcast %cst_77 : f32 to vector<32x384xf32>
    %191 = arith.mulf %189, %190 : vector<32x384xf32>
    %cst_78 = arith.constant 1.000000e+00 : f32
    %192 = vector.broadcast %cst_78 : f32 to vector<32x384xf32>
    %193 = arith.subf %0, %192 : vector<32x384xf32>
    %194 = arith.mulf %193, %103 : vector<32x384xf32>
    %cst_79 = arith.constant 1.800000e+00 : f32
    %195 = vector.broadcast %cst_79 : f32 to vector<32x384xf32>
    %196 = arith.subf %0, %195 : vector<32x384xf32>
    %197 = arith.mulf %196, %111 : vector<32x384xf32>
    %198 = arith.subf %194, %197 : vector<32x384xf32>
    %cst_80 = arith.constant 2.500000e+00 : f32
    %199 = vector.broadcast %cst_80 : f32 to vector<32x384xf32>
    %200 = arith.mulf %198, %199 : vector<32x384xf32>
    %cst_81 = arith.constant 1.400000e+00 : f32
    %201 = vector.broadcast %cst_81 : f32 to vector<32x384xf32>
    %202 = arith.subf %0, %201 : vector<32x384xf32>
    %203 = arith.mulf %202, %111 : vector<32x384xf32>
    %cst_82 = arith.constant 2.200000e+00 : f32
    %204 = vector.broadcast %cst_82 : f32 to vector<32x384xf32>
    %205 = arith.subf %0, %204 : vector<32x384xf32>
    %206 = arith.mulf %205, %119 : vector<32x384xf32>
    %207 = arith.subf %203, %206 : vector<32x384xf32>
    %cst_83 = arith.constant 2.500000e+00 : f32
    %208 = vector.broadcast %cst_83 : f32 to vector<32x384xf32>
    %209 = arith.mulf %207, %208 : vector<32x384xf32>
    %cst_84 = arith.constant -2.200000e+00 : f32
    %210 = vector.broadcast %cst_84 : f32 to vector<32x384xf32>
    %211 = arith.subf %0, %210 : vector<32x384xf32>
    %212 = arith.mulf %211, %128 : vector<32x384xf32>
    %cst_85 = arith.constant -1.000000e+00 : f32
    %213 = vector.broadcast %cst_85 : f32 to vector<32x384xf32>
    %214 = arith.subf %0, %213 : vector<32x384xf32>
    %215 = arith.mulf %214, %137 : vector<32x384xf32>
    %216 = arith.subf %212, %215 : vector<32x384xf32>
    %cst_86 = arith.constant 1.250000e+00 : f32
    %217 = vector.broadcast %cst_86 : f32 to vector<32x384xf32>
    %218 = arith.mulf %216, %217 : vector<32x384xf32>
    %cst_87 = arith.constant -1.800000e+00 : f32
    %219 = vector.broadcast %cst_87 : f32 to vector<32x384xf32>
    %220 = arith.subf %0, %219 : vector<32x384xf32>
    %221 = arith.mulf %220, %137 : vector<32x384xf32>
    %cst_88 = arith.constant -6.000000e-01 : f32
    %222 = vector.broadcast %cst_88 : f32 to vector<32x384xf32>
    %223 = arith.subf %0, %222 : vector<32x384xf32>
    %224 = arith.mulf %223, %146 : vector<32x384xf32>
    %225 = arith.subf %221, %224 : vector<32x384xf32>
    %cst_89 = arith.constant 1.250000e+00 : f32
    %226 = vector.broadcast %cst_89 : f32 to vector<32x384xf32>
    %227 = arith.mulf %225, %226 : vector<32x384xf32>
    %cst_90 = arith.constant -1.400000e+00 : f32
    %228 = vector.broadcast %cst_90 : f32 to vector<32x384xf32>
    %229 = arith.subf %0, %228 : vector<32x384xf32>
    %230 = arith.mulf %229, %146 : vector<32x384xf32>
    %cst_91 = arith.constant -2.000000e-01 : f32
    %231 = vector.broadcast %cst_91 : f32 to vector<32x384xf32>
    %232 = arith.subf %0, %231 : vector<32x384xf32>
    %233 = arith.mulf %232, %155 : vector<32x384xf32>
    %234 = arith.subf %230, %233 : vector<32x384xf32>
    %cst_92 = arith.constant 1.250000e+00 : f32
    %235 = vector.broadcast %cst_92 : f32 to vector<32x384xf32>
    %236 = arith.mulf %234, %235 : vector<32x384xf32>
    %cst_93 = arith.constant -1.000000e+00 : f32
    %237 = vector.broadcast %cst_93 : f32 to vector<32x384xf32>
    %238 = arith.subf %0, %237 : vector<32x384xf32>
    %239 = arith.mulf %238, %155 : vector<32x384xf32>
    %cst_94 = arith.constant 2.000000e-01 : f32
    %240 = vector.broadcast %cst_94 : f32 to vector<32x384xf32>
    %241 = arith.subf %0, %240 : vector<32x384xf32>
    %242 = arith.mulf %241, %164 : vector<32x384xf32>
    %243 = arith.subf %239, %242 : vector<32x384xf32>
    %cst_95 = arith.constant 1.250000e+00 : f32
    %244 = vector.broadcast %cst_95 : f32 to vector<32x384xf32>
    %245 = arith.mulf %243, %244 : vector<32x384xf32>
    %cst_96 = arith.constant -6.000000e-01 : f32
    %246 = vector.broadcast %cst_96 : f32 to vector<32x384xf32>
    %247 = arith.subf %0, %246 : vector<32x384xf32>
    %248 = arith.mulf %247, %164 : vector<32x384xf32>
    %cst_97 = arith.constant 6.000000e-01 : f32
    %249 = vector.broadcast %cst_97 : f32 to vector<32x384xf32>
    %250 = arith.subf %0, %249 : vector<32x384xf32>
    %251 = arith.mulf %250, %173 : vector<32x384xf32>
    %252 = arith.subf %248, %251 : vector<32x384xf32>
    %cst_98 = arith.constant 1.250000e+00 : f32
    %253 = vector.broadcast %cst_98 : f32 to vector<32x384xf32>
    %254 = arith.mulf %252, %253 : vector<32x384xf32>
    %cst_99 = arith.constant -2.000000e-01 : f32
    %255 = vector.broadcast %cst_99 : f32 to vector<32x384xf32>
    %256 = arith.subf %0, %255 : vector<32x384xf32>
    %257 = arith.mulf %256, %173 : vector<32x384xf32>
    %cst_100 = arith.constant 1.000000e+00 : f32
    %258 = vector.broadcast %cst_100 : f32 to vector<32x384xf32>
    %259 = arith.subf %0, %258 : vector<32x384xf32>
    %260 = arith.mulf %259, %182 : vector<32x384xf32>
    %261 = arith.subf %257, %260 : vector<32x384xf32>
    %cst_101 = arith.constant 1.250000e+00 : f32
    %262 = vector.broadcast %cst_101 : f32 to vector<32x384xf32>
    %263 = arith.mulf %261, %262 : vector<32x384xf32>
    %cst_102 = arith.constant 2.000000e-01 : f32
    %264 = vector.broadcast %cst_102 : f32 to vector<32x384xf32>
    %265 = arith.subf %0, %264 : vector<32x384xf32>
    %266 = arith.mulf %265, %182 : vector<32x384xf32>
    %cst_103 = arith.constant 1.400000e+00 : f32
    %267 = vector.broadcast %cst_103 : f32 to vector<32x384xf32>
    %268 = arith.subf %0, %267 : vector<32x384xf32>
    %269 = arith.mulf %268, %191 : vector<32x384xf32>
    %270 = arith.subf %266, %269 : vector<32x384xf32>
    %cst_104 = arith.constant 1.250000e+00 : f32
    %271 = vector.broadcast %cst_104 : f32 to vector<32x384xf32>
    %272 = arith.mulf %270, %271 : vector<32x384xf32>
    %cst_105 = arith.constant 6.000000e-01 : f32
    %273 = vector.broadcast %cst_105 : f32 to vector<32x384xf32>
    %274 = arith.subf %0, %273 : vector<32x384xf32>
    %275 = arith.mulf %274, %191 : vector<32x384xf32>
    %cst_106 = arith.constant 1.800000e+00 : f32
    %276 = vector.broadcast %cst_106 : f32 to vector<32x384xf32>
    %277 = arith.subf %0, %276 : vector<32x384xf32>
    %278 = arith.mulf %277, %200 : vector<32x384xf32>
    %279 = arith.subf %275, %278 : vector<32x384xf32>
    %cst_107 = arith.constant 1.250000e+00 : f32
    %280 = vector.broadcast %cst_107 : f32 to vector<32x384xf32>
    %281 = arith.mulf %279, %280 : vector<32x384xf32>
    %cst_108 = arith.constant 1.000000e+00 : f32
    %282 = vector.broadcast %cst_108 : f32 to vector<32x384xf32>
    %283 = arith.subf %0, %282 : vector<32x384xf32>
    %284 = arith.mulf %283, %200 : vector<32x384xf32>
    %cst_109 = arith.constant 2.200000e+00 : f32
    %285 = vector.broadcast %cst_109 : f32 to vector<32x384xf32>
    %286 = arith.subf %0, %285 : vector<32x384xf32>
    %287 = arith.mulf %286, %209 : vector<32x384xf32>
    %288 = arith.subf %284, %287 : vector<32x384xf32>
    %cst_110 = arith.constant 1.250000e+00 : f32
    %289 = vector.broadcast %cst_110 : f32 to vector<32x384xf32>
    %290 = arith.mulf %288, %289 : vector<32x384xf32>
    %cst_111 = arith.constant -2.200000e+00 : f32
    %291 = vector.broadcast %cst_111 : f32 to vector<32x384xf32>
    %292 = arith.subf %0, %291 : vector<32x384xf32>
    %293 = arith.mulf %292, %218 : vector<32x384xf32>
    %cst_112 = arith.constant -6.000000e-01 : f32
    %294 = vector.broadcast %cst_112 : f32 to vector<32x384xf32>
    %295 = arith.subf %0, %294 : vector<32x384xf32>
    %296 = arith.mulf %295, %227 : vector<32x384xf32>
    %297 = arith.subf %293, %296 : vector<32x384xf32>
    %cst_113 = arith.constant 0.833333313 : f32
    %298 = vector.broadcast %cst_113 : f32 to vector<32x384xf32>
    %299 = arith.mulf %297, %298 : vector<32x384xf32>
    %cst_114 = arith.constant -1.800000e+00 : f32
    %300 = vector.broadcast %cst_114 : f32 to vector<32x384xf32>
    %301 = arith.subf %0, %300 : vector<32x384xf32>
    %302 = arith.mulf %301, %227 : vector<32x384xf32>
    %cst_115 = arith.constant -2.000000e-01 : f32
    %303 = vector.broadcast %cst_115 : f32 to vector<32x384xf32>
    %304 = arith.subf %0, %303 : vector<32x384xf32>
    %305 = arith.mulf %304, %236 : vector<32x384xf32>
    %306 = arith.subf %302, %305 : vector<32x384xf32>
    %cst_116 = arith.constant 0.833333313 : f32
    %307 = vector.broadcast %cst_116 : f32 to vector<32x384xf32>
    %308 = arith.mulf %306, %307 : vector<32x384xf32>
    %cst_117 = arith.constant -1.400000e+00 : f32
    %309 = vector.broadcast %cst_117 : f32 to vector<32x384xf32>
    %310 = arith.subf %0, %309 : vector<32x384xf32>
    %311 = arith.mulf %310, %236 : vector<32x384xf32>
    %cst_118 = arith.constant 2.000000e-01 : f32
    %312 = vector.broadcast %cst_118 : f32 to vector<32x384xf32>
    %313 = arith.subf %0, %312 : vector<32x384xf32>
    %314 = arith.mulf %313, %245 : vector<32x384xf32>
    %315 = arith.subf %311, %314 : vector<32x384xf32>
    %cst_119 = arith.constant 0.833333313 : f32
    %316 = vector.broadcast %cst_119 : f32 to vector<32x384xf32>
    %317 = arith.mulf %315, %316 : vector<32x384xf32>
    %cst_120 = arith.constant -1.000000e+00 : f32
    %318 = vector.broadcast %cst_120 : f32 to vector<32x384xf32>
    %319 = arith.subf %0, %318 : vector<32x384xf32>
    %320 = arith.mulf %319, %245 : vector<32x384xf32>
    %cst_121 = arith.constant 6.000000e-01 : f32
    %321 = vector.broadcast %cst_121 : f32 to vector<32x384xf32>
    %322 = arith.subf %0, %321 : vector<32x384xf32>
    %323 = arith.mulf %322, %254 : vector<32x384xf32>
    %324 = arith.subf %320, %323 : vector<32x384xf32>
    %cst_122 = arith.constant 0.833333313 : f32
    %325 = vector.broadcast %cst_122 : f32 to vector<32x384xf32>
    %326 = arith.mulf %324, %325 : vector<32x384xf32>
    %cst_123 = arith.constant -6.000000e-01 : f32
    %327 = vector.broadcast %cst_123 : f32 to vector<32x384xf32>
    %328 = arith.subf %0, %327 : vector<32x384xf32>
    %329 = arith.mulf %328, %254 : vector<32x384xf32>
    %cst_124 = arith.constant 1.000000e+00 : f32
    %330 = vector.broadcast %cst_124 : f32 to vector<32x384xf32>
    %331 = arith.subf %0, %330 : vector<32x384xf32>
    %332 = arith.mulf %331, %263 : vector<32x384xf32>
    %333 = arith.subf %329, %332 : vector<32x384xf32>
    %cst_125 = arith.constant 0.833333313 : f32
    %334 = vector.broadcast %cst_125 : f32 to vector<32x384xf32>
    %335 = arith.mulf %333, %334 : vector<32x384xf32>
    %cst_126 = arith.constant -2.000000e-01 : f32
    %336 = vector.broadcast %cst_126 : f32 to vector<32x384xf32>
    %337 = arith.subf %0, %336 : vector<32x384xf32>
    %338 = arith.mulf %337, %263 : vector<32x384xf32>
    %cst_127 = arith.constant 1.400000e+00 : f32
    %339 = vector.broadcast %cst_127 : f32 to vector<32x384xf32>
    %340 = arith.subf %0, %339 : vector<32x384xf32>
    %341 = arith.mulf %340, %272 : vector<32x384xf32>
    %342 = arith.subf %338, %341 : vector<32x384xf32>
    %cst_128 = arith.constant 0.833333313 : f32
    %343 = vector.broadcast %cst_128 : f32 to vector<32x384xf32>
    %344 = arith.mulf %342, %343 : vector<32x384xf32>
    %cst_129 = arith.constant 2.000000e-01 : f32
    %345 = vector.broadcast %cst_129 : f32 to vector<32x384xf32>
    %346 = arith.subf %0, %345 : vector<32x384xf32>
    %347 = arith.mulf %346, %272 : vector<32x384xf32>
    %cst_130 = arith.constant 1.800000e+00 : f32
    %348 = vector.broadcast %cst_130 : f32 to vector<32x384xf32>
    %349 = arith.subf %0, %348 : vector<32x384xf32>
    %350 = arith.mulf %349, %281 : vector<32x384xf32>
    %351 = arith.subf %347, %350 : vector<32x384xf32>
    %cst_131 = arith.constant 0.833333313 : f32
    %352 = vector.broadcast %cst_131 : f32 to vector<32x384xf32>
    %353 = arith.mulf %351, %352 : vector<32x384xf32>
    %cst_132 = arith.constant 6.000000e-01 : f32
    %354 = vector.broadcast %cst_132 : f32 to vector<32x384xf32>
    %355 = arith.subf %0, %354 : vector<32x384xf32>
    %356 = arith.mulf %355, %281 : vector<32x384xf32>
    %cst_133 = arith.constant 2.200000e+00 : f32
    %357 = vector.broadcast %cst_133 : f32 to vector<32x384xf32>
    %358 = arith.subf %0, %357 : vector<32x384xf32>
    %359 = arith.mulf %358, %290 : vector<32x384xf32>
    %360 = arith.subf %356, %359 : vector<32x384xf32>
    %cst_134 = arith.constant 0.833333313 : f32
    %361 = vector.broadcast %cst_134 : f32 to vector<32x384xf32>
    %362 = arith.mulf %360, %361 : vector<32x384xf32>
    %363 = arith.mulf %18, %299 : vector<32x384xf32>
    %364 = arith.truncf %363 : vector<32x384xf32> to vector<32x384xbf16>
    %c32 = arith.constant 32 : index
    %c0_135 = arith.constant 0 : index
    %365 = vector.load %arg7[%c32, %c0_135] : memref<448x384xbf16, #tpu.memory_space<vmem>>, vector<32x384xbf16>
    tpu.vector_store %arg7[%c32, %c0_135], %364 {strides = array<i32>} : memref<448x384xbf16, #tpu.memory_space<vmem>>, vector<32x384xbf16>,
    %366 = arith.mulf %18, %308 : vector<32x384xf32>
    %367 = arith.truncf %366 : vector<32x384xf32> to vector<32x384xbf16>
    %c64 = arith.constant 64 : index
    %c0_136 = arith.constant 0 : index
    %368 = vector.load %arg7[%c64, %c0_136] : memref<448x384xbf16, #tpu.memory_space<vmem>>, vector<32x384xbf16>
    tpu.vector_store %arg7[%c64, %c0_136], %367 {strides = array<i32>} : memref<448x384xbf16, #tpu.memory_space<vmem>>, vector<32x384xbf16>,
    %369 = arith.mulf %18, %317 : vector<32x384xf32>
    %370 = arith.truncf %369 : vector<32x384xf32> to vector<32x384xbf16>
    %c96 = arith.constant 96 : index
    %c0_137 = arith.constant 0 : index
    %371 = vector.load %arg7[%c96, %c0_137] : memref<448x384xbf16, #tpu.memory_space<vmem>>, vector<32x384xbf16>
    tpu.vector_store %arg7[%c96, %c0_137], %370 {strides = array<i32>} : memref<448x384xbf16, #tpu.memory_space<vmem>>, vector<32x384xbf16>,
    %372 = arith.mulf %18, %326 : vector<32x384xf32>
    %373 = arith.truncf %372 : vector<32x384xf32> to vector<32x384xbf16>
    %c128 = arith.constant 128 : index
    %c0_138 = arith.constant 0 : index
    %374 = vector.load %arg7[%c128, %c0_138] : memref<448x384xbf16, #tpu.memory_space<vmem>>, vector<32x384xbf16>
    tpu.vector_store %arg7[%c128, %c0_138], %373 {strides = array<i32>} : memref<448x384xbf16, #tpu.memory_space<vmem>>, vector<32x384xbf16>,
    %375 = arith.mulf %18, %335 : vector<32x384xf32>
    %376 = arith.truncf %375 : vector<32x384xf32> to vector<32x384xbf16>
    %c160 = arith.constant 160 : index
    %c0_139 = arith.constant 0 : index
    %377 = vector.load %arg7[%c160, %c0_139] : memref<448x384xbf16, #tpu.memory_space<vmem>>, vector<32x384xbf16>
    tpu.vector_store %arg7[%c160, %c0_139], %376 {strides = array<i32>} : memref<448x384xbf16, #tpu.memory_space<vmem>>, vector<32x384xbf16>,
    %378 = arith.mulf %18, %344 : vector<32x384xf32>
    %379 = arith.truncf %378 : vector<32x384xf32> to vector<32x384xbf16>
    %c192 = arith.constant 192 : index
    %c0_140 = arith.constant 0 : index
    %380 = vector.load %arg7[%c192, %c0_140] : memref<448x384xbf16, #tpu.memory_space<vmem>>, vector<32x384xbf16>
    tpu.vector_store %arg7[%c192, %c0_140], %379 {strides = array<i32>} : memref<448x384xbf16, #tpu.memory_space<vmem>>, vector<32x384xbf16>,
    %381 = arith.mulf %18, %353 : vector<32x384xf32>
    %382 = arith.truncf %381 : vector<32x384xf32> to vector<32x384xbf16>
    %c224 = arith.constant 224 : index
    %c0_141 = arith.constant 0 : index
    %383 = vector.load %arg7[%c224, %c0_141] : memref<448x384xbf16, #tpu.memory_space<vmem>>, vector<32x384xbf16>
    tpu.vector_store %arg7[%c224, %c0_141], %382 {strides = array<i32>} : memref<448x384xbf16, #tpu.memory_space<vmem>>, vector<32x384xbf16>,
    %384 = arith.mulf %18, %362 : vector<32x384xf32>
    %385 = arith.truncf %384 : vector<32x384xf32> to vector<32x384xbf16>
    %c256 = arith.constant 256 : index
    %c0_142 = arith.constant 0 : index
    %386 = vector.load %arg7[%c256, %c0_142] : memref<448x384xbf16, #tpu.memory_space<vmem>>, vector<32x384xbf16>
    tpu.vector_store %arg7[%c256, %c0_142], %385 {strides = array<i32>} : memref<448x384xbf16, #tpu.memory_space<vmem>>, vector<32x384xbf16>,
    %387 = vector.shape_cast %19 : vector<1x384xf32> to vector<1x384xf32>
    %388 = vector.broadcast %387 : vector<1x384xf32> to vector<32x384xf32>
    %389 = arith.mulf %388, %0 : vector<32x384xf32>
    %390 = arith.truncf %389 : vector<32x384xf32> to vector<32x384xbf16>
    %c288 = arith.constant 288 : index
    %c0_143 = arith.constant 0 : index
    %391 = vector.load %arg7[%c288, %c0_143] : memref<448x384xbf16, #tpu.memory_space<vmem>>, vector<32x384xbf16>
    tpu.vector_store %arg7[%c288, %c0_143], %390 {strides = array<i32>} : memref<448x384xbf16, #tpu.memory_space<vmem>>, vector<32x384xbf16>,
    %392 = math.tanh %0 : vector<32x384xf32>
    %cst_144 = arith.constant 1.000000e+00 : f32
    %393 = vector.broadcast %cst_144 : f32 to vector<32x384xf32>
    %394 = arith.mulf %22, %393 : vector<32x384xf32>
    %395 = arith.truncf %394 : vector<32x384xf32> to vector<32x384xbf16>
    %c320 = arith.constant 320 : index
    %c0_145 = arith.constant 0 : index
    %396 = vector.load %arg7[%c320, %c0_145] : memref<448x384xbf16, #tpu.memory_space<vmem>>, vector<32x384xbf16>
    tpu.vector_store %arg7[%c320, %c0_145], %395 {strides = array<i32>} : memref<448x384xbf16, #tpu.memory_space<vmem>>, vector<32x384xbf16>,
    %397 = arith.mulf %22, %392 : vector<32x384xf32>
    %398 = arith.truncf %397 : vector<32x384xf32> to vector<32x384xbf16>
    %c352 = arith.constant 352 : index
    %c0_146 = arith.constant 0 : index
    %399 = vector.load %arg7[%c352, %c0_146] : memref<448x384xbf16, #tpu.memory_space<vmem>>, vector<32x384xbf16>
    tpu.vector_store %arg7[%c352, %c0_146], %398 {strides = array<i32>} : memref<448x384xbf16, #tpu.memory_space<vmem>>, vector<32x384xbf16>,
    %cst_147 = arith.constant 2.000000e+00 : f32
    %400 = vector.broadcast %cst_147 : f32 to vector<32x384xf32>
    %401 = arith.mulf %400, %392 : vector<32x384xf32>
    %402 = arith.mulf %401, %392 : vector<32x384xf32>
    %403 = arith.subf %402, %393 : vector<32x384xf32>
    %404 = arith.mulf %22, %403 : vector<32x384xf32>
    %405 = arith.truncf %404 : vector<32x384xf32> to vector<32x384xbf16>
    %c384 = arith.constant 384 : index
    %c0_148 = arith.constant 0 : index
    %406 = vector.load %arg7[%c384, %c0_148] : memref<448x384xbf16, #tpu.memory_space<vmem>>, vector<32x384xbf16>
    tpu.vector_store %arg7[%c384, %c0_148], %405 {strides = array<i32>} : memref<448x384xbf16, #tpu.memory_space<vmem>>, vector<32x384xbf16>,
    %cst_149 = arith.constant 2.000000e+00 : f32
    %407 = vector.broadcast %cst_149 : f32 to vector<32x384xf32>
    %408 = arith.mulf %407, %392 : vector<32x384xf32>
    %409 = arith.mulf %408, %403 : vector<32x384xf32>
    %410 = arith.subf %409, %392 : vector<32x384xf32>
    %411 = arith.mulf %22, %410 : vector<32x384xf32>
    %412 = arith.truncf %411 : vector<32x384xf32> to vector<32x384xbf16>
    %c416 = arith.constant 416 : index
    %c0_150 = arith.constant 0 : index
    %413 = vector.load %arg7[%c416, %c0_150] : memref<448x384xbf16, #tpu.memory_space<vmem>>, vector<32x384xbf16>
    tpu.vector_store %arg7[%c416, %c0_150], %412 {strides = array<i32>} : memref<448x384xbf16, #tpu.memory_space<vmem>>, vector<32x384xbf16>,
    %c0_151 = arith.constant 0 : index
    %c0_152 = arith.constant 0 : index
    %414 = vector.load %arg2[%c0_151, %c0_152] : memref<32x448xbf16, #tpu.memory_space<vmem>>, vector<32x448xbf16>
    %c0_153 = arith.constant 0 : index
    %c0_154 = arith.constant 0 : index
    %415 = vector.load %arg7[%c0_153, %c0_154] : memref<448x384xbf16, #tpu.memory_space<vmem>>, vector<448x384xbf16>
    %cst_155 = arith.constant dense<0.000000e+00> : vector<32x384xf32>
    %416 = tpu.matmul %414, %415, %cst_155 {dimension_numbers = #tpu.dot_dimension_numbers<[1], [0], [0], [1], [0, 0, 1, 1], [], []>} : vector<32x448xbf16>, vector<448x384xbf16>, vector<32x384xf32> -> vector<32x384xf32>
    %c0_156 = arith.constant 0 : index
    %c0_157 = arith.constant 0 : index
    %417 = vector.load %arg3[%c0_156, %c0_157] : memref<32x1xf32, #tpu.memory_space<vmem>>, vector<32x1xf32>
    %418 = vector.broadcast %417 : vector<32x1xf32> to vector<32x384xf32>
    %419 = vector.broadcast %19 : vector<1x384xf32> to vector<32x384xf32>
    %420 = arith.mulf %418, %419 : vector<32x384xf32>
    %421 = arith.addf %416, %420 : vector<32x384xf32>
    %c0_158 = arith.constant 0 : index
    %c0_159 = arith.constant 0 : index
    %422 = vector.load %arg6[%c0_158, %c0_159] : memref<32x384xf32, #tpu.memory_space<vmem>>, vector<32x384xf32>
    tpu.vector_store %arg6[%c0_158, %c0_159], %421 {strides = array<i32>} : memref<32x384xf32, #tpu.memory_space<vmem>>, vector<32x384xf32>,
    return
  }
  func.func @transform_0(%arg0: i32) -> (i32, i32) {
    %c0_i32 = arith.constant 0 : i32
    %c0_i32_0 = arith.constant 0 : i32
    return %c0_i32, %arg0 : i32, i32
  }
  func.func @transform_1(%arg0: i32) -> (i32, i32) {
    %c0_i32 = arith.constant 0 : i32
    %c0_i32_0 = arith.constant 0 : i32
    %c0_i32_1 = arith.constant 0 : i32
    return %c0_i32, %c0_i32_0 : i32, i32
  }
  func.func @transform_2(%arg0: i32) -> (i32, i32) {
    %c0_i32 = arith.constant 0 : i32
    %c0_i32_0 = arith.constant 0 : i32
    %c0_i32_1 = arith.constant 0 : i32
    return %c0_i32, %c0_i32_0 : i32, i32
  }
  func.func @transform_3(%arg0: i32) -> (i32, i32) {
    %c0_i32 = arith.constant 0 : i32
    %c0_i32_0 = arith.constant 0 : i32
    %c0_i32_1 = arith.constant 0 : i32
    return %c0_i32, %c0_i32_0 : i32, i32
  }
  func.func @transform_4(%arg0: i32) -> (i32, i32) {
    %c0_i32 = arith.constant 0 : i32
    %c0_i32_0 = arith.constant 0 : i32
    %c0_i32_1 = arith.constant 0 : i32
    return %c0_i32, %c0_i32_0 : i32, i32
  }
  func.func @transform_5(%arg0: i32) -> (i32, i32) {
    %c0_i32 = arith.constant 0 : i32
    %c0_i32_0 = arith.constant 0 : i32
    return %c0_i32, %arg0 : i32, i32
  }
}

</mosaic_0001>

<bundles_post_ra>
// kernel: tpu_custom_call.1
= control target key start
LH: loop header
LB: loop body
LE: loop exit
PB: predicated region body
PF: predicated region fallthrough
CT: control target
= control target key end

     0   :  { %10 = vsyncpa [#allocation4], 0  ;;  %s6962_s0 = inlined_call_operand.hbm [shape: f32[32,384], index: 0, kind: input, shape index: {}]   ;;  %s6963_s1 = inlined_call_operand.hbm [shape: bf16[32,448], index: 1, kind: input, shape index: {}]   ;;  %s6964_s2 = inlined_call_operand.vmem [shape: f32[32,1], index: 2, kind: input, shape index: {}]   ;;  %s6965_s3 = inlined_call_operand.vmem [shape: f32[8,32], index: 3, kind: input, shape index: {}]   ;;  %s6966_s4 = inlined_call_operand.vmem [shape: f32[8,1], index: 4, kind: input, shape index: {}]   ;;  %s6967_s5 = inlined_call_operand.hbm [shape: f32[32,384], index: 5, kind: output, shape index: {}]  }
   0x1   :  { %11 = vsyncpa [#allocation7], 0 }
   0x2   :  { %12 = vsyncpa [#allocation5], 0  ;;  %s3633_s18 = smov [#allocation3]   ;;  %s3561_s22 = scalar_lea.hbm %s6962_s0, 1536 }
   0x3   :  { %s18_s19 = sshll.u32 %s3633_s18, 4  ;;  %p3562_p0 = scmp.ne.s32.totalorder %s6962_s0, %s3561_s22  ;;  %s19_s19 = int_to_ptr.vmem [resolvable:$true] %s18_s19 }
   0x4   :  { %p3565_p1 = scmp.lt.u32.totalorder %s3561_s22, %s6962_s0 }
   0x6   :  { %p3567_p2 = pnand %p3565_p1, %p3562_p0 }
   0x8   :  { %3570 = shalt.err (!%p3567_p2)
}
   0x9   :  { %s3571_s27 = scalar_lea.vmem %s19_s19, 1536  ;;  %p3576_p4 = scmp.lt.s32.totalorder %s19_s19, %s19_s19 }
   0xa   :  { %p3572_p3 = scmp.ne.s32.totalorder %s19_s19, %s3571_s27  ;;  %p3577_p5 = scmp.lt.s32.totalorder %s3571_s27, %s3571_s27 }
   0xc   :  { %p3578_p6 = por %p3577_p5, %p3576_p4 }
   0xe   :  { %p3579_p7 = pnand %p3578_p6, %p3572_p3 }
  0x10   :  { %3582 = shalt.err (!%p3579_p7)
}
  0x11   :  { %s3634_s28 = smov 384   ;;  %s3635_s29 = smov 24  }
  0x12   :  { %24 = dma.hbm_to_vmem [thread:$0]  %s6962_s0, 1536, %s19_s19, [#allocation4], %s3634_s28, %s3634_s28, %s3635_s29  }
  0x13   :  { %s3636_s7 = smov [#allocation6]   ;;  %s3583_s11 = scalar_lea.hbm %s6963_s1, 1024 }
  0x14   :  { %s30_s8 = sshll.u32 %s3636_s7, 4  ;;  %p3584_p8 = scmp.ne.s32.totalorder %s6963_s1, %s3583_s11  ;;  %s31_s8 = int_to_ptr.vmem [resolvable:$true] %s30_s8 }
  0x15   :  { %p3587_p9 = scmp.lt.u32.totalorder %s3583_s11, %s6963_s1 }
  0x17   :  { %p3589_p10 = pnand %p3587_p9, %p3584_p8 }
  0x19   :  { %3592 = shalt.err (!%p3589_p10)
}
  0x1a   :  { %s3593_s16 = scalar_lea.vmem %s31_s8, 1024  ;;  %p3598_p12 = scmp.lt.s32.totalorder %s31_s8, %s31_s8 }
  0x1b   :  { %p3594_p11 = scmp.ne.s32.totalorder %s31_s8, %s3593_s16  ;;  %p3599_p13 = scmp.lt.s32.totalorder %s3593_s16, %s3593_s16 }
  0x1d   :  { %p3600_p0 = por %p3599_p13, %p3598_p12 }
  0x1f   :  { %p3601_p1 = pnand %p3600_p0, %p3594_p11 }
  0x21   :  { %3604 = shalt.err (!%p3601_p1)
}
  0x22   :  { %s3637_s0 = smov 256   ;;  %s3638_s17 = smov 16  }
  0x23   :  { %36 = dma.hbm_to_vmem [thread:$0]  %s6963_s1, 1024, %s31_s8, [#allocation7], %s3637_s0, %s3637_s0, %s3638_s17  }
  0x24   :  { %3627 = dma.done.wait [#allocation4], 1536  }
  0x25   :  { %3628 = vsyncadd [#allocation4], 4294965760 }
  0x26   :  { %3629 = dma.done.wait [#allocation7], 1024  }
  0x27   :  { %3630 = vsyncadd [#allocation7], 4294966272  ;;  %v6970_v0 = vmov 0.0   ;;  %v6968_v1 = vmov 0   ;;  %v3704_v2 = vld [vmem:[#allocation3 + $0x8] sm:$0xff]  ;;  %v3706_v3 = vld [vmem:[#allocation3 + $0x20] sm:$0xff]  ;;  %v265_v57 = vlaneseq }
  0x28   :  { %137 = vmatprep.mubr.f32.mxu1 %v6970_v0  ;;  %3420 = vset.pattern.permute.xlu0 %v6968_v1  ;;  %v3708_v4 = vld [vmem:[#allocation3] sm:$0xff]  ;;  %v3379_v5 = vpack.c.bf16 %v3706_v3, %v3704_v2  ;;  %v3712_v6 = vld [vmem:[#allocation3 + $0x18] sm:$0xff]  ;;  %v3716_v8 = vld [vmem:[#allocation3 + $0x50] sm:$0xff]  ;;  %vm69_vm0 = vcmask 261120   ;;  %v3641_v22 = vmov 0.0|0.0   ;;  %vm3642_vm1 = vmmov 0  }
  0x29   :  { %3421 = vset.pattern.permute.xlu1 %v6968_v1  ;;  %v3714_v7 = vld [vmem:[#allocation3 + $0x38] sm:$0xff]  ;;  %v3381_v9 = vpack.c.bf16 %v3712_v6, %v3708_v4  ;;  %v3722_v11 = vld [vmem:[#allocation3 + $0x30] sm:$0xff]  ;;  %v3724_v12 = vld [vmem:[#allocation3 + $0x48] sm:$0xff]  ;;  %v3155_v27 = vmul.f32 -1.442695, %v3708_v4  ;;  %vm506_vm12 = vcmp.lt.f32.partialorder %v3704_v2, -1.0 }
  0x2a   :  { %v3383_v10 = vpack.c.bf16 %v3716_v8, %v3714_v7  ;;  %3380 = vmatprep.subr.bf16.mxu1 %v3379_v5  ;;  %v3385_v13 = vpack.c.bf16 %v3724_v12, %v3722_v11  ;;  %v3728_v14 = vld [vmem:[#allocation3 + $0x10] sm:$0xff]  ;;  %v3730_v15 = vld [vmem:[#allocation3 + $0x28] sm:$0xff]  ;;  %v63_v16 = vld [vmem:[%s6966_s4] sm:$0xff]  ;;  %v3156_v28 = vmul.f32 -1.442695, %v3704_v2 }
  0x2b   :  { %3382 = vmatpush1.bf16.msra.mxu1 %v3381_v9  ;;  %66 = vperm.xlu0 %3420, %v63_v16   ;;  %v2838_v17 = vld [vmem:[%s6964_s2] sm:$0xff]  ;;  %v2839_v18 = vld [vmem:[%s6964_s2 + $0x8] sm:$0xff]  ;;  %v2840_v19 = vld [vmem:[%s6964_s2 + $0x10] sm:$0xff]  ;;  %v3388_v21 = vpack.c.bf16 %v3730_v15, %v3728_v14  ;;  %v3159_v29 = vmul.f32 -1.442695, %v3706_v3  ;;  %3434 = vpow2.f32 %v3155_v27 }
  0x2c   :  { %3384 = vmatprep.subr.bf16.mxu1 %v3383_v10  ;;  %2849 = vperm.xlu1 %3421, %v2839_v18   ;;  %v62_v20 = vld [vmem:[%s6965_s3] sm:$0xff]  ;;  %v3751_v24 = vld [vmem:[#allocation3 + $0x58] sm:$0xff]  ;;  %v3158_v30 = vmul.f32 -1.442695, %v3712_v6  ;;  %v3162_v31 = vmul.f32 -1.442695, %v3714_v7  ;;  %3436 = vpow2.f32 %v3156_v28 }
  0x2d   :  { %v3749_v23 = vld [vmem:[#allocation3 + $0x40] sm:$0xff]  ;;  %v2841_v25 = vld [vmem:[%s6964_s2 + $0x18] sm:$0xff]  ;;  %v3165_v32 = vmul.f32 -1.442695, %v3716_v8  ;;  %3438 = vpow2.f32 %v3159_v29  ;;  %v3161_v33 = vmul.f32 -1.442695, %v3722_v11 }
  0x2e   :  { %v3391_v26 = vpack.c.bf16 %v3751_v24, %v3749_v23  ;;  %3440 = vpow2.f32 %v3158_v30  ;;  %v3164_v34 = vmul.f32 -1.442695, %v3724_v12  ;;  %vm398_vm2 = vcmp.ge.f32.partialorder %v3704_v2, -2.2  ;;  %s3643_s2 = smov [#allocation8]  }
  0x2f   :  { %3386 = vmatpush1.bf16.msra.mxu1 %v3385_v13  ;;  %2844 = vperm.xlu0 %3420, %v2838_v17   ;;  %3442 = vpow2.f32 %v3162_v31  ;;  %vm401_vm3 = vcmp.ge.f32.partialorder %v3706_v3, -2.2  ;;  %vm410_vm4 = vcmp.lt.f32.partialorder %v3704_v2, -1.8  ;;  %vm413_vm5 = vcmp.lt.f32.partialorder %v3706_v3, -1.8 }
  0x30   :  { %3387 = vmatprep.subr.bf16.mxu1 %v3641_v22  ;;  %2854 = vperm.xlu1 %3421, %v2840_v19   ;;  %3444 = vpow2.f32 %v3165_v32  ;;  %vm3773_vm6 = vmand %vm398_vm2, %vm410_vm4  ;;  %vm446_vm7 = vcmp.ge.f32.partialorder %v3704_v2, -1.8  ;;  %vm449_vm8 = vcmp.ge.f32.partialorder %v3706_v3, -1.8  ;;  %vm458_vm10 = vcmp.lt.f32.partialorder %v3704_v2, -1.4 }
  0x31   :  { %3446 = vpow2.f32 %v3161_v33  ;;  %vm3779_vm9 = vmand %vm401_vm3, %vm413_vm5  ;;  %vm461_vm11 = vcmp.lt.f32.partialorder %v3706_v3, -1.4  ;;  %vm494_vm14 = vcmp.ge.f32.partialorder %v3704_v2, -1.4  ;;  %vm497_vm15 = vcmp.ge.f32.partialorder %v3706_v3, -1.4 }
  0x32   :  { %3153 = vmatmul.mubr.msk.f32.vlgmr.msra.gmra.mrb[0].mxu1 %vm69_vm0, %v62_v20  ;;  %3448 = vpow2.f32 %v3164_v34  ;;  %vm470_vm13 = vmand %vm446_vm7, %vm458_vm10  ;;  %v434_v46 = vsel %vm3773_vm6, 1.0, %v6970_v0  ;;  %v437_v47 = vsel %vm3779_vm9, 1.0, %v6970_v0  ;;  %vm542_vm4 = vcmp.ge.f32.partialorder %v3704_v2, -1.0  ;;  %s3140_s3 = sshll.u32 %s3643_s2, 4  ;;  %s3141_s3 = int_to_ptr.vmem [resolvable:$true] %s3140_s3 }
  0x33   :  { %3389 = vmatpush3.bf16.msra.mxu1 %v3388_v21  ;;  %3376 = vmatprep.mubr.msk.f32.mxu1 %vm3642_vm1, %v6970_v0  ;;  %vm509_vm1 = vcmp.lt.f32.partialorder %v3706_v3, -1.0  ;;  %vm518_vm2 = vmand %vm494_vm14, %vm506_vm12  ;;  %v482_v48 = vsel %vm470_vm13, 1.0, %v6970_v0  ;;  %vm545_vm5 = vcmp.ge.f32.partialorder %v3706_v3, -1.0  ;;  %v3801_v53 = vadd.f32 2.2, %v3704_v2  ;;  %s3605_s7 = scalar_lea.vmem %s3141_s3, 1536  ;;  %p3610_p3 = scmp.lt.s32.totalorder %s3141_s3, %s3141_s3 }
  0x34   :  { %3390 = vmatprep.subr.bf16.mxu1 %v3641_v22  ;;  %2859 = vperm.xlu0 %3420, %v2841_v25   ;;  %vm521_vm3 = vmand %vm497_vm15, %vm509_vm1  ;;  %v530_v52 = vsel %vm518_vm2, 1.0, %v6970_v0  ;;  %vm554_vm6 = vcmp.lt.f32.partialorder %v3704_v2, -0.6  ;;  %v3806_v56 = vadd.f32 2.2, %v3706_v3  ;;  %v3834_v18 = vadd.f32 1.0, %v3704_v2  ;;  %p3606_p2 = scmp.ne.s32.totalorder %s3141_s3, %s3605_s7  ;;  %p3611_p4 = scmp.lt.s32.totalorder %s3605_s7, %s3605_s7 }
  0x35   :  { %v3435_v36 = vpop.eup %3434  ;;  %v533_v55 = vsel %vm521_vm3, 1.0, %v6970_v0  ;;  %vm557_vm7 = vcmp.lt.f32.partialorder %v3706_v3, -0.6  ;;  %v938_v60 = vmul.f32 %v3801_v53, %v434_v46  ;;  %v3812_v62 = vadd.f32 1.4, %v3704_v2 }
  0x36   :  { %v3437_v38 = vpop.eup %3436  ;;  %v325_v39 = vadd.f32 1.0, %v3435_v36  ;;  %v941_v61 = vmul.f32 %v3806_v56, %v437_v47  ;;  %v3815_v63 = vadd.f32 1.4, %v3706_v3  ;;  %v3824_v10 = vadd.f32 1.8, %v3704_v2  ;;  %vm569_vm9 = vmand %vm545_vm5, %vm557_vm7  ;;  %7328 = vst [vmem:[#allocation16_spill] sm:$0xff] %v3834_v18  ;;  %p3612_p5 = por %p3611_p4, %p3610_p3 }
  0x37   :  { %3392 = vmatpush3.bf16.msra.mxu1 %v3391_v26  ;;  %v3439_v40 = vpop.eup %3438  ;;  %v326_v41 = vadd.f32 1.0, %v3437_v38  ;;  %7322 = vst [vmem:[#allocation12_spill] sm:$0xff] %v3812_v62  ;;  %v3827_v13 = vadd.f32 1.8, %v3706_v3  ;;  %v962_v16 = vmul.f32 %v3812_v62, %v482_v48  ;;  %v3837_v19 = vadd.f32 1.0, %v3706_v3 }
  0x38   :  { %v3441_v42 = vpop.eup %3440  ;;  %v329_v43 = vadd.f32 1.0, %v3439_v40  ;;  %3450 = vrcp.f32 %v325_v39  ;;  %7323 = vst [vmem:[#allocation13_spill] sm:$0xff] %v3815_v63  ;;  %7326 = vst [vmem:[#allocation14_spill] sm:$0xff] %v3824_v10  ;;  %v1010_v22 = vmul.f32 %v3824_v10, %v482_v48  ;;  %v1034_v28 = vmul.f32 %v3834_v18, %v530_v52  ;;  %p3613_p6 = pnand %p3612_p5, %p3606_p2 }
  0x39   :  { %v3443_v44 = vpop.eup %3442  ;;  %v328_v45 = vadd.f32 1.0, %v3441_v42  ;;  %3452 = vrcp.f32 %v326_v41  ;;  %7327 = vst [vmem:[#allocation15_spill] sm:$0xff] %v3827_v13  ;;  %7329 = vst [vmem:[#allocation17_spill] sm:$0xff] %v3837_v19  ;;  %v974_v25 = vsub.f32 %v938_v60, %v962_v16  ;;  %v3848_v30 = vsel %vm569_vm9, 1.0, %v6970_v0 }
  0x3a   :  { %3377 = vmatmul.mubr.msk.f32.vlgmr.msra.gmra.mrb[2].mxu1 %vm69_vm0, %v62_v20  ;;  %vm473_vm0 = vmand %vm449_vm8, %vm461_vm11  ;;  %v3445_v49 = vpop.eup %3444  ;;  %v332_v51 = vadd.f32 1.0, %v3443_v44  ;;  %3454 = vrcp.f32 %v329_v43  ;;  %v266_v20 = vshrl.u32 %v265_v57, 7  ;;  %7331 = vst [vmem:[#allocation19_spill] sm:$0xff] %v3848_v30  ;;  %v1037_v31 = vmul.f32 %v3837_v19, %v533_v55 }
  0x3b   :  { %v485_v50 = vsel %vm473_vm0, 1.0, %v6970_v0  ;;  %v3447_v54 = vpop.eup %3446  ;;  %3456 = vrcp.f32 %v328_v45  ;;  %v335_v58 = vadd.f32 1.0, %v3445_v49  ;;  %vm3819_vm8 = vmand %vm542_vm4, %vm554_vm6  ;;  %v986_v33 = vmul.f32 2.5, %v974_v25 }
  0x3c   :  { %v3449_v59 = vpop.eup %3448  ;;  %3458 = vrcp.f32 %v332_v51  ;;  %v331_v5 = vadd.f32 1.0, %v3447_v54  ;;  %v965_v17 = vmul.f32 %v3815_v63, %v485_v50  ;;  %v1013_v27 = vmul.f32 %v3827_v13, %v485_v50 }
  0x3d   :  { %3460 = vrcp.f32 %v335_v58  ;;  %v334_v21 = vadd.f32 1.0, %v3449_v59  ;;  %v3845_v29 = vsel %vm3819_vm8, 1.0, %v6970_v0  ;;  %v1046_v35 = vsub.f32 %v1010_v22, %v1034_v28 }
  0x3e   :  { %v977_v26 = vsub.f32 %v941_v61, %v965_v17  ;;  %3462 = vrcp.f32 %v331_v5  ;;  %7330 = vst [vmem:[#allocation18_spill] sm:$0xff] %v3845_v29  ;;  %v1070_v36 = vmul.f32 %v3812_v62, %v530_v52  ;;  %v1049_v38 = vsub.f32 %v1013_v27, %v1037_v31 }
  0x3f   :  { %v1073_v39 = vmul.f32 %v3815_v63, %v533_v55  ;;  %v3854_v40 = vadd.f32 0.6, %v3704_v2  ;;  %v3857_v41 = vadd.f32 0.6, %v3706_v3  ;;  %v3859_v43 = vsub.s32 0, %v266_v20 }
  0x40   :  { %v989_v34 = vmul.f32 2.5, %v977_v26  ;;  %3464 = vrcp.f32 %v334_v21  ;;  %v1058_v44 = vmul.f32 2.5, %v1046_v35  ;;  %v1550_v45 = vmul.f32 %v3801_v53, %v986_v33 }
  0x41   :  { %7332 = vst [vmem:[#allocation20_spill] sm:$0xff] %v3854_v40  ;;  %7333 = vst [vmem:[#allocation21_spill] sm:$0xff] %v3857_v41  ;;  %v1061_v47 = vmul.f32 2.5, %v1049_v38  ;;  %v1094_v48 = vmul.f32 %v3854_v40, %v3845_v29  ;;  %v1097_v49 = vmul.f32 %v3857_v41, %v3848_v30  ;;  %v3867_v51 = vsub.s32 2, %v266_v20 }
  0x42   :  { %v3451_v32 = vpop.eup %3450  ;;  %v1553_v50 = vmul.f32 %v3806_v56, %v989_v34  ;;  %v3869_v52 = vsub.s32 1, %v266_v20  ;;  %v1562_v55 = vmul.f32 %v3834_v18, %v1058_v44  ;;  %v1598_v9 = vmul.f32 %v3824_v10, %v1058_v44 }
  0x43   :  { %v3453_v37 = vpop.eup %3452  ;;  %v3872_v54 = vmul.f32 %v3451_v32, %v3708_v4  ;;  %v1106_v59 = vsub.f32 %v1070_v36, %v1094_v48  ;;  %v1109_v60 = vsub.f32 %v1073_v39, %v1097_v49  ;;  %v1565_v61 = vmul.f32 %v3837_v19, %v1061_v47 }
  0x44   :  { %v3455_v42 = vpop.eup %3454  ;;  %v3876_v58 = vmul.f32 %v3453_v37, %v3704_v2  ;;  %v1574_v5 = vsub.f32 %v1550_v45, %v1562_v55  ;;  %v1601_v16 = vmul.f32 %v3827_v13, %v1061_v47  ;;  %vm543_vm10 = vcmp.ge.f32.partialorder %v3728_v14, -1.0 }
  0x45   :  { %v3457_v46 = vpop.eup %3456  ;;  %v3882_v20 = vmul.f32 2.5, %v1106_v59  ;;  %v3884_v21 = vmul.f32 2.5, %v1109_v60  ;;  %v1577_v22 = vsub.f32 %v1553_v50, %v1565_v61  ;;  %vm555_vm11 = vcmp.lt.f32.partialorder %v3728_v14, -0.6 }
  0x46   :  { %v3459_v57 = vpop.eup %3458  ;;  %v3888_v2 = vmul.f32 %v3455_v42, %v3706_v3  ;;  %v3891_v25 = vmul.f32 %v3457_v46, %v3712_v6  ;;  %vm546_vm12 = vcmp.ge.f32.partialorder %v3730_v15, -1.0  ;;  %vm558_vm13 = vcmp.lt.f32.partialorder %v3730_v15, -0.6  ;;  %vm567_vm15 = vmand %vm543_vm10, %vm555_vm11 }
  0x47   :  { %v3461_v17 = vpop.eup %3460  ;;  %7334 = vst [vmem:[#allocation22_spill] sm:$0xff] %v3882_v20  ;;  %7335 = vst [vmem:[#allocation23_spill] sm:$0xff] %v3884_v21  ;;  %v3896_v27 = vmul.f32 %v3459_v57, %v3714_v7  ;;  %v1610_v28 = vmul.f32 %v3854_v40, %v3882_v20  ;;  %v1613_v31 = vmul.f32 %v3857_v41, %v3884_v21  ;;  %vm591_vm14 = vcmp.ge.f32.partialorder %v3728_v14, -0.6 }
  0x48   :  { %v3463_v26 = vpop.eup %3462  ;;  %v3904_v3 = vmul.f32 %v3461_v17, %v3716_v8  ;;  %v1586_v32 = vmul.f32 1.25, %v1574_v5  ;;  %vm594_vm0 = vcmp.ge.f32.partialorder %v3730_v15, -0.6  ;;  %vm603_vm1 = vcmp.lt.f32.partialorder %v3728_v14, -0.2  ;;  %vm3912_vm2 = vmand %vm546_vm12, %vm558_vm13 }
  0x49   :  { %v1589_v33 = vmul.f32 1.25, %v1577_v22  ;;  %v1622_v34 = vsub.f32 %v1598_v9, %v1610_v28  ;;  %v1625_v35 = vsub.f32 %v1601_v16, %v1613_v31  ;;  %vm606_vm3 = vcmp.lt.f32.partialorder %v3730_v15, -0.2  ;;  %vm3920_vm4 = vmand %vm591_vm14, %vm603_vm1 }
  0x4a   :  { %v3465_v37 = vpop.eup %3464  ;;  %v3918_v38 = vmul.f32 %v3463_v26, %v3722_v11  ;;  %vm639_vm5 = vcmp.ge.f32.partialorder %v3728_v14, -0.2  ;;  %vm642_vm6 = vcmp.ge.f32.partialorder %v3730_v15, -0.2  ;;  %v3927_v42 = vadd.f32 1.0, %v3728_v14  ;;  %vm618_vm7 = vmand %vm594_vm0, %vm606_vm3 }
  0x4b   :  { %v3929_v44 = vmul.f32 1.25, %v1622_v34  ;;  %v3932_v45 = vsel %vm567_vm15, 1.0, %v6970_v0  ;;  %vm651_vm8 = vcmp.lt.f32.partialorder %v3728_v14, 0.2  ;;  %v3938_v11 = vadd.f32 1.0, %v3730_v15 }
  0x4c   :  { %7340 = vst [vmem:[#allocation24_spill] sm:$0xff] %v3927_v42  ;;  %v3941_v46 = vmul.f32 %v3801_v53, %v1586_v32  ;;  %vm654_vm9 = vcmp.lt.f32.partialorder %v3730_v15, 0.2  ;;  %vm663_vm10 = vmand %vm639_vm5, %vm651_vm8  ;;  %vm687_vm11 = vcmp.ge.f32.partialorder %v3728_v14, 0.2  ;;  %v3946_v47 = vmul.f32 1.25, %v1625_v35 }
  0x4d   :  { %7341 = vst [vmem:[#allocation25_spill] sm:$0xff] %v3929_v44  ;;  %7342 = vst [vmem:[#allocation26_spill] sm:$0xff] %v3938_v11  ;;  %vm690_vm12 = vcmp.ge.f32.partialorder %v3730_v15, 0.2  ;;  %v3949_v48 = vmul.f32 %v3806_v56, %v1589_v33  ;;  %v3954_v49 = vsel %vm3912_vm2, 1.0, %v6970_v0  ;;  %v627_v53 = vsel %vm3920_vm4, 1.0, %v6970_v0 }
  0x4e   :  { %7343 = vst [vmem:[#allocation27_spill] sm:$0xff] %v3946_v47  ;;  %vm666_vm13 = vmand %vm642_vm6, %vm654_vm9  ;;  %vm699_vm14 = vcmp.lt.f32.partialorder %v3728_v14, 0.6  ;;  %v630_v50 = vsel %vm618_vm7, 1.0, %v6970_v0  ;;  %vm702_vm15 = vcmp.lt.f32.partialorder %v3730_v15, 0.6  ;;  %v3969_v55 = vmul.f32 %v3854_v40, %v3929_v44 }
  0x4f   :  { %vm711_vm0 = vmand %vm687_vm11, %vm699_vm14  ;;  %v3965_v56 = vadd.f32 0.6, %v3728_v14  ;;  %v675_v57 = vsel %vm663_vm10, 1.0, %v6970_v0  ;;  %v3973_v59 = vadd.f32 0.6, %v3730_v15  ;;  %v1131_v60 = vmul.f32 %v3927_v42, %v3932_v45 }
  0x50   :  { %vm714_vm1 = vmand %vm690_vm12, %vm702_vm15  ;;  %v678_v61 = vsel %vm666_vm13, 1.0, %v6970_v0  ;;  %v1134_v5 = vmul.f32 %v3938_v11, %v3954_v49  ;;  %v3981_v9 = vadd.f32 0.2, %v3728_v14  ;;  %v3984_v16 = vadd.f32 0.2, %v3730_v15 }
  0x51   :  { %7344 = vst [vmem:[#allocation28_spill] sm:$0xff] %v3965_v56  ;;  %7345 = vst [vmem:[#allocation29_spill] sm:$0xff] %v3973_v59  ;;  %v3988_v17 = vmul.f32 %v3857_v41, %v3946_v47  ;;  %v3991_v22 = vsel %vm711_vm0, 1.0, %v6970_v0  ;;  %v3994_v26 = vsel %vm714_vm1, 1.0, %v6970_v0  ;;  %v1191_v28 = vmul.f32 %v3965_v56, %v627_v53 }
  0x52   :  { %7346 = vst [vmem:[#allocation30_spill] sm:$0xff] %v3981_v9  ;;  %7347 = vst [vmem:[#allocation31_spill] sm:$0xff] %v3984_v16  ;;  %vm397_vm2 = vcmp.ge.f32.partialorder %v3708_v4, -2.2  ;;  %vm409_vm3 = vcmp.lt.f32.partialorder %v3708_v4, -1.8  ;;  %v1155_v31 = vmul.f32 %v3981_v9, %v627_v53  ;;  %v1158_v32 = vmul.f32 %v3984_v16, %v630_v50 }
  0x53   :  { %7348 = vst [vmem:[#allocation32_spill] sm:$0xff] %v3994_v26  ;;  %v1194_v33 = vmul.f32 %v3973_v59, %v630_v50  ;;  %v4003_v34 = vadd.f32 -0.2, %v3728_v14  ;;  %vm400_vm4 = vcmp.ge.f32.partialorder %v3712_v6, -2.2  ;;  %v1251_v36 = vmul.f32 %v3981_v9, %v675_v57  ;;  %vm421_vm7 = vmand %vm397_vm2, %vm409_vm3 }
  0x54   :  { %v4007_v35 = vadd.f32 -0.2, %v3730_v15  ;;  %v1254_v39 = vmul.f32 %v3984_v16, %v678_v61  ;;  %v4012_v1 = vadd.f32 -0.6, %v3728_v14  ;;  %v1167_v53 = vsub.f32 %v1131_v60, %v1155_v31 }
  0x55   :  { %7349 = vst [vmem:[#allocation33_spill] sm:$0xff] %v4003_v34  ;;  %v1170_v0 = vsub.f32 %v1134_v5, %v1158_v32  ;;  %v1215_v41 = vmul.f32 %v4003_v34, %v675_v57  ;;  %v4016_v50 = vadd.f32 -0.6, %v3730_v15  ;;  %v4019_v40 = vmul.f32 %v3465_v37, %v3724_v12 }
  0x56   :  { %7350 = vst [vmem:[#allocation34_spill] sm:$0xff] %v4007_v35  ;;  %7351 = vst [vmem:[#allocation35_spill] sm:$0xff] %v4012_v1  ;;  %v1218_v13 = vmul.f32 %v4007_v35, %v678_v61  ;;  %v1275_v47 = vmul.f32 %v4012_v1, %v3991_v22  ;;  %v3157_v10 = vmul.f32 -1.442695, %v3728_v14  ;;  %v4025_v44 = vmul.f32 2.5, %v1167_v53 }
  0x57   :  { %7352 = vst [vmem:[#allocation36_spill] sm:$0xff] %v4016_v50  ;;  %v4027_v63 = vmul.f32 2.5, %v1170_v0  ;;  %v1227_v60 = vsub.f32 %v1191_v28, %v1215_v41  ;;  %v1278_v57 = vmul.f32 %v4016_v50, %v3994_v26  ;;  %v2006_v5 = vsub.f32 %v3941_v46, %v3969_v55 }
  0x58   :  { %7353 = vst [vmem:[#allocation37_spill] sm:$0xff] %v4025_v44  ;;  %v1230_v12 = vsub.f32 %v1194_v33, %v1218_v13  ;;  %v1287_v37 = vsub.f32 %v1251_v36, %v1275_v47  ;;  %3466 = vpow2.f32 %v3157_v10  ;;  %v1695_v53 = vmul.f32 %v3927_v42, %v4025_v44 }
  0x59   :  { %7354 = vst [vmem:[#allocation38_spill] sm:$0xff] %v4027_v63  ;;  %v1239_v31 = vmul.f32 2.5, %v1227_v60  ;;  %v1290_v32 = vsub.f32 %v1254_v39, %v1278_v57  ;;  %v1698_v41 = vmul.f32 %v3938_v11, %v4027_v63  ;;  %v3160_v28 = vmul.f32 -1.442695, %v3730_v15 }
  0x5a   :  { %v1242_v0 = vmul.f32 2.5, %v1230_v12  ;;  %v4037_v21 = vmul.f32 2.5, %v1287_v37  ;;  %vm412_vm5 = vcmp.lt.f32.partialorder %v3712_v6, -1.8  ;;  %vm445_vm6 = vcmp.ge.f32.partialorder %v3708_v4, -1.8 }
  0x5b   :  { %v4042_v46 = vmul.f32 2.5, %v1290_v32  ;;  %v1707_v10 = vmul.f32 %v4003_v34, %v1239_v31  ;;  %v1743_v13 = vmul.f32 %v3965_v56, %v1239_v31  ;;  %vm448_vm8 = vcmp.ge.f32.partialorder %v3712_v6, -1.8  ;;  %vm4062_vm10 = vmand %vm400_vm4, %vm412_vm5 }
  0x5c   :  { %7355 = vst [vmem:[#allocation39_spill] sm:$0xff] %v4037_v21  ;;  %v1710_v47 = vmul.f32 %v4007_v35, %v1242_v0  ;;  %v1746_v55 = vmul.f32 %v3973_v59, %v1242_v0  ;;  %v1755_v33 = vmul.f32 %v4012_v1, %v4037_v21  ;;  %vm457_vm9 = vcmp.lt.f32.partialorder %v3708_v4, -1.4 }
  0x5d   :  { %7356 = vst [vmem:[#allocation40_spill] sm:$0xff] %v4042_v46  ;;  %v1719_v36 = vsub.f32 %v1695_v53, %v1707_v10  ;;  %v1758_v39 = vmul.f32 %v4016_v50, %v4042_v46  ;;  %vm460_vm11 = vcmp.lt.f32.partialorder %v3712_v6, -1.4  ;;  %vm493_vm12 = vcmp.ge.f32.partialorder %v3708_v4, -1.4  ;;  %vm4072_vm13 = vmand %vm445_vm6, %vm457_vm9 }
  0x5e   :  { %v1722_v60 = vsub.f32 %v1698_v41, %v1710_v47  ;;  %v1767_v57 = vsub.f32 %v1743_v13, %v1755_v33  ;;  %v4068_v37 = vmul.f32 0.8333333, %v2006_v5  ;;  %vm496_vm14 = vcmp.ge.f32.partialorder %v3712_v6, -1.4  ;;  %vm472_vm15 = vmand %vm448_vm8, %vm460_vm11 }
  0x5f   :  { %v4070_v31 = vmul.f32 1.25, %v1719_v36  ;;  %v1770_v32 = vsub.f32 %v1746_v55, %v1758_v39  ;;  %3468 = vpow2.f32 %v3160_v28  ;;  %v7363_v41 = vmov 0.0  }
  0x60   :  { %v4077_v0 = vmul.f32 1.25, %v1767_v57  ;;  %v433_v10 = vsel %vm421_vm7, 1.0, %v7363_v41  ;;  %vm505_vm0 = vcmp.lt.f32.partialorder %v3708_v4, -1.0  ;;  %v4083_v5 = vmul.f32 1.25, %v1722_v60 }
  0x61   :  { %7359 = vst [vmem:[#allocation41_spill] sm:$0xff] %v4070_v31  ;;  %v4085_v13 = vmul.f32 1.25, %v1770_v32  ;;  %vm508_vm1 = vcmp.lt.f32.partialorder %v3712_v6, -1.0  ;;  %vm4088_vm2 = vmand %vm493_vm12, %vm505_vm0  ;;  %vm541_vm3 = vcmp.ge.f32.partialorder %v3708_v4, -1.0  ;;  %v2127_v55 = vmul.f32 %v3927_v42, %v4070_v31 }
  0x62   :  { %7362 = vst [vmem:[#allocation42_spill] sm:$0xff] %v4077_v0  ;;  %7364 = vst [vmem:[#allocation43_spill] sm:$0xff] %v4083_v5  ;;  %v3467_v28 = vpop.eup %3466  ;;  %v2139_v33 = vmul.f32 %v4012_v1, %v4077_v0  ;;  %v436_v36 = vsel %vm4062_vm10, 1.0, %v7363_v41  ;;  %vm544_vm5 = vcmp.ge.f32.partialorder %v3712_v6, -1.0  ;;  %v481_v60 = vsel %vm4072_vm13, 1.0, %v7363_v41 }
  0x63   :  { %7365 = vst [vmem:[#allocation44_spill] sm:$0xff] %v4085_v13  ;;  %vm520_vm4 = vmand %vm496_vm14, %vm508_vm1  ;;  %v327_v39 = vadd.f32 1.0, %v3467_v28  ;;  %v484_v57 = vsel %vm472_vm15, 1.0, %v7363_v41  ;;  %vm553_vm6 = vcmp.lt.f32.partialorder %v3708_v4, -0.6  ;;  %v4110_v32 = vmul.f32 %v3965_v56, %v3932_v45 }
  0x64   :  { %vm556_vm7 = vcmp.lt.f32.partialorder %v3712_v6, -0.6  ;;  %vm565_vm8 = vmand %vm541_vm3, %vm553_vm6  ;;  %v4114_v12 = vadd.f32 2.2, %v3708_v4  ;;  %v4117_v28 = vadd.f32 2.2, %v3712_v6  ;;  %v4121_v53 = vmul.f32 %v3938_v11, %v4083_v5 }
  0x65   :  { %7368 = vst [vmem:[#allocation45_spill] sm:$0xff] %v4110_v32  ;;  %v4125_v61 = vmul.f32 %v4016_v50, %v4085_v13  ;;  %v529_v45 = vsel %vm4088_vm2, 1.0, %v7363_v41  ;;  %v532_v31 = vsel %vm520_vm4, 1.0, %v7363_v41  ;;  %vm568_vm9 = vmand %vm544_vm5, %vm556_vm7  ;;  %v2151_v63 = vsub.f32 %v2127_v55, %v2139_v33 }
  0x66   :  { %3470 = vrcp.f32 %v327_v39  ;;  %v4132_v44 = vsel %vm565_vm8, 1.0, %v7363_v41  ;;  %v4135_v1 = vsel %vm568_vm9, 1.0, %v7363_v41  ;;  %v937_v5 = vmul.f32 %v4114_v12, %v433_v10 }
  0x67   :  { %7369 = vst [vmem:[#allocation46_spill] sm:$0xff] %v4132_v44  ;;  %7370 = vst [vmem:[#allocation47_spill] sm:$0xff] %v4135_v1  ;;  %v940_v50 = vmul.f32 %v4117_v28, %v436_v36  ;;  %v4140_v32 = vadd.f32 1.4, %v3708_v4  ;;  %v4143_v47 = vadd.f32 1.4, %v3712_v6 }
  0x68   :  { %v4146_v11 = vadd.f32 1.8, %v3708_v4  ;;  %v4149_v55 = vadd.f32 1.8, %v3712_v6  ;;  %v4152_v33 = vadd.f32 1.0, %v3708_v4  ;;  %v4155_v39 = vadd.f32 1.0, %v3712_v6 }
  0x69   :  { %7371 = vst [vmem:[#allocation48_spill] sm:$0xff] %v4140_v32  ;;  %7372 = vst [vmem:[#allocation49_spill] sm:$0xff] %v4143_v47  ;;  %v961_v10 = vmul.f32 %v4140_v32, %v481_v60  ;;  %v964_v36 = vmul.f32 %v4143_v47, %v484_v57  ;;  %v1069_v42 = vmul.f32 %v4140_v32, %v529_v45  ;;  %v3469_v20 = vpop.eup %3468  ;;  %v4166_v0 = vadd.f32 0.6, %v3708_v4 }
  0x6a   :  { %7373 = vst [vmem:[#allocation50_spill] sm:$0xff] %v4146_v11  ;;  %7374 = vst [vmem:[#allocation51_spill] sm:$0xff] %v4149_v55  ;;  %v1072_v62 = vmul.f32 %v4143_v47, %v532_v31  ;;  %v1009_v19 = vmul.f32 %v4146_v11, %v481_v60  ;;  %v1012_v30 = vmul.f32 %v4149_v55, %v484_v57  ;;  %v4169_v16 = vadd.f32 0.6, %v3712_v6 }
  0x6b   :  { %7375 = vst [vmem:[#allocation52_spill] sm:$0xff] %v4152_v33  ;;  %7376 = vst [vmem:[#allocation53_spill] sm:$0xff] %v4155_v39  ;;  %v1033_v18 = vmul.f32 %v4152_v33, %v529_v45  ;;  %v1036_v29 = vmul.f32 %v4155_v39, %v532_v31  ;;  %v973_v13 = vsub.f32 %v937_v5, %v961_v10  ;;  %v4182_v6 = vmul.f32 0.8333333, %v2151_v63 }
  0x6c   :  { %v976_v56 = vsub.f32 %v940_v50, %v964_v36  ;;  %7377 = vst [vmem:[#allocation54_spill] sm:$0xff] %v4166_v0  ;;  %7378 = vst [vmem:[#allocation55_spill] sm:$0xff] %v4169_v16  ;;  %v7379_v47 = vsub.f32 %v3949_v48, %v3988_v17  ;;  %v2154_v60 = vsub.f32 %v4121_v53, %v4125_v61  ;;  %v330_v5 = vadd.f32 1.0, %v3469_v20 }
  0x6d   :  { %v1045_v57 = vsub.f32 %v1009_v19, %v1033_v18  ;;  %v1048_v45 = vsub.f32 %v1012_v30, %v1036_v29  ;;  %v985_v46 = vmul.f32 2.5, %v973_v13  ;;  %v1093_v50 = vmul.f32 %v4166_v0, %v4132_v44 }
  0x6e   :  { %v4174_v32 = vmul.f32 0.8333333, %v7379_v47  ;;  %v988_v31 = vmul.f32 2.5, %v976_v56  ;;  %v1096_v4 = vmul.f32 %v4169_v16, %v4135_v1  ;;  %vm549_vm10 = vcmp.ge.f32.partialorder %v3749_v23, -1.0 }
  0x6f   :  { %v1057_v10 = vmul.f32 2.5, %v1045_v57  ;;  %v1060_v48 = vmul.f32 2.5, %v1048_v45  ;;  %v1105_v17 = vsub.f32 %v1069_v42, %v1093_v50  ;;  %v1549_v36 = vmul.f32 %v4114_v12, %v985_v46 }
  0x70   :  { %v1108_v47 = vsub.f32 %v1072_v62, %v1096_v4  ;;  %v1552_v18 = vmul.f32 %v4117_v28, %v988_v31  ;;  %v3471_v19 = vpop.eup %3470  ;;  %vm561_vm11 = vcmp.lt.f32.partialorder %v3749_v23, -0.6  ;;  %vm552_vm12 = vcmp.ge.f32.partialorder %v3751_v24, -1.0 }
  0x71   :  { %v1561_v29 = vmul.f32 %v4152_v33, %v1057_v10  ;;  %v1564_v30 = vmul.f32 %v4155_v39, %v1060_v48  ;;  %v4190_v63 = vmul.f32 2.5, %v1105_v17  ;;  %v1597_v42 = vmul.f32 %v4146_v11, %v1057_v10  ;;  %vm573_vm0 = vmand %vm549_vm10, %vm561_vm11 }
  0x72   :  { %v4192_v20 = vmul.f32 2.5, %v1108_v47  ;;  %v1600_v62 = vmul.f32 %v4149_v55, %v1060_v48  ;;  %vm564_vm13 = vcmp.lt.f32.partialorder %v3751_v24, -0.6  ;;  %vm597_vm14 = vcmp.ge.f32.partialorder %v3749_v23, -0.6 }
  0x73   :  { %7380 = vst [vmem:[#allocation56_spill] sm:$0xff] %v4190_v63  ;;  %v1573_v56 = vsub.f32 %v1549_v36, %v1561_v29  ;;  %v1576_v61 = vsub.f32 %v1552_v18, %v1564_v30  ;;  %v1609_v46 = vmul.f32 %v4166_v0, %v4190_v63  ;;  %vm600_vm15 = vcmp.ge.f32.partialorder %v3751_v24, -0.6  ;;  %vm4210_vm3 = vmand %vm552_vm12, %vm564_vm13 }
  0x74   :  { %7381 = vst [vmem:[#allocation57_spill] sm:$0xff] %v4192_v20  ;;  %v1612_v13 = vmul.f32 %v4169_v16, %v4192_v20  ;;  %3472 = vrcp.f32 %v330_v5  ;;  %vm609_vm1 = vcmp.lt.f32.partialorder %v3749_v23, -0.2  ;;  %vm612_vm2 = vcmp.lt.f32.partialorder %v3751_v24, -0.2 }
  0x75   :  { %v1585_v53 = vmul.f32 1.25, %v1573_v56  ;;  %v1588_v57 = vmul.f32 1.25, %v1576_v61  ;;  %v1621_v45 = vsub.f32 %v1597_v42, %v1609_v46  ;;  %vm645_vm4 = vcmp.ge.f32.partialorder %v3749_v23, -0.2  ;;  %vm4221_vm5 = vmand %vm597_vm14, %vm609_vm1 }
  0x76   :  { %v1624_v31 = vsub.f32 %v1600_v62, %v1612_v13  ;;  %v4217_v4 = vmul.f32 %v3973_v59, %v3954_v49  ;;  %v4219_v5 = vmul.f32 0.8333333, %v2154_v60  ;;  %vm648_vm6 = vcmp.ge.f32.partialorder %v3751_v24, -0.2  ;;  %vm4237_vm8 = vmand %vm600_vm15, %vm612_vm2 }
  0x77   :  { %vm657_vm7 = vcmp.lt.f32.partialorder %v3749_v23, 0.2  ;;  %v4228_v48 = vmul.f32 %v3471_v19, %v3728_v14  ;;  %v4230_v17 = vmul.f32 1.25, %v1621_v45  ;;  %v4233_v47 = vsel %vm573_vm0, 1.0, %v7363_v41 }
  0x78   :  { %7384 = vst [vmem:[#allocation58_spill] sm:$0xff] %v4217_v4  ;;  %vm660_vm9 = vcmp.lt.f32.partialorder %v3751_v24, 0.2  ;;  %v4242_v60 = vmul.f32 1.25, %v1624_v31  ;;  %vm4244_vm10 = vmand %vm645_vm4, %vm657_vm7  ;;  %vm693_vm11 = vcmp.ge.f32.partialorder %v3749_v23, 0.2  ;;  %v4254_v18 = vmul.f32 %v4114_v12, %v1585_v53 }
  0x79   :  { %7387 = vst [vmem:[#allocation59_spill] sm:$0xff] %v4230_v17  ;;  %vm696_vm12 = vcmp.ge.f32.partialorder %v3751_v24, 0.2  ;;  %v4251_v14 = vadd.f32 1.0, %v3749_v23  ;;  %v4257_v19 = vmul.f32 %v4117_v28, %v1588_v57  ;;  %v4262_v29 = vsel %vm4210_vm3, 1.0, %v7363_v41  ;;  %vm672_vm13 = vmand %vm648_vm6, %vm660_vm9 }
  0x7a   :  { %7390 = vst [vmem:[#allocation60_spill] sm:$0xff] %v4242_v60  ;;  %vm705_vm14 = vcmp.lt.f32.partialorder %v3749_v23, 0.6  ;;  %v633_v30 = vsel %vm4221_vm5, 1.0, %v7363_v41  ;;  %vm708_vm15 = vcmp.lt.f32.partialorder %v3751_v24, 0.6  ;;  %v4279_v42 = vmul.f32 %v4166_v0, %v4230_v17 }
  0x7b   :  { %7393 = vst [vmem:[#allocation61_spill] sm:$0xff] %v4251_v14  ;;  %vm717_vm0 = vmand %vm693_vm11, %vm705_vm14  ;;  %v4272_v12 = vadd.f32 1.0, %v3751_v24  ;;  %v4275_v28 = vadd.f32 0.6, %v3749_v23  ;;  %v636_v62 = vsel %vm4237_vm8, 1.0, %v7363_v41  ;;  %v681_v56 = vsel %vm4244_vm10, 1.0, %v7363_v41 }
  0x7c   :  { %vm720_vm1 = vmand %vm696_vm12, %vm708_vm15  ;;  %v4290_v61 = vadd.f32 0.6, %v3751_v24  ;;  %v4294_v46 = vmul.f32 %v4169_v16, %v4242_v60  ;;  %v684_v13 = vsel %vm672_vm13, 1.0, %v7363_v41  ;;  %v1137_v53 = vmul.f32 %v4251_v14, %v4233_v47 }
  0x7d   :  { %7394 = vst [vmem:[#allocation62_spill] sm:$0xff] %v4272_v12  ;;  %7395 = vst [vmem:[#allocation63_spill] sm:$0xff] %v4275_v28  ;;  %v4300_v57 = vadd.f32 0.2, %v3749_v23  ;;  %v4303_v45 = vsel %vm717_vm0, 1.0, %v7363_v41  ;;  %v4306_v31 = vsel %vm720_vm1, 1.0, %v7363_v41  ;;  %v1140_v50 = vmul.f32 %v4272_v12, %v4262_v29 }
  0x7e   :  { %7396 = vst [vmem:[#allocation64_spill] sm:$0xff] %v4290_v61  ;;  %7398 = vst [vmem:[#allocation66_spill] sm:$0xff] %v4303_v45  ;;  %v4311_v10 = vadd.f32 0.2, %v3751_v24  ;;  %v3473_v49 = vpop.eup %3472  ;;  %v1197_v16 = vmul.f32 %v4275_v28, %v633_v30  ;;  %v1200_v0 = vmul.f32 %v4290_v61, %v636_v62  ;;  %v4317_v55 = vadd.f32 -0.2, %v3749_v23 }
  0x7f   :  { %7397 = vst [vmem:[#allocation65_spill] sm:$0xff] %v4300_v57  ;;  %7399 = vst [vmem:[#allocation67_spill] sm:$0xff] %v4306_v31  ;;  %v1161_v36 = vmul.f32 %v4300_v57, %v633_v30  ;;  %v4321_v11 = vadd.f32 -0.2, %v3751_v24  ;;  %v1257_v17 = vmul.f32 %v4300_v57, %v681_v56  ;;  %v4327_v1 = vadd.f32 -0.6, %v3749_v23 }
  0x80   :  { %7400 = vst [vmem:[#allocation68_spill] sm:$0xff] %v4311_v10  ;;  %7401 = vst [vmem:[#allocation69_spill] sm:$0xff] %v4317_v55  ;;  %v1164_v60 = vmul.f32 %v4311_v10, %v636_v62  ;;  %v1260_v20 = vmul.f32 %v4311_v10, %v684_v13  ;;  %v1221_v39 = vmul.f32 %v4317_v55, %v681_v56  ;;  %v4330_v30 = vadd.f32 -0.6, %v3751_v24 }
  0x81   :  { %7402 = vst [vmem:[#allocation70_spill] sm:$0xff] %v4321_v11  ;;  %v1173_v63 = vsub.f32 %v1137_v53, %v1161_v36  ;;  %7403 = vst [vmem:[#allocation71_spill] sm:$0xff] %v4327_v1  ;;  %v4333_v33 = vmul.f32 %v3473_v49, %v3730_v15  ;;  %v2005_v62 = vsub.f32 %v4254_v18, %v4279_v42  ;;  %vm404_vm2 = vcmp.ge.f32.partialorder %v3714_v7, -2.2 }
  0x82   :  { %7404 = vst [vmem:[#allocation72_spill] sm:$0xff] %v4330_v30  ;;  %v1176_v44 = vsub.f32 %v1140_v50, %v1164_v60  ;;  %v1224_v57 = vmul.f32 %v4321_v11, %v684_v13  ;;  %v1233_v53 = vsub.f32 %v1197_v16, %v1221_v39  ;;  %v1281_v56 = vmul.f32 %v4327_v1, %v4303_v45 }
  0x83   :  { %v4338_v4 = vmul.f32 2.5, %v1173_v63  ;;  %v1284_v23 = vmul.f32 %v4330_v30, %v4306_v31  ;;  %v2008_v24 = vsub.f32 %v4257_v19, %v4294_v46  ;;  %vm407_vm3 = vcmp.ge.f32.partialorder %v3716_v8, -2.2 }
  0x84   :  { %v4346_v15 = vmul.f32 2.5, %v1176_v44  ;;  %v1236_v49 = vsub.f32 %v1200_v0, %v1224_v57  ;;  %v1245_v60 = vmul.f32 2.5, %v1233_v53  ;;  %v1293_v18 = vsub.f32 %v1257_v17, %v1281_v56 }
  0x85   :  { %7405 = vst [vmem:[#allocation73_spill] sm:$0xff] %v4338_v4  ;;  %v1296_v42 = vsub.f32 %v1260_v20, %v1284_v23  ;;  %v1701_v16 = vmul.f32 %v4251_v14, %v4338_v4  ;;  %vm416_vm4 = vcmp.lt.f32.partialorder %v3714_v7, -1.8  ;;  %vm419_vm5 = vcmp.lt.f32.partialorder %v3716_v8, -1.8 }
  0x86   :  { %7406 = vst [vmem:[#allocation74_spill] sm:$0xff] %v4346_v15  ;;  %v1248_v39 = vmul.f32 2.5, %v1236_v49  ;;  %v1704_v63 = vmul.f32 %v4272_v12, %v4346_v15  ;;  %v4355_v19 = vmul.f32 2.5, %v1293_v18  ;;  %v1713_v0 = vmul.f32 %v4317_v55, %v1245_v60  ;;  %vm4381_vm7 = vmand %vm404_vm2, %vm416_vm4 }
  0x87   :  { %v4357_v44 = vmul.f32 2.5, %v1296_v42  ;;  %v1749_v17 = vmul.f32 %v4275_v28, %v1245_v60  ;;  %vm452_vm6 = vcmp.ge.f32.partialorder %v3714_v7, -1.8  ;;  %v4375_v60 = vmul.f32 %v4275_v28, %v4233_v47  ;;  %vm431_vm9 = vmand %vm407_vm3, %vm419_vm5 }
  0x88   :  { %7407 = vst [vmem:[#allocation75_spill] sm:$0xff] %v4355_v19  ;;  %v1716_v13 = vmul.f32 %v4321_v11, %v1248_v39  ;;  %v1752_v57 = vmul.f32 %v4290_v61, %v1248_v39  ;;  %v1725_v53 = vsub.f32 %v1701_v16, %v1713_v0  ;;  %v1761_v56 = vmul.f32 %v4327_v1, %v4355_v19 }
  0x89   :  { %7408 = vst [vmem:[#allocation76_spill] sm:$0xff] %v4357_v44  ;;  %v1764_v23 = vmul.f32 %v4330_v30, %v4357_v44  ;;  %7409 = vst [vmem:[#allocation77_spill] sm:$0xff] %v4375_v60  ;;  %vm464_vm8 = vcmp.lt.f32.partialorder %v3714_v7, -1.4  ;;  %v4387_v39 = vmul.f32 0.8333333, %v2005_v62 }
  0x8a   :  { %v1728_v18 = vsub.f32 %v1704_v63, %v1716_v13  ;;  %v4389_v0 = vmul.f32 0.8333333, %v2008_v24  ;;  %vm455_vm10 = vcmp.ge.f32.partialorder %v3716_v8, -1.8  ;;  %vm467_vm11 = vcmp.lt.f32.partialorder %v3716_v8, -1.4  ;;  %vm476_vm12 = vmand %vm452_vm6, %vm464_vm8 }
  0x8b   :  { %v1776_v63 = vsub.f32 %v1752_v57, %v1764_v23  ;;  %v4401_v24 = vmul.f32 1.25, %v1725_v53  ;;  %vm500_vm13 = vcmp.ge.f32.partialorder %v3714_v7, -1.4  ;;  %v440_v57 = vsel %vm4381_vm7, 1.0, %v7363_v41  ;;  %vm4414_vm15 = vmand %vm455_vm10, %vm467_vm11 }
  0x8c   :  { %vm503_vm14 = vcmp.ge.f32.partialorder %v3716_v8, -1.4  ;;  %v443_v23 = vsel %vm431_vm9, 1.0, %v7363_v41  ;;  %vm512_vm0 = vcmp.lt.f32.partialorder %v3714_v7, -1.0  ;;  %vm515_vm1 = vcmp.lt.f32.partialorder %v3716_v8, -1.0  ;;  %v4448_v8 = vld [vmem:[#allocation3 + $0x50] sm:$0xff] }
  0x8d   :  { %7412 = vst [vmem:[#allocation78_spill] sm:$0xff] %v4401_v24  ;;  %vm524_vm2 = vmand %vm500_vm13, %vm512_vm0  ;;  %vm548_vm3 = vcmp.ge.f32.partialorder %v3714_v7, -1.0  ;;  %v4428_v60 = vmul.f32 %v4251_v14, %v4401_v24  ;;  %vm551_vm6 = vcmp.ge.f32.partialorder %v4448_v8, -1.0  ;;  %vm563_vm8 = vcmp.lt.f32.partialorder %v4448_v8, -0.6 }
  0x8e   :  { %vm527_vm4 = vmand %vm503_vm14, %vm515_vm1  ;;  %7419 = vst [vmem:[#allocation83_spill] sm:$0xff] %v4448_v8  ;;  %v4470_v44 = vadd.f32 1.4, %v4448_v8 }
  0x8f   :  { %v539_v53 = vsel %vm527_vm4, 1.0, %v7363_v41  ;;  %vm575_vm9 = vmand %vm551_vm6, %vm563_vm8 }
  0x90   :  { %7422 = vst [vmem:[#allocation86_spill] sm:$0xff] %v4470_v44 }
  0xaa   :  { %v67_v20 = vpop.permute.xlu0 %66 }
 0x105   :  { %v139_v46 = vpop.f32.mrb[0].mxu1 }
 0x106   :  { %v4365_v50 = vadd.f32 %v139_v46, %v67_v20  ;;  %v141_v36 = vpop.f32.mrb[1].mxu1  ;;  %v1773_v46 = vsub.f32 %v1749_v17, %v1761_v56  ;;  %v4403_v17 = vmul.f32 1.25, %v1728_v18  ;;  %v488_v18 = vsel %vm476_vm12, 1.0, %v7363_v41 }
 0x107   :  { %v4371_v49 = vadd.f32 %v141_v36, %v67_v20 }
 0x108   :  { %v214_v16 = vrot.slane %v4365_v50, 4  ;;  %7413 = vst [vmem:[#allocation79_spill] sm:$0xff] %v4403_v17  ;;  %v4407_v36 = vmul.f32 1.25, %v1773_v46  ;;  %v4432_v28 = vmul.f32 %v4272_v12, %v4403_v17 }
 0x109   :  { %v220_v47 = vrot.slane %v4371_v49, 4 }
 0x10a   :  { %v215_v62 = vmax.f32 %v4365_v50, %v214_v16  ;;  %7414 = vst [vmem:[#allocation80_spill] sm:$0xff] %v4407_v36  ;;  %v4438_v10 = vmul.f32 %v4327_v1, %v4407_v36  ;;  %v4460_v1 = vadd.f32 2.2, %v4448_v8 }
 0x10b   :  { %v221_v13 = vmax.f32 %v4371_v49, %v220_v47  ;;  %v4420_v47 = vmul.f32 1.25, %v1776_v63 }
 0x10c   :  { %v216_v56 = vrot.slane %v215_v62, 2 }
 0x10d   :  { %v222_v16 = vrot.slane %v221_v13, 2  ;;  %v210_v46 = vpop.f32.mrb[2].mxu1  ;;  %7417 = vst [vmem:[#allocation81_spill] sm:$0xff] %v4420_v47 }
 0x10e   :  { %v217_v42 = vmax.f32 %v215_v62, %v216_v56  ;;  %v4424_v15 = vadd.f32 %v210_v46, %v67_v20  ;;  %v3378_v4 = vpop.f32.mrb[3].mxu1  ;;  %v4443_v20 = vld [vmem:[#allocation3 + $0x38] sm:$0xff]  ;;  %v536_v46 = vsel %vm524_vm2, 1.0, %v7363_v41 }
 0x10f   :  { %v223_v63 = vmax.f32 %v221_v13, %v222_v16  ;;  %v491_v4 = vsel %vm4414_vm15, 1.0, %v7363_v41  ;;  %7418 = vst [vmem:[#allocation82_spill] sm:$0xff] %v4443_v20  ;;  %vm560_vm5 = vcmp.lt.f32.partialorder %v4443_v20, -0.6  ;;  %v4456_v16 = vadd.f32 2.2, %v4443_v20 }
 0x110   :  { %v218_v62 = vrot.slane %v217_v42, 1  ;;  %v226_v56 = vrot.slane %v4424_v15, 4  ;;  %vm572_vm7 = vmand %vm548_vm3, %vm560_vm5  ;;  %v4463_v12 = vadd.f32 1.4, %v4443_v20  ;;  %v971_v31 = vmul.f32 %v4470_v44, %v491_v4 }
 0x111   :  { %v224_v13 = vrot.slane %v223_v63, 1  ;;  %v4466_v7 = vsel %vm572_vm7, 1.0, %v7363_v41  ;;  %v944_v36 = vmul.f32 %v4456_v16, %v440_v57 }
 0x112   :  { %v219_v17 = vmax.f32 %v217_v42, %v218_v62  ;;  %v227_v24 = vmax.f32 %v4424_v15, %v226_v56  ;;  %7420 = vst [vmem:[#allocation84_spill] sm:$0xff] %v4463_v12  ;;  %7421 = vst [vmem:[#allocation85_spill] sm:$0xff] %v4466_v7  ;;  %v947_v62 = vmul.f32 %v4460_v1, %v443_v23 }
 0x113   :  { %v225_v14 = vmax.f32 %v223_v63, %v224_v13  ;;  %v968_v56 = vmul.f32 %v4463_v12, %v488_v18  ;;  %v4478_v63 = vadd.f32 1.8, %v4443_v20  ;;  %v4481_v13 = vadd.f32 1.8, %v4448_v8 }
 0x114   :  { %v232_v19 = vsub.f32 %v4365_v50, %v219_v17  ;;  %v228_v42 = vrot.slane %v227_v24, 2  ;;  %v4488_v17 = vadd.f32 1.0, %v4443_v20 }
 0x115   :  { %v233_v11 = vsub.f32 %v4371_v49, %v225_v14  ;;  %7423 = vst [vmem:[#allocation87_spill] sm:$0xff] %v4478_v63  ;;  %7424 = vst [vmem:[#allocation88_spill] sm:$0xff] %v4481_v13  ;;  %v980_v50 = vsub.f32 %v944_v36, %v968_v56  ;;  %v983_v49 = vsub.f32 %v947_v62, %v971_v31 }
 0x116   :  { %v235_v57 = vmul.f32 1.442695, %v232_v19  ;;  %v229_v55 = vmax.f32 %v227_v24, %v228_v42  ;;  %7425 = vst [vmem:[#allocation89_spill] sm:$0xff] %v4488_v17  ;;  %v1016_v23 = vmul.f32 %v4478_v63, %v488_v18  ;;  %v1019_v45 = vmul.f32 %v4481_v13, %v491_v4 }
 0x117   :  { %v237_v14 = vmul.f32 1.442695, %v233_v11  ;;  %v992_v9 = vmul.f32 2.5, %v980_v50  ;;  %v4493_v19 = vadd.f32 1.0, %v4448_v8  ;;  %v4496_v24 = vsel %vm575_vm9, 1.0, %v7363_v41 }
 0x118   :  { %3474 = vpow2.f32 %v235_v57  ;;  %v230_v59 = vrot.slane %v229_v55, 1  ;;  %7427 = vst [vmem:[#allocation91_spill] sm:$0xff] %v4496_v24  ;;  %v995_v36 = vmul.f32 2.5, %v983_v49  ;;  %v1040_v42 = vmul.f32 %v4488_v17, %v536_v46 }
 0x119   :  { %7426 = vst [vmem:[#allocation90_spill] sm:$0xff] %v4493_v19  ;;  %3476 = vpow2.f32 %v237_v14  ;;  %v1043_v11 = vmul.f32 %v4493_v19, %v539_v53  ;;  %v1076_v31 = vmul.f32 %v4463_v12, %v536_v46  ;;  %v4502_v18 = vadd.f32 0.6, %v4443_v20 }
 0x11a   :  { %v231_v56 = vmax.f32 %v229_v55, %v230_v59  ;;  %v1052_v4 = vsub.f32 %v1016_v23, %v1040_v42  ;;  %v1079_v62 = vmul.f32 %v4470_v44, %v539_v53  ;;  %v4506_v57 = vadd.f32 0.6, %v4448_v8  ;;  %v4512_v55 = vld [vmem:[#allocation3 + $0x40] sm:$0xff]  ;;  %v4518_v42 = vld [vmem:[#allocation3 + $0x58] sm:$0xff] }
 0x11b   :  { %7428 = vst [vmem:[#allocation92_spill] sm:$0xff] %v4502_v18  ;;  %v1556_v50 = vmul.f32 %v4456_v16, %v992_v9  ;;  %v1055_v49 = vsub.f32 %v1019_v45, %v1043_v11  ;;  %v1100_v59 = vmul.f32 %v4502_v18, %v4466_v7  ;;  %v3163_v46 = vmul.f32 -1.442695, %v4512_v55 }
 0x11c   :  { %7429 = vst [vmem:[#allocation93_spill] sm:$0xff] %v4506_v57  ;;  %v234_v14 = vsub.f32 %v4424_v15, %v231_v56  ;;  %v1064_v12 = vmul.f32 2.5, %v1052_v4  ;;  %v1103_v23 = vmul.f32 %v4506_v57, %v4496_v24  ;;  %v1559_v53 = vmul.f32 %v4460_v1, %v995_v36 }
 0x11d   :  { %v3166_v9 = vmul.f32 -1.442695, %v4518_v42  ;;  %v1067_v15 = vmul.f32 2.5, %v1055_v49  ;;  %v1112_v45 = vsub.f32 %v1076_v31, %v1100_v59  ;;  %3478 = vpow2.f32 %v3163_v46 }
 0x11e   :  { %v239_v44 = vmul.f32 1.442695, %v234_v14  ;;  %v4523_v56 = vmul.f32 %v4330_v30, %v4420_v47  ;;  %v1115_v11 = vsub.f32 %v1079_v62, %v1103_v23  ;;  %v1568_v4 = vmul.f32 %v4488_v17, %v1064_v12  ;;  %v4541_v23 = vld [vmem:[#allocation3 + $0x30] sm:$0xff] }
 0x11f   :  { %3480 = vpow2.f32 %v3166_v9  ;;  %v4526_v24 = vmul.f32 2.5, %v1112_v45  ;;  %v1571_v36 = vmul.f32 %v4493_v19, %v1067_v15  ;;  %v1604_v7 = vmul.f32 %v4478_v63, %v1064_v12 }
 0x120   :  { %3482 = vpow2.f32 %v239_v44  ;;  %v4532_v14 = vmul.f32 %v4290_v61, %v4262_v29  ;;  %v4534_v31 = vmul.f32 2.5, %v1115_v11  ;;  %v1580_v49 = vsub.f32 %v1556_v50, %v1568_v4  ;;  %v4555_v4 = vld [vmem:[#allocation3 + $0x48] sm:$0xff] }
 0x121   :  { %7430 = vst [vmem:[#allocation94_spill] sm:$0xff] %v4526_v24  ;;  %v1607_v59 = vmul.f32 %v4481_v13, %v1067_v15  ;;  %v1583_v46 = vsub.f32 %v1559_v53, %v1571_v36  ;;  %v1616_v44 = vmul.f32 %v4502_v18, %v4526_v24  ;;  %vm403_vm10 = vcmp.ge.f32.partialorder %v4541_v23, -2.2 }
 0x122   :  { %7431 = vst [vmem:[#allocation95_spill] sm:$0xff] %v4532_v14  ;;  %7432 = vst [vmem:[#allocation96_spill] sm:$0xff] %v4534_v31  ;;  %v4537_v62 = vpop.eup %3474  ;;  %vm415_vm11 = vcmp.lt.f32.partialorder %v4541_v23, -1.8  ;;  %v1619_v53 = vmul.f32 %v4506_v57, %v4534_v31  ;;  %v1592_v45 = vmul.f32 1.25, %v1580_v49  ;;  %vm511_vm7 = vcmp.lt.f32.partialorder %v4541_v23, -1.0 }
 0x123   :  { %v4545_v12 = vpop.eup %3476  ;;  %v241_v29 = vrot.slane %v4537_v62, 4  ;;  %v1628_v11 = vsub.f32 %v1604_v7, %v1616_v44  ;;  %vm406_vm12 = vcmp.ge.f32.partialorder %v4555_v4, -2.2  ;;  %v1595_v30 = vmul.f32 1.25, %v1583_v46  ;;  %vm427_vm14 = vmand %vm403_vm10, %vm415_vm11 }
 0x124   :  { %v247_v15 = vrot.slane %v4545_v12, 4  ;;  %v1631_v14 = vsub.f32 %v1607_v59, %v1619_v53  ;;  %vm418_vm13 = vcmp.lt.f32.partialorder %v4555_v4, -1.8  ;;  %vm451_vm15 = vcmp.ge.f32.partialorder %v4541_v23, -1.8 }
 0x125   :  { %v242_v36 = vadd.f32 %v4537_v62, %v241_v29  ;;  %v4565_v50 = vmul.f32 1.25, %v1628_v11  ;;  %vm463_vm0 = vcmp.lt.f32.partialorder %v4541_v23, -1.4  ;;  %vm454_vm1 = vcmp.ge.f32.partialorder %v4555_v4, -1.8  ;;  %vm4578_vm3 = vmand %vm406_vm12, %vm418_vm13 }
 0x126   :  { %v248_v9 = vadd.f32 %v4545_v12, %v247_v15  ;;  %v4569_v49 = vmul.f32 1.25, %v1631_v14  ;;  %vm466_vm2 = vcmp.lt.f32.partialorder %v4555_v4, -1.4  ;;  %v4574_v44 = vmul.f32 %v4456_v16, %v1592_v45  ;;  %vm475_vm5 = vmand %vm451_vm15, %vm463_vm0 }
 0x127   :  { %7433 = vst [vmem:[#allocation97_spill] sm:$0xff] %v4565_v50  ;;  %v243_v7 = vrot.slane %v242_v36, 2  ;;  %v3479_v59 = vpop.eup %3478  ;;  %v439_v53 = vsel %vm427_vm14, 1.0, %v7363_v41  ;;  %vm499_vm4 = vcmp.ge.f32.partialorder %v4541_v23, -1.4  ;;  %v4585_v11 = vmul.f32 %v4460_v1, %v1595_v30  ;;  %vm478_vm6 = vmand %vm454_vm1, %vm466_vm2 }
 0x128   :  { %7434 = vst [vmem:[#allocation98_spill] sm:$0xff] %v4569_v49  ;;  %v249_v46 = vrot.slane %v248_v9, 2  ;;  %v4589_v13 = vmul.f32 %v4502_v18, %v4565_v50  ;;  %v333_v16 = vadd.f32 1.0, %v3479_v59  ;;  %v4599_v31 = vmul.f32 %v4506_v57, %v4569_v49  ;;  %vm523_vm9 = vmand %vm499_vm4, %vm511_vm7 }
 0x129   :  { %v3481_v14 = vpop.eup %3480  ;;  %v244_v15 = vadd.f32 %v243_v7, %v242_v36  ;;  %v442_v7 = vsel %vm4578_vm3, 1.0, %v7363_v41  ;;  %vm502_vm8 = vcmp.ge.f32.partialorder %v4555_v4, -1.4  ;;  %v487_v59 = vsel %vm475_vm5, 1.0, %v7363_v41 }
 0x12a   :  { %v4595_v45 = vpop.eup %3482  ;;  %v250_v63 = vadd.f32 %v249_v46, %v248_v9  ;;  %v336_v36 = vadd.f32 1.0, %v3481_v14  ;;  %3484 = vrcp.f32 %v333_v16  ;;  %vm514_vm10 = vcmp.lt.f32.partialorder %v4555_v4, -1.0 }
 0x12b   :  { %v245_v1 = vrot.slane %v244_v15, 1  ;;  %v253_v30 = vrot.slane %v4595_v45, 4  ;;  %v490_v57 = vsel %vm478_vm6, 1.0, %v7363_v41  ;;  %v2012_v29 = vsub.f32 %v4574_v44, %v4589_v13  ;;  %vm526_vm11 = vmand %vm502_vm8, %vm514_vm10 }
 0x12c   :  { %v251_v9 = vrot.slane %v250_v63, 1  ;;  %3486 = vrcp.f32 %v336_v36  ;;  %v2015_v49 = vsub.f32 %v4585_v11, %v4599_v31  ;;  %v535_v16 = vsel %vm523_vm9, 1.0, %v7363_v41 }
 0x12d   :  { %v246_v46 = vadd.f32 %v245_v1, %v244_v15  ;;  %v254_v14 = vadd.f32 %v4595_v45, %v253_v30  ;;  %vm547_vm12 = vcmp.ge.f32.partialorder %v4541_v23, -1.0  ;;  %vm559_vm13 = vcmp.lt.f32.partialorder %v4541_v23, -0.6 }
 0x12e   :  { %v252_v18 = vadd.f32 %v251_v9, %v250_v63  ;;  %v4625_v15 = vadd.f32 2.2, %v4541_v23  ;;  %v4628_v63 = vadd.f32 2.2, %v4555_v4  ;;  %v4631_v13 = vadd.f32 1.4, %v4541_v23  ;;  %vm571_vm0 = vmand %vm547_vm12, %vm559_vm13 }
 0x12f   :  { %3488 = vrcp.f32 %v246_v46  ;;  %v255_v50 = vrot.slane %v254_v14, 2  ;;  %v538_v44 = vsel %vm526_vm11, 1.0, %v7363_v41  ;;  %v4635_v11 = vadd.f32 1.4, %v4555_v4 }
 0x130   :  { %3490 = vrcp.f32 %v252_v18  ;;  %v4638_v36 = vadd.f32 1.8, %v4541_v23  ;;  %vm550_vm14 = vcmp.ge.f32.partialorder %v4555_v4, -1.0  ;;  %v943_v18 = vmul.f32 %v4625_v15, %v439_v53 }
 0x131   :  { %v256_v31 = vadd.f32 %v255_v50, %v254_v14  ;;  %7437 = vst [vmem:[#allocation99_spill] sm:$0xff] %v4635_v11  ;;  %v946_v1 = vmul.f32 %v4628_v63, %v442_v7  ;;  %v967_v30 = vmul.f32 %v4631_v13, %v487_v59  ;;  %vm562_vm15 = vcmp.lt.f32.partialorder %v4555_v4, -0.6 }
 0x132   :  { %v970_v50 = vmul.f32 %v4635_v11, %v490_v57  ;;  %v4651_v46 = vadd.f32 1.8, %v4555_v4  ;;  %v1015_v53 = vmul.f32 %v4638_v36, %v487_v59  ;;  %v4655_v7 = vadd.f32 1.0, %v4541_v23  ;;  %vm574_vm1 = vmand %vm550_vm14, %vm562_vm15 }
 0x133   :  { %v257_v9 = vrot.slane %v256_v31, 1  ;;  %v979_v14 = vsub.f32 %v943_v18, %v967_v30  ;;  %v4658_v24 = vadd.f32 1.0, %v4555_v4  ;;  %v7438_v17 = vsub.f32 %v4428_v60, %v4438_v10 }
 0x134   :  { %v982_v20 = vsub.f32 %v946_v1, %v970_v50  ;;  %v1018_v61 = vmul.f32 %v4651_v46, %v490_v57  ;;  %v3485_v47 = vpop.eup %3484  ;;  %v7439_v18 = vsub.f32 %v4432_v28, %v4523_v56  ;;  %v4674_v30 = vsel %vm571_vm0, 1.0, %v7363_v41 }
 0x135   :  { %v258_v19 = vadd.f32 %v257_v9, %v256_v31  ;;  %v4663_v8 = vmul.f32 0.8333333, %v7438_v17  ;;  %v1039_v31 = vmul.f32 %v4655_v7, %v535_v16  ;;  %v1042_v10 = vmul.f32 %v4658_v24, %v538_v44 }
 0x136   :  { %v4669_v59 = vmul.f32 0.8333333, %v7439_v18  ;;  %v3487_v60 = vpop.eup %3486  ;;  %v991_v17 = vmul.f32 2.5, %v979_v14  ;;  %v994_v57 = vmul.f32 2.5, %v982_v20  ;;  %v4679_v1 = vadd.f32 0.6, %v4541_v23 }
 0x137   :  { %3492 = vrcp.f32 %v258_v19  ;;  %v2024_v28 = vmul.f32 0.8333333, %v2012_v29  ;;  %v2027_v56 = vmul.f32 0.8333333, %v2015_v49  ;;  %v1051_v9 = vsub.f32 %v1015_v53, %v1039_v31 }
 0x138   :  { %7440 = vst [vmem:[#allocation100_spill] sm:$0xff] %v4679_v1  ;;  %v4682_v50 = vadd.f32 0.6, %v4555_v4  ;;  %v4685_v21 = vsel %vm574_vm1, 1.0, %v7363_v41  ;;  %v1054_v35 = vsub.f32 %v1018_v61, %v1042_v10  ;;  %v1075_v26 = vmul.f32 %v4631_v13, %v535_v16 }
 0x139   :  { %v3489_v18 = vpop.eup %3488  ;;  %v1078_v19 = vmul.f32 %v4635_v11, %v538_v44  ;;  %v4691_v23 = vmul.f32 %v4512_v55, %v3485_v47  ;;  %v4694_v49 = vmul.f32 %v4518_v42, %v3487_v60  ;;  %v1099_v4 = vmul.f32 %v4679_v1, %v4674_v30 }
 0x13a   :  { %7441 = vst [vmem:[#allocation101_spill] sm:$0xff] %v4682_v50  ;;  %v3491_v14 = vpop.eup %3490  ;;  %v262_v20 = vmul.f32 %v3489_v18, %v4537_v62  ;;  %v1063_v53 = vmul.f32 2.5, %v1051_v9  ;;  %v4700_v61 = vmul.f32 %v4625_v15, %v991_v17  ;;  %v4703_v16 = vmul.f32 %v4628_v63, %v994_v57  ;;  %v4728_v9 = vld [vmem:[#allocation3 + $0x28] sm:$0xff] }
 0x13b   :  { %v263_v29 = vmul.f32 %v3491_v14, %v4545_v12  ;;  %v1102_v31 = vmul.f32 %v4682_v50, %v4685_v21  ;;  %v4716_v12 = vld [vmem:[#allocation3 + $0x10] sm:$0xff]  ;;  %v1066_v57 = vmul.f32 2.5, %v1054_v35  ;;  %vm738_vm3 = vcmp.ge.f32.partialorder %v4728_v9, 0.6 }
 0x13c   :  { %v4706_v62 = vrot.slane %v262_v20, %v3859_v43  ;;  %v4709_v47 = vrot.slane %v262_v20, %v3867_v51  ;;  %v4712_v44 = vrot.slane %v262_v20, %v3869_v52  ;;  %vm735_vm2 = vcmp.ge.f32.partialorder %v4716_v12, 0.6 }
 0x13d   :  { %v4720_v10 = vrot.slane %v263_v29, %v3859_v43  ;;  %v4723_v60 = vrot.slane %v263_v29, %v3867_v51  ;;  %v4726_v17 = vrot.slane %v263_v29, %v3869_v52  ;;  %v1111_v20 = vsub.f32 %v1075_v26, %v1099_v4 }
 0x13e   :  { %7442 = vst [vmem:[#allocation102_spill] sm:$0xff] %v4709_v47  ;;  %7443 = vst [vmem:[#allocation103_spill] sm:$0xff] %v4712_v44  ;;  %v373_v18 = vmul.f32 %v3872_v54, %v4706_v62  ;;  %v376_v14 = vmul.f32 %v3891_v25, %v4706_v62  ;;  %vm747_vm4 = vcmp.lt.f32.partialorder %v4716_v12, 1.0  ;;  %vm750_vm5 = vcmp.lt.f32.partialorder %v4728_v9, 1.0 }
 0x13f   :  { %7444 = vst [vmem:[#allocation104_spill] sm:$0xff] %v4723_v60  ;;  %7445 = vst [vmem:[#allocation105_spill] sm:$0xff] %v4726_v17  ;;  %v374_v47 = vmul.f32 %v3876_v58, %v4720_v10  ;;  %v377_v29 = vmul.f32 %v3888_v2, %v4720_v10  ;;  %v380_v35 = vmul.f32 %v3896_v27, %v4720_v10  ;;  %v4758_v11 = vmul.f32 2.5, %v1111_v20 }
 0x140   :  { %v383_v54 = vmul.f32 %v3904_v3, %v4720_v10  ;;  %v379_v25 = vmul.f32 %v3918_v38, %v4706_v62  ;;  %v382_v26 = vmul.f32 %v4019_v40, %v4706_v62  ;;  %v1114_v4 = vsub.f32 %v1078_v19, %v1102_v31  ;;  %vm4792_vm6 = vmand %vm735_vm2, %vm747_vm4 }
 0x141   :  { %v3493_v60 = vpop.eup %3492  ;;  %v386_v58 = vpack.c.bf16 %v377_v29, %v374_v47  ;;  %v2366_v2 = vmul.f32 %v4068_v37, %v4720_v10  ;;  %v2369_v27 = vmul.f32 %v4174_v32, %v4720_v10  ;;  %v2365_v44 = vmul.f32 %v4387_v39, %v4706_v62  ;;  %vm762_vm7 = vmand %vm738_vm3, %vm750_vm5 }
 0x142   :  { %v264_v3 = vmul.f32 %v3493_v60, %v4595_v45  ;;  %v385_v17 = vpack.c.bf16 %v376_v14, %v373_v18  ;;  %v2368_v38 = vmul.f32 %v4389_v0, %v4706_v62  ;;  %v389_v40 = vpack.c.bf16 %v383_v54, %v380_v35 }
 0x143   :  { %2919 = vmatprep.subr.bf16.mxu0 %v386_v58  ;;  %v388_v19 = vpack.c.bf16 %v382_v26, %v379_v25  ;;  %v2372_v47 = vmul.f32 %v2024_v28, %v4720_v10  ;;  %v2375_v37 = vmul.f32 %v2027_v56, %v4720_v10  ;;  %v2378_v0 = vpack.c.bf16 %v2369_v27, %v2366_v2 }
 0x144   :  { %v4763_v32 = vrot.slane %v264_v3, %v3859_v43  ;;  %v4766_v39 = vrot.slane %v264_v3, %v3867_v51  ;;  %v4769_v45 = vrot.slane %v264_v3, %v3869_v52  ;;  %2920 = vmatpush1.bf16.msra.mxu0 %v385_v17  ;;  %v2377_v31 = vpack.c.bf16 %v2368_v38, %v2365_v44  ;;  %v7451_v38 = vld [vmem:[#allocation32_spill] sm:$0xff] }
 0x145   :  { %2921 = vmatprep.subr.bf16.mxu0 %v389_v40  ;;  %v4771_v60 = vmul.f32 2.5, %v1114_v4  ;;  %v1567_v18 = vmul.f32 %v4655_v7, %v1063_v53  ;;  %v1570_v28 = vmul.f32 %v4658_v24, %v1066_v57  ;;  %v2381_v56 = vpack.c.bf16 %v2375_v37, %v2372_v47  ;;  %v7452_v40 = vld [vmem:[#allocation34_spill] sm:$0xff]  ;;  %v7454_v37 = vld [vmem:[#allocation39_spill] sm:$0xff] }
 0x146   :  { %7446 = vst [vmem:[#allocation106_spill] sm:$0xff] %v4766_v39  ;;  %7447 = vst [vmem:[#allocation107_spill] sm:$0xff] %v4769_v45  ;;  %v2439_v43 = vmul.f32 %v4182_v6, %v4763_v32  ;;  %v2442_v51 = vmul.f32 %v4219_v5, %v4763_v32  ;;  %v1603_v52 = vmul.f32 %v4638_v36, %v1063_v53  ;;  %v4814_v26 = vsel %vm4792_vm6, 1.0, %v7363_v41  ;;  %v4851_v6 = vld [vmem:[#allocation3 + $0x8] sm:$0xff] }
 0x147   :  { %v375_v17 = vmul.f32 %v4228_v48, %v4763_v32  ;;  %v378_v44 = vmul.f32 %v4333_v33, %v4763_v32  ;;  %v2445_v14 = vmul.f32 %v4663_v8, %v4763_v32  ;;  %v2448_v20 = vmul.f32 %v4669_v59, %v4763_v32  ;;  %7462 = vst [vmem:[#allocation39_spill] sm:$0xff] %v4851_v6 }
 0x148   :  { %2922 = vmatpush1.bf16.msra.mxu0 %v388_v19  ;;  %v2451_v5 = vpack.c.bf16 %v2442_v51, %v2439_v43  ;;  %v381_v48 = vmul.f32 %v4691_v23, %v4763_v32  ;;  %v384_v33 = vmul.f32 %v4694_v49, %v4763_v32  ;;  %v1579_v8 = vsub.f32 %v4700_v61, %v1567_v18  ;;  %v7457_v43 = vld [vmem:[#allocation31_spill] sm:$0xff] }
 0x149   :  { %2923 = vmatprep.subr.bf16.mxu0 %v2378_v0  ;;  %v387_v59 = vpack.c.bf16 %v378_v44, %v375_v17  ;;  %v2454_v53 = vpack.c.bf16 %v2448_v20, %v2445_v14  ;;  %v1582_v29 = vsub.f32 %v4703_v16, %v1570_v28  ;;  %v1606_v35 = vmul.f32 %v4651_v46, %v1066_v57  ;;  %v7456_v28 = vld [vmem:[#allocation40_spill] sm:$0xff]  ;;  %v7461_v14 = vld [vmem:[#allocation29_spill] sm:$0xff] }
 0x14a   :  { %3340 = vmatprep.subr.bf16.mxu1 %v2451_v5  ;;  %v390_v54 = vpack.c.bf16 %v384_v33, %v381_v48  ;;  %v1591_v23 = vmul.f32 1.25, %v1579_v8  ;;  %v1615_v49 = vmul.f32 %v4679_v1, %v4758_v11  ;;  %v1618_v61 = vmul.f32 %v4682_v50, %v4771_v60  ;;  %v7460_v44 = vld [vmem:[#allocation44_spill] sm:$0xff] }
 0x14b   :  { %3341 = vmatpush3.bf16.msra.mxu1 %v387_v59  ;;  %v1594_v25 = vmul.f32 1.25, %v1582_v29  ;;  %v4817_v16 = vsel %vm762_vm7, 1.0, %v7363_v41  ;;  %v1311_v57 = vmul.f32 %v4003_v34, %v3991_v22  ;;  %v4823_v27 = vadd.f32 -1.0, %v4716_v12  ;;  %v7455_v22 = vld [vmem:[#allocation30_spill] sm:$0xff]  ;;  %v4858_v8 = vld [vmem:[#allocation3 + $0x20] sm:$0xff] }
 0x14c   :  { %2924 = vmatpush1.bf16.msra.mxu0 %v2377_v31  ;;  %3342 = vmatprep.subr.bf16.mxu1 %v2454_v53  ;;  %v1627_v4 = vsub.f32 %v1603_v52, %v1615_v49  ;;  %v1630_v58 = vsub.f32 %v1606_v35, %v1618_v61  ;;  %v1987_v2 = vmul.f32 %v4625_v15, %v1591_v23  ;;  %v4829_v47 = vadd.f32 -1.0, %v4728_v9  ;;  %v7459_v52 = vld [vmem:[#allocation28_spill] sm:$0xff]  ;;  %v7464_v53 = vld [vmem:[#allocation18_spill] sm:$0xff]  ;;  %v7466_v61 = vld [vmem:[#allocation19_spill] sm:$0xff] }
 0x14d   :  { %7450 = vst [vmem:[#allocation108_spill] sm:$0xff] %v4823_v27  ;;  %2925 = vmatprep.subr.bf16.mxu0 %v2381_v56  ;;  %v1990_v3 = vmul.f32 %v4628_v63, %v1594_v25  ;;  %v1314_v19 = vmul.f32 %v7452_v40, %v7451_v38  ;;  %v1791_v0 = vmul.f32 %v7455_v22, %v7454_v37  ;;  %v7458_v56 = vld [vmem:[#allocation42_spill] sm:$0xff]  ;;  %vm590_vm8 = vcmp.ge.f32.partialorder %v4851_v6, -0.6  ;;  %v7465_v29 = vld [vmem:[#allocation16_spill] sm:$0xff]  ;;  %v7467_v25 = vld [vmem:[#allocation17_spill] sm:$0xff] }
 0x14e   :  { %7453 = vst [vmem:[#allocation32_spill] sm:$0xff] %v4829_v47  ;;  %v4833_v31 = vmul.f32 1.25, %v1627_v4  ;;  %v4835_v18 = vmul.f32 1.25, %v1630_v58  ;;  %v1335_v15 = vmul.f32 %v4823_v27, %v4814_v26  ;;  %v1794_v51 = vmul.f32 %v7457_v43, %v7456_v28  ;;  %7463 = vst [vmem:[#allocation30_spill] sm:$0xff] %v4858_v8 }
 0x14f   :  { %3343 = vmatpush3.bf16.msra.mxu1 %v390_v54  ;;  %v1338_v63 = vmul.f32 %v4829_v47, %v4817_v16  ;;  %v4845_v17 = vmul.f32 %v7459_v52, %v7458_v56  ;;  %v4849_v20 = vmul.f32 %v7461_v14, %v7460_v44  ;;  %vm593_vm9 = vcmp.ge.f32.partialorder %v4858_v8, -0.6  ;;  %v7472_v44 = vld [vmem:[#allocation22_spill] sm:$0xff] }
 0x150   :  { %v1999_v5 = vmul.f32 %v4679_v1, %v4833_v31  ;;  %v2002_v48 = vmul.f32 %v4682_v50, %v4835_v18  ;;  %v1347_v33 = vsub.f32 %v1311_v57, %v1335_v15  ;;  %vm602_vm10 = vcmp.lt.f32.partialorder %v4851_v6, -0.2  ;;  %v7476_v1 = vld [vmem:[#allocation25_spill] sm:$0xff] }
 0x151   :  { %v1350_v59 = vsub.f32 %v1314_v19, %v1338_v63  ;;  %vm605_vm11 = vcmp.lt.f32.partialorder %v4858_v8, -0.2  ;;  %v1130_v35 = vmul.f32 %v7465_v29, %v7464_v53  ;;  %vm614_vm12 = vmand %vm590_vm8, %vm602_vm10  ;;  %v1133_v57 = vmul.f32 %v7467_v25, %v7466_v61  ;;  %v7477_v25 = vld [vmem:[#allocation14_spill] sm:$0xff] }
 0x152   :  { %v2011_v54 = vsub.f32 %v1987_v2, %v1999_v5  ;;  %v2014_v23 = vsub.f32 %v1990_v3, %v2002_v48  ;;  %v4865_v49 = vmul.f32 2.5, %v1347_v33  ;;  %vm617_vm13 = vmand %vm593_vm9, %vm605_vm11  ;;  %v4872_v58 = vsel %vm614_vm12, 1.0, %v7363_v41  ;;  %v7473_v5 = vld [vmem:[#allocation12_spill] sm:$0xff] }
 0x153   :  { %v4869_v4 = vmul.f32 2.5, %v1350_v59  ;;  %7468 = vst [vmem:[#allocation40_spill] sm:$0xff] %v4872_v58  ;;  %v4875_v38 = vadd.f32 0.2, %v4851_v6  ;;  %v4878_v19 = vadd.f32 0.2, %v4858_v8  ;;  %v1646_v48 = vmul.f32 %v7473_v5, %v7472_v44 }
 0x154   :  { %v2023_v2 = vmul.f32 0.8333333, %v2011_v54  ;;  %v2026_v3 = vmul.f32 0.8333333, %v2014_v23  ;;  %v1803_v37 = vmul.f32 %v4823_v27, %v4865_v49  ;;  %v4883_v15 = vsel %vm617_vm13, 1.0, %v7363_v41  ;;  %v7474_v54 = vld [vmem:[#allocation23_spill] sm:$0xff] }
 0x155   :  { %7469 = vst [vmem:[#allocation42_spill] sm:$0xff] %v4875_v38  ;;  %7470 = vst [vmem:[#allocation28_spill] sm:$0xff] %v4878_v19  ;;  %v1806_v28 = vmul.f32 %v4829_v47, %v4869_v4  ;;  %v1154_v63 = vmul.f32 %v4875_v38, %v4872_v58  ;;  %v1157_v56 = vmul.f32 %v4878_v19, %v4883_v15  ;;  %v7475_v23 = vld [vmem:[#allocation13_spill] sm:$0xff]  ;;  %v7479_v6 = vld [vmem:[#allocation15_spill] sm:$0xff]  ;;  %vm399_vm14 = vcmp.ge.f32.partialorder %v4716_v12, -2.2 }
 0x156   :  { %7471 = vst [vmem:[#allocation44_spill] sm:$0xff] %v4883_v15  ;;  %v2371_v33 = vmul.f32 %v2023_v2, %v4706_v62  ;;  %v2374_v59 = vmul.f32 %v2026_v3, %v4706_v62  ;;  %v1815_v53 = vsub.f32 %v1791_v0, %v1803_v37  ;;  %v1649_v61 = vmul.f32 %v7475_v23, %v7474_v54  ;;  %v7478_v15 = vld [vmem:[#allocation27_spill] sm:$0xff] }
 0x157   :  { %v1818_v39 = vsub.f32 %v1794_v51, %v1806_v28  ;;  %v1166_v45 = vsub.f32 %v1130_v35, %v1154_v63  ;;  %v1169_v50 = vsub.f32 %v1133_v57, %v1157_v56  ;;  %v2030_v29 = vmul.f32 %v7477_v25, %v7476_v1 }
 0x158   :  { %v2380_v58 = vpack.c.bf16 %v2374_v59, %v2371_v33  ;;  %v4899_v8 = vmul.f32 1.25, %v1815_v53  ;;  %v2033_v44 = vmul.f32 %v7479_v6, %v7478_v15  ;;  %vm402_vm15 = vcmp.ge.f32.partialorder %v4728_v9, -2.2 }
 0x159   :  { %v4904_v2 = vmul.f32 1.25, %v1818_v39  ;;  %v4906_v0 = vmul.f32 2.5, %v1166_v45  ;;  %v4908_v3 = vmul.f32 2.5, %v1169_v50  ;;  %vm411_vm0 = vcmp.lt.f32.partialorder %v4716_v12, -1.8 }
 0x15a   :  { %2926 = vmatpush1.bf16.msra.mxu0 %v2380_v58  ;;  %v2187_v1 = vmul.f32 %v4823_v27, %v4899_v8  ;;  %vm414_vm1 = vcmp.lt.f32.partialorder %v4728_v9, -1.8  ;;  %vm447_vm2 = vcmp.ge.f32.partialorder %v4716_v12, -1.8  ;;  %vm423_vm3 = vmand %vm399_vm14, %vm411_vm0  ;;  %vm450_vm4 = vcmp.ge.f32.partialorder %v4728_v9, -1.8 }
 0x15b   :  { %7480 = vst [vmem:[#allocation29_spill] sm:$0xff] %v4906_v0  ;;  %7481 = vst [vmem:[#allocation18_spill] sm:$0xff] %v4908_v3  ;;  %v2190_v39 = vmul.f32 %v4829_v47, %v4904_v2  ;;  %v1658_v45 = vmul.f32 %v4875_v38, %v4906_v0  ;;  %v1661_v50 = vmul.f32 %v4878_v19, %v4908_v3  ;;  %v435_v6 = vsel %vm423_vm3, 1.0, %v7363_v41 }
 0x15c   :  { %v2199_v51 = vsub.f32 %v4845_v17, %v2187_v1  ;;  %vm426_vm5 = vmand %vm402_vm15, %vm414_vm1  ;;  %vm459_vm6 = vcmp.lt.f32.partialorder %v4716_v12, -1.4  ;;  %vm462_vm7 = vcmp.lt.f32.partialorder %v4728_v9, -1.4  ;;  %vm495_vm10 = vcmp.ge.f32.partialorder %v4716_v12, -1.4 }
 0x15d   :  { %v2202_v35 = vsub.f32 %v4849_v20, %v2190_v39  ;;  %v1670_v25 = vsub.f32 %v1646_v48, %v1658_v45  ;;  %v1673_v57 = vsub.f32 %v1649_v61, %v1661_v50  ;;  %v438_v58 = vsel %vm426_vm5, 1.0, %v7363_v41  ;;  %vm471_vm8 = vmand %vm447_vm2, %vm459_vm6  ;;  %v7485_v45 = vld [vmem:[#allocation24_spill] sm:$0xff] }
 0x15e   :  { %v2211_v37 = vmul.f32 0.8333333, %v2199_v51  ;;  %vm474_vm9 = vmand %vm450_vm4, %vm462_vm7  ;;  %v483_v17 = vsel %vm471_vm8, 1.0, %v7363_v41  ;;  %vm507_vm11 = vcmp.lt.f32.partialorder %v4716_v12, -1.0  ;;  %vm498_vm13 = vcmp.ge.f32.partialorder %v4728_v9, -1.4 }
 0x15f   :  { %v2214_v15 = vmul.f32 0.8333333, %v2202_v35  ;;  %v4934_v28 = vmul.f32 1.25, %v1670_v25  ;;  %v4936_v63 = vmul.f32 1.25, %v1673_v57  ;;  %v486_v20 = vsel %vm474_vm9, 1.0, %v7363_v41  ;;  %vm519_vm12 = vmand %vm495_vm10, %vm507_vm11 }
 0x160   :  { %v2463_v56 = vmul.f32 %v2211_v37, %v4763_v32  ;;  %vm510_vm14 = vcmp.lt.f32.partialorder %v4728_v9, -1.0  ;;  %v531_v48 = vsel %vm519_vm12, 1.0, %v7363_v41  ;;  %v4949_v54 = vadd.f32 2.2, %v4716_v12 }
 0x161   :  { %7482 = vst [vmem:[#allocation19_spill] sm:$0xff] %v4934_v28  ;;  %7483 = vst [vmem:[#allocation22_spill] sm:$0xff] %v4936_v63  ;;  %v2466_v33 = vmul.f32 %v2214_v15, %v4763_v32  ;;  %v2042_v59 = vmul.f32 %v4875_v38, %v4934_v28  ;;  %v2045_v53 = vmul.f32 %v4878_v19, %v4936_v63  ;;  %v4953_v1 = vadd.f32 2.2, %v4728_v9  ;;  %v7490_v28 = vld [vmem:[#allocation45_spill] sm:$0xff] }
 0x162   :  { %vm522_vm15 = vmand %vm498_vm13, %vm510_vm14  ;;  %v4956_v39 = vadd.f32 1.4, %v4716_v12  ;;  %v1035_v50 = vmul.f32 %v7485_v45, %v531_v48  ;;  %v939_v57 = vmul.f32 %v4949_v54, %v435_v6  ;;  %v4962_v15 = vadd.f32 1.4, %v4728_v9 }
 0x163   :  { %v534_v61 = vsel %vm522_vm15, 1.0, %v7363_v41  ;;  %v2475_v51 = vpack.c.bf16 %v2466_v33, %v2463_v56  ;;  %v2054_v35 = vsub.f32 %v2030_v29, %v2042_v59  ;;  %v2057_v25 = vsub.f32 %v2033_v44, %v2045_v53  ;;  %v7489_v29 = vld [vmem:[#allocation26_spill] sm:$0xff] }
 0x164   :  { %7484 = vst [vmem:[#allocation23_spill] sm:$0xff] %v4956_v39  ;;  %v942_v37 = vmul.f32 %v4953_v1, %v438_v58  ;;  %7486 = vst [vmem:[#allocation25_spill] sm:$0xff] %v4962_v15  ;;  %v963_v19 = vmul.f32 %v4956_v39, %v483_v17  ;;  %v4966_v38 = vadd.f32 1.8, %v4716_v12  ;;  %v4969_v23 = vadd.f32 1.8, %v4728_v9 }
 0x165   :  { %3344 = vmatprep.subr.bf16.mxu1 %v2475_v51  ;;  %v2066_v47 = vmul.f32 0.8333333, %v2054_v35  ;;  %v2069_v27 = vmul.f32 0.8333333, %v2057_v25  ;;  %v1038_v44 = vmul.f32 %v7489_v29, %v534_v61  ;;  %v966_v6 = vmul.f32 %v4962_v15, %v486_v20 }
 0x166   :  { %7487 = vst [vmem:[#allocation14_spill] sm:$0xff] %v4966_v38  ;;  %7488 = vst [vmem:[#allocation27_spill] sm:$0xff] %v4969_v23  ;;  %v975_v56 = vsub.f32 %v939_v57, %v963_v19  ;;  %v1011_v58 = vmul.f32 %v4966_v38, %v483_v17  ;;  %v1071_v33 = vmul.f32 %v4956_v39, %v531_v48  ;;  %v7491_v19 = vld [vmem:[#allocation58_spill] sm:$0xff]  ;;  %v4981_v17 = vld [vmem:[#allocation3] sm:$0xff]  ;;  %vm741_vm6 = vcmp.ge.f32.partialorder %v4512_v55, 0.6 }
 0x167   :  { %v2390_v59 = vmul.f32 %v2066_v47, %v4720_v10  ;;  %v2393_v53 = vmul.f32 %v2069_v27, %v4720_v10  ;;  %v1014_v51 = vmul.f32 %v4969_v23, %v486_v20  ;;  %v1074_v35 = vmul.f32 %v4962_v15, %v534_v61  ;;  %7492 = vst [vmem:[#allocation15_spill] sm:$0xff] %v4981_v17  ;;  %v7530_v15 = vld [vmem:[#allocation64_spill] sm:$0xff] }
 0x168   :  { %v978_v25 = vsub.f32 %v942_v37, %v966_v6  ;;  %v987_v63 = vmul.f32 2.5, %v975_v56  ;;  %v1047_v5 = vsub.f32 %v1011_v58, %v1035_v50  ;;  %v1107_v3 = vsub.f32 %v1071_v33, %v7490_v28  ;;  %v4989_v50 = vld [vmem:[#allocation3 + $0x18] sm:$0xff]  ;;  %v7496_v58 = vld [vmem:[#allocation46_spill] sm:$0xff]  ;;  %v7497_v33 = vld [vmem:[#allocation52_spill] sm:$0xff] }
 0x169   :  { %v2402_v0 = vpack.c.bf16 %v2393_v53, %v2390_v59  ;;  %v1050_v43 = vsub.f32 %v1014_v51, %v1038_v44  ;;  %v1110_v57 = vsub.f32 %v1074_v35, %v7491_v19  ;;  %vm589_vm0 = vcmp.ge.f32.partialorder %v4981_v17, -0.6  ;;  %7494 = vst [vmem:[#allocation26_spill] sm:$0xff] %v4989_v50  ;;  %v7499_v35 = vld [vmem:[#allocation47_spill] sm:$0xff] }
 0x16a   :  { %v990_v47 = vmul.f32 2.5, %v978_v25  ;;  %v1059_v48 = vmul.f32 2.5, %v1047_v5  ;;  %v4984_v27 = vmul.f32 2.5, %v1107_v3  ;;  %v1551_v20 = vmul.f32 %v4949_v54, %v987_v63  ;;  %v7500_v25 = vld [vmem:[#allocation53_spill] sm:$0xff] }
 0x16b   :  { %2927 = vmatprep.subr.bf16.mxu0 %v2402_v0  ;;  %v1062_v61 = vmul.f32 2.5, %v1050_v43  ;;  %v4987_v37 = vmul.f32 2.5, %v1110_v57  ;;  %vm592_vm1 = vcmp.ge.f32.partialorder %v4989_v50, -0.6  ;;  %vm601_vm2 = vcmp.lt.f32.partialorder %v4981_v17, -0.2 }
 0x16c   :  { %v1554_v28 = vmul.f32 %v4953_v1, %v990_v47  ;;  %v1563_v44 = vmul.f32 %v7485_v45, %v1059_v48  ;;  %v1599_v5 = vmul.f32 %v4966_v38, %v1059_v48  ;;  %v1611_v3 = vmul.f32 %v7459_v52, %v4984_v27  ;;  %vm613_vm3 = vmand %vm589_vm0, %vm601_vm2 }
 0x16d   :  { %7493 = vst [vmem:[#allocation24_spill] sm:$0xff] %v4987_v37  ;;  %v1566_v43 = vmul.f32 %v7489_v29, %v1062_v61  ;;  %v1602_v0 = vmul.f32 %v4969_v23, %v1062_v61  ;;  %v1614_v63 = vmul.f32 %v7461_v14, %v4987_v37  ;;  %vm604_vm4 = vcmp.lt.f32.partialorder %v4989_v50, -0.2 }
 0x16e   :  { %v1575_v6 = vsub.f32 %v1551_v20, %v1563_v44  ;;  %v1623_v56 = vsub.f32 %v1599_v5, %v1611_v3  ;;  %vm616_vm5 = vmand %vm592_vm1, %vm604_vm4  ;;  %v5006_v45 = vsel %vm613_vm3, 1.0, %v7363_v41  ;;  %v1129_v59 = vmul.f32 %v7497_v33, %v7496_v58  ;;  %v7506_v5 = vld [vmem:[#allocation48_spill] sm:$0xff] }
 0x16f   :  { %7495 = vst [vmem:[#allocation45_spill] sm:$0xff] %v5006_v45  ;;  %v1578_v53 = vsub.f32 %v1554_v28, %v1566_v43  ;;  %v1626_v51 = vsub.f32 %v1602_v0, %v1614_v63  ;;  %v5011_v29 = vsel %vm616_vm5, 1.0, %v7363_v41  ;;  %v1132_v19 = vmul.f32 %v7500_v25, %v7499_v35  ;;  %v7505_v28 = vld [vmem:[#allocation56_spill] sm:$0xff]  ;;  %v7507_v43 = vld [vmem:[#allocation57_spill] sm:$0xff] }
 0x170   :  { %7498 = vst [vmem:[#allocation58_spill] sm:$0xff] %v5011_v29  ;;  %v1587_v57 = vmul.f32 1.25, %v1575_v6  ;;  %v5015_v47 = vmul.f32 1.25, %v1623_v56  ;;  %v5018_v48 = vadd.f32 0.2, %v4981_v17  ;;  %v1645_v3 = vmul.f32 %v7506_v5, %v7505_v28  ;;  %v7508_v0 = vld [vmem:[#allocation49_spill] sm:$0xff] }
 0x171   :  { %v5021_v20 = vadd.f32 0.2, %v4989_v50  ;;  %v1590_v61 = vmul.f32 1.25, %v1578_v53  ;;  %v5023_v44 = vmul.f32 1.25, %v1626_v51  ;;  %v1648_v63 = vmul.f32 %v7508_v0, %v7507_v43  ;;  %v7509_v28 = vld [vmem:[#allocation59_spill] sm:$0xff]  ;;  %v7510_v5 = vld [vmem:[#allocation50_spill] sm:$0xff] }
 0x172   :  { %7501 = vst [vmem:[#allocation46_spill] sm:$0xff] %v5015_v47  ;;  %7502 = vst [vmem:[#allocation47_spill] sm:$0xff] %v5018_v48  ;;  %v1983_v58 = vmul.f32 %v4949_v54, %v1587_v57  ;;  %v1995_v6 = vmul.f32 %v7459_v52, %v5015_v47  ;;  %v1153_v56 = vmul.f32 %v5018_v48, %v5006_v45  ;;  %v7511_v43 = vld [vmem:[#allocation60_spill] sm:$0xff]  ;;  %v7512_v54 = vld [vmem:[#allocation51_spill] sm:$0xff]  ;;  %vm744_vm7 = vcmp.ge.f32.partialorder %v4518_v42, 0.6 }
 0x173   :  { %7503 = vst [vmem:[#allocation109_spill] sm:$0xff] %v5021_v20  ;;  %7504 = vst [vmem:[#allocation110_spill] sm:$0xff] %v5023_v44  ;;  %v1156_v35 = vmul.f32 %v5021_v20, %v5011_v29  ;;  %v1986_v53 = vmul.f32 %v4953_v1, %v1590_v61  ;;  %v1998_v51 = vmul.f32 %v7461_v14, %v5023_v44  ;;  %vm753_vm8 = vcmp.lt.f32.partialorder %v4512_v55, 1.0  ;;  %v7526_v29 = vld [vmem:[#allocation68_spill] sm:$0xff]  ;;  %v7528_v17 = vld [vmem:[#allocation63_spill] sm:$0xff] }
 0x174   :  { %v5041_v25 = vmul.f32 %v7510_v5, %v7509_v28  ;;  %v5045_v57 = vmul.f32 %v7512_v54, %v7511_v43  ;;  %v2007_v52 = vsub.f32 %v1983_v58, %v1995_v6  ;;  %v1165_v0 = vsub.f32 %v1129_v59, %v1153_v56  ;;  %vm765_vm10 = vmand %vm741_vm6, %vm753_vm8  ;;  %v7515_v5 = vld [vmem:[#allocation66_spill] sm:$0xff]  ;;  %v7516_v28 = vld [vmem:[#allocation69_spill] sm:$0xff] }
 0x175   :  { %v1168_v33 = vsub.f32 %v1132_v19, %v1156_v35  ;;  %v2010_v45 = vsub.f32 %v1986_v53, %v1998_v51  ;;  %vm756_vm9 = vcmp.lt.f32.partialorder %v4518_v42, 1.0  ;;  %v1317_v58 = vmul.f32 %v7516_v28, %v7515_v5  ;;  %v7518_v6 = vld [vmem:[#allocation67_spill] sm:$0xff]  ;;  %v7519_v56 = vld [vmem:[#allocation70_spill] sm:$0xff]  ;;  %v7529_v47 = vld [vmem:[#allocation81_spill] sm:$0xff] }
 0x176   :  { %v2019_v14 = vmul.f32 0.8333333, %v2007_v52  ;;  %v5051_v1 = vmul.f32 2.5, %v1165_v0  ;;  %vm768_vm11 = vmand %vm744_vm7, %vm756_vm9  ;;  %v5058_v19 = vsel %vm765_vm10, 1.0, %v7363_v41  ;;  %v1320_v35 = vmul.f32 %v7519_v56, %v7518_v6  ;;  %v7523_v5 = vld [vmem:[#allocation75_spill] sm:$0xff]  ;;  %v7524_v6 = vld [vmem:[#allocation65_spill] sm:$0xff] }
 0x177   :  { %v5053_v61 = vmul.f32 2.5, %v1168_v33  ;;  %v2022_v59 = vmul.f32 0.8333333, %v2010_v45  ;;  %7517 = vst [vmem:[#allocation59_spill] sm:$0xff] %v5058_v19  ;;  %v5063_v53 = vadd.f32 -1.0, %v4512_v55  ;;  %v5071_v45 = vsel %vm768_vm11, 1.0, %v7363_v41 }
 0x178   :  { %7513 = vst [vmem:[#allocation56_spill] sm:$0xff] %v5051_v1  ;;  %v2367_v0 = vmul.f32 %v2019_v14, %v4763_v32  ;;  %v1657_v33 = vmul.f32 %v5018_v48, %v5051_v1  ;;  %7521 = vst [vmem:[#allocation60_spill] sm:$0xff] %v5071_v45  ;;  %v5075_v54 = vadd.f32 -1.0, %v4518_v42  ;;  %v1797_v14 = vmul.f32 %v7524_v6, %v7523_v5  ;;  %v7525_v1 = vld [vmem:[#allocation76_spill] sm:$0xff] }
 0x179   :  { %7514 = vst [vmem:[#allocation57_spill] sm:$0xff] %v5053_v61  ;;  %7520 = vst [vmem:[#allocation50_spill] sm:$0xff] %v5063_v53  ;;  %v1660_v51 = vmul.f32 %v5021_v20, %v5053_v61  ;;  %v2370_v43 = vmul.f32 %v2022_v59, %v4763_v32  ;;  %v1341_v52 = vmul.f32 %v5063_v53, %v5058_v19  ;;  %v7527_v61 = vld [vmem:[#allocation80_spill] sm:$0xff]  ;;  %vm405_vm2 = vcmp.ge.f32.partialorder %v4512_v55, -2.2 }
 0x17a   :  { %7522 = vst [vmem:[#allocation51_spill] sm:$0xff] %v5075_v54  ;;  %v1669_v56 = vsub.f32 %v1645_v3, %v1657_v33  ;;  %v1800_v50 = vmul.f32 %v7526_v29, %v7525_v1  ;;  %v5085_v23 = vmul.f32 %v7528_v17, %v7527_v61  ;;  %v1344_v59 = vmul.f32 %v5075_v54, %v5071_v45  ;;  %v7534_v1 = vld [vmem:[#allocation83_spill] sm:$0xff] }
 0x17b   :  { %v1672_v28 = vsub.f32 %v1648_v63, %v1660_v51  ;;  %v2379_v44 = vpack.c.bf16 %v2370_v43, %v2367_v0  ;;  %v1353_v38 = vsub.f32 %v1317_v58, %v1341_v52  ;;  %v5091_v19 = vmul.f32 %v7530_v15, %v7529_v47  ;;  %v7533_v63 = vld [vmem:[#allocation82_spill] sm:$0xff]  ;;  %v7538_v51 = vld [vmem:[#allocation91_spill] sm:$0xff] }
 0x17c   :  { %v5093_v37 = vmul.f32 1.25, %v1669_v56  ;;  %vm596_vm12 = vcmp.ge.f32.partialorder %v7533_v63, -0.6  ;;  %vm599_vm13 = vcmp.ge.f32.partialorder %v7534_v1, -0.6  ;;  %v1356_v61 = vsub.f32 %v1320_v35, %v1344_v59  ;;  %v7537_v56 = vld [vmem:[#allocation89_spill] sm:$0xff] }
 0x17d   :  { %v5095_v3 = vmul.f32 1.25, %v1672_v28  ;;  %3345 = vmatpush3.bf16.msra.mxu1 %v2379_v44  ;;  %v5099_v33 = vmul.f32 2.5, %v1353_v38  ;;  %vm608_vm14 = vcmp.lt.f32.partialorder %v7533_v63, -0.2  ;;  %vm611_vm15 = vcmp.lt.f32.partialorder %v7534_v1, -0.2 }
 0x17e   :  { %7531 = vst [vmem:[#allocation66_spill] sm:$0xff] %v5093_v37  ;;  %v2041_v47 = vmul.f32 %v5018_v48, %v5093_v37  ;;  %vm620_vm0 = vmand %vm596_vm12, %vm608_vm14  ;;  %v7536_v28 = vld [vmem:[#allocation85_spill] sm:$0xff]  ;;  %v7539_v43 = vld [vmem:[#allocation90_spill] sm:$0xff]  ;;  %v5111_v35 = vmul.f32 2.5, %v1356_v61  ;;  %v5119_v5 = vadd.f32 0.2, %v7533_v63 }
 0x17f   :  { %7532 = vst [vmem:[#allocation67_spill] sm:$0xff] %v5095_v3  ;;  %7535 = vst [vmem:[#allocation75_spill] sm:$0xff] %v5099_v33  ;;  %v2044_v58 = vmul.f32 %v5021_v20, %v5095_v3  ;;  %v1136_v0 = vmul.f32 %v7537_v56, %v7536_v28  ;;  %v1139_v44 = vmul.f32 %v7539_v43, %v7538_v51  ;;  %v5116_v52 = vsel %vm620_vm0, 1.0, %v7363_v41  ;;  %v7545_v56 = vld [vmem:[#allocation94_spill] sm:$0xff]  ;;  %v7546_v63 = vld [vmem:[#allocation84_spill] sm:$0xff] }
 0x180   :  { %7540 = vst [vmem:[#allocation76_spill] sm:$0xff] %v5111_v35  ;;  %v1809_v38 = vmul.f32 %v5063_v53, %v5099_v33  ;;  %vm623_vm1 = vmand %vm599_vm13, %vm611_vm15  ;;  %v2053_v59 = vsub.f32 %v5041_v25, %v2041_v47  ;;  %v5127_v61 = vadd.f32 0.2, %v7534_v1  ;;  %v1812_v51 = vmul.f32 %v5075_v54, %v5111_v35  ;;  %v7547_v47 = vld [vmem:[#allocation96_spill] sm:$0xff]  ;;  %v7550_v35 = vld [vmem:[#allocation97_spill] sm:$0xff] }
 0x181   :  { %7541 = vst [vmem:[#allocation80_spill] sm:$0xff] %v5116_v52  ;;  %7542 = vst [vmem:[#allocation63_spill] sm:$0xff] %v5119_v5  ;;  %v2056_v20 = vsub.f32 %v5045_v57, %v2044_v58  ;;  %v5124_v28 = vsel %vm623_vm1, 1.0, %v7363_v41  ;;  %v1160_v43 = vmul.f32 %v5119_v5, %v5116_v52  ;;  %v1652_v29 = vmul.f32 %v7546_v63, %v7545_v56  ;;  %v7548_v58 = vld [vmem:[#allocation86_spill] sm:$0xff]  ;;  %v7553_v63 = vld [vmem:[#allocation88_spill] sm:$0xff] }
 0x182   :  { %7543 = vst [vmem:[#allocation81_spill] sm:$0xff] %v5124_v28  ;;  %7544 = vst [vmem:[#allocation64_spill] sm:$0xff] %v5127_v61  ;;  %v1821_v48 = vsub.f32 %v1797_v14, %v1809_v38  ;;  %v2065_v6 = vmul.f32 0.8333333, %v2053_v59  ;;  %v1163_v57 = vmul.f32 %v5127_v61, %v5124_v28  ;;  %v1655_v33 = vmul.f32 %v7548_v58, %v7547_v47  ;;  %v7551_v14 = vld [vmem:[#allocation87_spill] sm:$0xff] }
 0x183   :  { %v2068_v25 = vmul.f32 0.8333333, %v2056_v20  ;;  %v1824_v1 = vsub.f32 %v1800_v50, %v1812_v51  ;;  %v1172_v3 = vsub.f32 %v1136_v0, %v1160_v43  ;;  %v5143_v38 = vmul.f32 %v7551_v14, %v7550_v35  ;;  %v7552_v20 = vld [vmem:[#allocation98_spill] sm:$0xff] }
 0x184   :  { %v5139_v45 = vmul.f32 1.25, %v1821_v48  ;;  %v2389_v52 = vmul.f32 %v2065_v6, %v4706_v62  ;;  %v1175_v59 = vsub.f32 %v1139_v44, %v1163_v57  ;;  %v5149_v37 = vmul.f32 %v7553_v63, %v7552_v20 }
 0x185   :  { %v2392_v56 = vmul.f32 %v2068_v25, %v4706_v62  ;;  %v5151_v28 = vmul.f32 1.25, %v1824_v1  ;;  %v5155_v48 = vmul.f32 2.5, %v1172_v3  ;;  %vm408_vm3 = vcmp.ge.f32.partialorder %v4518_v42, -2.2 }
 0x186   :  { %7549 = vst [vmem:[#allocation82_spill] sm:$0xff] %v5139_v45  ;;  %v2193_v50 = vmul.f32 %v5063_v53, %v5139_v45  ;;  %v5158_v43 = vmul.f32 2.5, %v1175_v59  ;;  %vm417_vm4 = vcmp.lt.f32.partialorder %v4512_v55, -1.8  ;;  %vm420_vm5 = vcmp.lt.f32.partialorder %v4518_v42, -1.8 }
 0x187   :  { %7554 = vst [vmem:[#allocation83_spill] sm:$0xff] %v5151_v28  ;;  %7555 = vst [vmem:[#allocation85_spill] sm:$0xff] %v5155_v48  ;;  %v2401_v0 = vpack.c.bf16 %v2392_v56, %v2389_v52  ;;  %v2196_v6 = vmul.f32 %v5075_v54, %v5151_v28  ;;  %v1664_v35 = vmul.f32 %v5119_v5, %v5155_v48  ;;  %vm453_vm8 = vcmp.ge.f32.partialorder %v4512_v55, -1.8  ;;  %v7564_v45 = vld [vmem:[#allocation77_spill] sm:$0xff] }
 0x188   :  { %7556 = vst [vmem:[#allocation91_spill] sm:$0xff] %v5158_v43  ;;  %v2205_v44 = vsub.f32 %v5085_v23, %v2193_v50  ;;  %vm429_vm6 = vmand %vm405_vm2, %vm417_vm4  ;;  %v1667_v3 = vmul.f32 %v5127_v61, %v5158_v43  ;;  %vm456_vm9 = vcmp.ge.f32.partialorder %v4518_v42, -1.8  ;;  %vm465_vm10 = vcmp.lt.f32.partialorder %v4512_v55, -1.4 }
 0x189   :  { %2928 = vmatpush1.bf16.msra.mxu0 %v2401_v0  ;;  %vm432_vm7 = vmand %vm408_vm3, %vm420_vm5  ;;  %v441_v52 = vsel %vm429_vm6, 1.0, %v7363_v41  ;;  %v2208_v51 = vsub.f32 %v5091_v19, %v2196_v6  ;;  %v1676_v63 = vsub.f32 %v1652_v29, %v1664_v35  ;;  %vm468_vm11 = vcmp.lt.f32.partialorder %v4518_v42, -1.4 }
 0x18a   :  { %v2217_v23 = vmul.f32 0.8333333, %v2205_v44  ;;  %v444_v25 = vsel %vm432_vm7, 1.0, %v7363_v41  ;;  %v1679_v57 = vsub.f32 %v1655_v33, %v1667_v3  ;;  %vm501_vm12 = vcmp.ge.f32.partialorder %v4512_v55, -1.4  ;;  %vm477_vm13 = vmand %vm453_vm8, %vm465_vm10  ;;  %v5202_v44 = vld [vmem:[#allocation3 + $0x40] sm:$0xff] }
 0x18b   :  { %v2220_v47 = vmul.f32 0.8333333, %v2208_v51  ;;  %v5179_v14 = vmul.f32 1.25, %v1676_v63  ;;  %vm504_vm14 = vcmp.ge.f32.partialorder %v4518_v42, -1.4  ;;  %vm480_vm15 = vmand %vm456_vm9, %vm468_vm11  ;;  %v489_v29 = vsel %vm477_vm13, 1.0, %v7363_v41 }
 0x18c   :  { %v2469_v1 = vmul.f32 %v2217_v23, %v4763_v32  ;;  %v5182_v19 = vmul.f32 1.25, %v1679_v57  ;;  %vm513_vm0 = vcmp.lt.f32.partialorder %v4512_v55, -1.0  ;;  %vm516_vm1 = vcmp.lt.f32.partialorder %v4518_v42, -1.0  ;;  %7559 = vst [vmem:[#allocation97_spill] sm:$0xff] %v5202_v44 }
 0x18d   :  { %7557 = vst [vmem:[#allocation94_spill] sm:$0xff] %v5179_v14  ;;  %v2472_v33 = vmul.f32 %v2220_v47, %v4763_v32  ;;  %v2048_v56 = vmul.f32 %v5119_v5, %v5179_v14  ;;  %v492_v59 = vsel %vm480_vm15, 1.0, %v7363_v41  ;;  %vm525_vm2 = vmand %vm501_vm12, %vm513_vm0  ;;  %v5194_v20 = vadd.f32 2.2, %v4512_v55  ;;  %v5212_v47 = vld [vmem:[#allocation3 + $0x58] sm:$0xff] }
 0x18e   :  { %7558 = vst [vmem:[#allocation96_spill] sm:$0xff] %v5182_v19  ;;  %v2051_v50 = vmul.f32 %v5127_v61, %v5182_v19  ;;  %vm528_vm3 = vmand %vm504_vm14, %vm516_vm1  ;;  %v537_v0 = vsel %vm525_vm2, 1.0, %v7363_v41  ;;  %v5200_v6 = vadd.f32 2.2, %v4518_v42  ;;  %v5205_v35 = vadd.f32 1.4, %v5202_v44 }
 0x18f   :  { %v2478_v3 = vpack.c.bf16 %v2472_v33, %v2469_v1  ;;  %v2060_v51 = vsub.f32 %v5143_v38, %v2048_v56  ;;  %v540_v55 = vsel %vm528_vm3, 1.0, %v7363_v41  ;;  %v945_v23 = vmul.f32 %v5194_v20, %v441_v52  ;;  %7561 = vst [vmem:[#allocation98_spill] sm:$0xff] %v5212_v47  ;;  %v7562_v52 = vld [vmem:[#allocation61_spill] sm:$0xff] }
 0x190   :  { %7560 = vst [vmem:[#allocation87_spill] sm:$0xff] %v5205_v35  ;;  %v2063_v63 = vsub.f32 %v5149_v37, %v2051_v50  ;;  %v948_v57 = vmul.f32 %v5200_v6, %v444_v25  ;;  %v5215_v42 = vadd.f32 1.4, %v5212_v47  ;;  %v969_v61 = vmul.f32 %v5205_v35, %v489_v29  ;;  %v7563_v50 = vld [vmem:[#allocation62_spill] sm:$0xff] }
 0x191   :  { %3346 = vmatprep.subr.bf16.mxu1 %v2478_v3  ;;  %v2072_v5 = vmul.f32 0.8333333, %v2060_v51  ;;  %v5219_v1 = vadd.f32 1.8, %v5202_v44  ;;  %v5222_v38 = vadd.f32 1.8, %v5212_v47  ;;  %v1041_v33 = vmul.f32 %v7562_v52, %v537_v0 }
 0x192   :  { %v2075_v37 = vmul.f32 0.8333333, %v2063_v63  ;;  %v972_v25 = vmul.f32 %v5215_v42, %v492_v59  ;;  %v981_v56 = vsub.f32 %v945_v23, %v969_v61  ;;  %v1044_v54 = vmul.f32 %v7563_v50, %v540_v55  ;;  %v5234_v23 = vld [vmem:[#allocation3 + $0x30] sm:$0xff]  ;;  %v7565_v47 = vld [vmem:[#allocation95_spill] sm:$0xff] }
 0x193   :  { %v2396_v53 = vmul.f32 %v2072_v5, %v4720_v10  ;;  %v1017_v58 = vmul.f32 %v5219_v1, %v489_v29  ;;  %v1020_v3 = vmul.f32 %v5222_v38, %v492_v59  ;;  %v1077_v51 = vmul.f32 %v5205_v35, %v537_v0 }
 0x194   :  { %v2399_v19 = vmul.f32 %v2075_v37, %v4720_v10  ;;  %v984_v14 = vsub.f32 %v948_v57, %v972_v25  ;;  %v993_v43 = vmul.f32 2.5, %v981_v56  ;;  %v1080_v48 = vmul.f32 %v5215_v42, %v540_v55  ;;  %v5241_v25 = vld [vmem:[#allocation3 + $0x48] sm:$0xff] }
 0x195   :  { %v1053_v63 = vsub.f32 %v1017_v58, %v1041_v33  ;;  %v1056_v28 = vsub.f32 %v1020_v3, %v1044_v54  ;;  %v1113_v61 = vsub.f32 %v1077_v51, %v7564_v45  ;;  %vm595_vm4 = vcmp.ge.f32.partialorder %v5234_v23, -0.6 }
 0x196   :  { %v2405_v5 = vpack.c.bf16 %v2399_v19, %v2396_v53  ;;  %v996_v29 = vmul.f32 2.5, %v984_v14  ;;  %v1116_v59 = vsub.f32 %v1080_v48, %v7565_v47  ;;  %v1557_v0 = vmul.f32 %v5194_v20, %v993_v43 }
 0x197   :  { %v1065_v35 = vmul.f32 2.5, %v1053_v63  ;;  %v1068_v37 = vmul.f32 2.5, %v1056_v28  ;;  %v5239_v57 = vmul.f32 2.5, %v1113_v61  ;;  %vm598_vm5 = vcmp.ge.f32.partialorder %v5241_v25, -0.6 }
 0x198   :  { %2929 = vmatprep.subr.bf16.mxu0 %v2405_v5  ;;  %v5244_v45 = vmul.f32 2.5, %v1116_v59  ;;  %v1560_v54 = vmul.f32 %v5200_v6, %v996_v29  ;;  %vm607_vm6 = vcmp.lt.f32.partialorder %v5234_v23, -0.2  ;;  %vm610_vm7 = vcmp.lt.f32.partialorder %v5241_v25, -0.2  ;;  %v7568_v5 = vld [vmem:[#allocation99_spill] sm:$0xff] }
 0x199   :  { %v1569_v53 = vmul.f32 %v7562_v52, %v1065_v35  ;;  %v1572_v58 = vmul.f32 %v7563_v50, %v1068_v37  ;;  %v1605_v28 = vmul.f32 %v5219_v1, %v1065_v35  ;;  %v1608_v48 = vmul.f32 %v5222_v38, %v1068_v37  ;;  %vm619_vm8 = vmand %vm595_vm4, %vm607_vm6 }
 0x19a   :  { %v1617_v43 = vmul.f32 %v7528_v17, %v5239_v57  ;;  %v1620_v14 = vmul.f32 %v7530_v15, %v5244_v45  ;;  %vm622_vm9 = vmand %vm598_vm5, %vm610_vm7  ;;  %v5260_v19 = vsel %vm619_vm8, 1.0, %v7363_v41  ;;  %v1135_v55 = vmul.f32 %v4655_v7, %v4674_v30 }
 0x19b   :  { %v1581_v47 = vsub.f32 %v1557_v0, %v1569_v53  ;;  %v1584_v35 = vsub.f32 %v1560_v54, %v1572_v58  ;;  %v5265_v52 = vsel %vm622_vm9, 1.0, %v7363_v41  ;;  %v1138_v33 = vmul.f32 %v4658_v24, %v4685_v21 }
 0x19c   :  { %v1629_v56 = vsub.f32 %v1605_v28, %v1617_v43  ;;  %v1632_v50 = vsub.f32 %v1608_v48, %v1620_v14  ;;  %v5270_v3 = vadd.f32 0.2, %v5234_v23  ;;  %v5273_v51 = vadd.f32 0.2, %v5241_v25 }
 0x19d   :  { %v1593_v63 = vmul.f32 1.25, %v1581_v47  ;;  %v1596_v61 = vmul.f32 1.25, %v1584_v35  ;;  %v1651_v30 = vmul.f32 %v4631_v13, %v4758_v11  ;;  %v1654_v29 = vmul.f32 %v7568_v5, %v4771_v60 }
 0x19e   :  { %7566 = vst [vmem:[#allocation88_spill] sm:$0xff] %v5270_v3  ;;  %7567 = vst [vmem:[#allocation61_spill] sm:$0xff] %v5273_v51  ;;  %v5279_v59 = vmul.f32 1.25, %v1629_v56  ;;  %v5281_v0 = vmul.f32 1.25, %v1632_v50  ;;  %v1159_v21 = vmul.f32 %v5270_v3, %v5260_v19  ;;  %v1162_v37 = vmul.f32 %v5273_v51, %v5265_v52 }
 0x19f   :  { %v1989_v54 = vmul.f32 %v5194_v20, %v1593_v63  ;;  %v1992_v53 = vmul.f32 %v5200_v6, %v1596_v61  ;;  %v5291_v11 = vmul.f32 %v4638_v36, %v4833_v31  ;;  %v5295_v60 = vmul.f32 %v4651_v46, %v4835_v18  ;;  %v7570_v6 = vld [vmem:[#allocation36_spill] sm:$0xff] }
 0x1a0   :  { %v2001_v58 = vmul.f32 %v7528_v17, %v5279_v59  ;;  %v2004_v28 = vmul.f32 %v7530_v15, %v5281_v0  ;;  %v1171_v48 = vsub.f32 %v1135_v55, %v1159_v21  ;;  %v1174_v43 = vsub.f32 %v1138_v33, %v1162_v37  ;;  %v7569_v17 = vld [vmem:[#allocation35_spill] sm:$0xff] }
 0x1a1   :  { %vm783_vm10 = vcmp.ge.f32.partialorder %v4716_v12, 1.0  ;;  %vm786_vm11 = vcmp.ge.f32.partialorder %v4728_v9, 1.0  ;;  %vm795_vm12 = vcmp.lt.f32.partialorder %v4716_v12, 1.4  ;;  %vm798_vm13 = vcmp.lt.f32.partialorder %v4728_v9, 1.4 }
 0x1a2   :  { %v2013_v36 = vsub.f32 %v1989_v54, %v2001_v58  ;;  %v2016_v31 = vsub.f32 %v1992_v53, %v2004_v28  ;;  %v5305_v46 = vmul.f32 2.5, %v1171_v48  ;;  %v5307_v18 = vmul.f32 2.5, %v1174_v43  ;;  %vm807_vm14 = vmand %vm783_vm10, %vm795_vm12  ;;  %v7571_v43 = vld [vmem:[#allocation31_spill] sm:$0xff] }
 0x1a3   :  { %vm810_vm15 = vmand %vm786_vm11, %vm798_vm13  ;;  %v5310_v15 = vsel %vm807_vm14, 1.0, %v7363_v41  ;;  %v1371_v20 = vmul.f32 %v7569_v17, %v4814_v26  ;;  %v1374_v14 = vmul.f32 %v7570_v6, %v4817_v16  ;;  %v5317_v55 = vadd.f32 -1.4, %v4716_v12 }
 0x1a4   :  { %v2025_v47 = vmul.f32 0.8333333, %v2013_v36  ;;  %v2028_v35 = vmul.f32 0.8333333, %v2016_v31  ;;  %v1663_v33 = vmul.f32 %v5270_v3, %v5305_v46  ;;  %v1666_v56 = vmul.f32 %v5273_v51, %v5307_v18  ;;  %v7573_v31 = vld [vmem:[#allocation39_spill] sm:$0xff] }
 0x1a5   :  { %v5324_v50 = vsel %vm810_vm15, 1.0, %v7363_v41  ;;  %v5327_v63 = vadd.f32 -1.4, %v4728_v9  ;;  %v1395_v26 = vmul.f32 %v5317_v55, %v5310_v15  ;;  %v1839_v12 = vmul.f32 %v4003_v34, %v4865_v49  ;;  %v7590_v34 = vld [vmem:[#allocation12_spill] sm:$0xff] }
 0x1a6   :  { %v2373_v16 = vmul.f32 %v2025_v47, %v4763_v32  ;;  %v2376_v61 = vmul.f32 %v2028_v35, %v4763_v32  ;;  %v1675_v21 = vsub.f32 %v1651_v30, %v1663_v33  ;;  %v1678_v37 = vsub.f32 %v1654_v29, %v1666_v56  ;;  %v7577_v35 = vld [vmem:[#allocation20_spill] sm:$0xff] }
 0x1a7   :  { %v1398_v54 = vmul.f32 %v5327_v63, %v5324_v50  ;;  %v1407_v53 = vsub.f32 %v1371_v20, %v1395_v26  ;;  %v1842_v9 = vmul.f32 %v7452_v40, %v4869_v4  ;;  %v2223_v58 = vmul.f32 %v7455_v22, %v4899_v8  ;;  %v7574_v20 = vld [vmem:[#allocation30_spill] sm:$0xff]  ;;  %v7578_v56 = vld [vmem:[#allocation44_spill] sm:$0xff]  ;;  %v7579_v26 = vld [vmem:[#allocation21_spill] sm:$0xff] }
 0x1a8   :  { %v2382_v28 = vpack.c.bf16 %v2376_v61, %v2373_v16  ;;  %v5341_v48 = vmul.f32 1.25, %v1675_v21  ;;  %v5343_v49 = vmul.f32 1.25, %v1678_v37  ;;  %v2226_v36 = vmul.f32 %v7571_v43, %v4904_v2  ;;  %v7589_v40 = vld [vmem:[#allocation19_spill] sm:$0xff] }
 0x1a9   :  { %v1410_v30 = vsub.f32 %v1374_v14, %v1398_v54  ;;  %v5347_v29 = vmul.f32 2.5, %v1407_v53  ;;  %vm638_vm0 = vcmp.ge.f32.partialorder %v7573_v31, -0.2  ;;  %vm641_vm1 = vcmp.ge.f32.partialorder %v7574_v20, -0.2  ;;  %v7576_v14 = vld [vmem:[#allocation40_spill] sm:$0xff] }
 0x1aa   :  { %3347 = vmatpush3.bf16.msra.mxu1 %v2382_v28  ;;  %v2047_v4 = vmul.f32 %v5270_v3, %v5341_v48  ;;  %v2050_v8 = vmul.f32 %v5273_v51, %v5343_v49  ;;  %vm650_vm2 = vcmp.lt.f32.partialorder %v7573_v31, 0.2  ;;  %vm653_vm3 = vcmp.lt.f32.partialorder %v7574_v20, 0.2 }
 0x1ab   :  { %7572 = vst [vmem:[#allocation62_spill] sm:$0xff] %v5347_v29  ;;  %v5357_v47 = vmul.f32 2.5, %v1410_v30  ;;  %v1851_v2 = vmul.f32 %v5317_v55, %v5347_v29  ;;  %vm662_vm4 = vmand %vm638_vm0, %vm650_vm2  ;;  %v1190_v33 = vmul.f32 %v7577_v35, %v7576_v14  ;;  %v1193_v16 = vmul.f32 %v7579_v26, %v7578_v56  ;;  %v7585_v56 = vld [vmem:[#allocation16_spill] sm:$0xff]  ;;  %v7588_v26 = vld [vmem:[#allocation17_spill] sm:$0xff] }
 0x1ac   :  { %v2059_v61 = vsub.f32 %v5291_v11, %v2047_v4  ;;  %v2062_v21 = vsub.f32 %v5295_v60, %v2050_v8  ;;  %vm665_vm5 = vmand %vm641_vm1, %vm653_vm3  ;;  %v5368_v37 = vsel %vm662_vm4, 1.0, %v7363_v41  ;;  %v5371_v54 = vadd.f32 -0.2, %v7573_v31  ;;  %v7584_v8 = vld [vmem:[#allocation29_spill] sm:$0xff] }
 0x1ad   :  { %7575 = vst [vmem:[#allocation77_spill] sm:$0xff] %v5357_v47  ;;  %7580 = vst [vmem:[#allocation95_spill] sm:$0xff] %v5368_v37  ;;  %v1854_v53 = vmul.f32 %v5327_v63, %v5357_v47  ;;  %v1863_v28 = vsub.f32 %v1839_v12, %v1851_v2  ;;  %v5376_v30 = vsel %vm665_vm5, 1.0, %v7363_v41  ;;  %v5379_v14 = vadd.f32 -0.2, %v7574_v20  ;;  %v7587_v2 = vld [vmem:[#allocation18_spill] sm:$0xff] }
 0x1ae   :  { %7581 = vst [vmem:[#allocation99_spill] sm:$0xff] %v5371_v54  ;;  %7582 = vst [vmem:[#allocation31_spill] sm:$0xff] %v5376_v30  ;;  %v2071_v11 = vmul.f32 0.8333333, %v2059_v61  ;;  %v2074_v4 = vmul.f32 0.8333333, %v2062_v21  ;;  %v1214_v60 = vmul.f32 %v5371_v54, %v5368_v37  ;;  %v1694_v51 = vmul.f32 %v7585_v56, %v7584_v8 }
 0x1af   :  { %7583 = vst [vmem:[#allocation39_spill] sm:$0xff] %v5379_v14  ;;  %v1866_v31 = vsub.f32 %v1842_v9, %v1854_v53  ;;  %v5385_v3 = vmul.f32 1.25, %v1863_v28  ;;  %v1217_v12 = vmul.f32 %v5379_v14, %v5376_v30  ;;  %v1697_v35 = vmul.f32 %v7588_v26, %v7587_v2  ;;  %v7592_v28 = vld [vmem:[#allocation22_spill] sm:$0xff]  ;;  %v7593_v8 = vld [vmem:[#allocation13_spill] sm:$0xff] }
 0x1b0   :  { %v2395_v20 = vmul.f32 %v2071_v11, %v4706_v62  ;;  %v2398_v61 = vmul.f32 %v2074_v4, %v4706_v62  ;;  %v1226_v21 = vsub.f32 %v1190_v33, %v1214_v60  ;;  %v2078_v37 = vmul.f32 %v7590_v34, %v7589_v40  ;;  %v7595_v4 = vld [vmem:[#allocation24_spill] sm:$0xff]  ;;  %v7596_v33 = vld [vmem:[#allocation25_spill] sm:$0xff] }
 0x1b1   :  { %7586 = vst [vmem:[#allocation30_spill] sm:$0xff] %v5385_v3  ;;  %v5395_v6 = vmul.f32 1.25, %v1866_v31  ;;  %v2235_v9 = vmul.f32 %v5317_v55, %v5385_v3  ;;  %v1229_v53 = vsub.f32 %v1193_v16, %v1217_v12  ;;  %v2081_v56 = vmul.f32 %v7593_v8, %v7592_v28  ;;  %v7598_v2 = vld [vmem:[#allocation37_spill] sm:$0xff]  ;;  %v7602_v8 = vld [vmem:[#allocation110_spill] sm:$0xff] }
 0x1b2   :  { %v2404_v30 = vpack.c.bf16 %v2398_v61, %v2395_v20  ;;  %v5401_v47 = vmul.f32 2.5, %v1226_v21  ;;  %v1647_v11 = vmul.f32 %v4956_v39, %v4984_v27  ;;  %v1650_v60 = vmul.f32 %v7596_v33, %v7595_v4  ;;  %v7599_v20 = vld [vmem:[#allocation38_spill] sm:$0xff]  ;;  %v7603_v4 = vld [vmem:[#allocation27_spill] sm:$0xff] }
 0x1b3   :  { %7591 = vst [vmem:[#allocation40_spill] sm:$0xff] %v5395_v6  ;;  %v2238_v34 = vmul.f32 %v5327_v63, %v5395_v6  ;;  %v2247_v40 = vsub.f32 %v2223_v58, %v2235_v9  ;;  %v5409_v31 = vmul.f32 2.5, %v1229_v53  ;;  %v1659_v16 = vmul.f32 %v7455_v22, %v7598_v2  ;;  %v7600_v27 = vld [vmem:[#allocation46_spill] sm:$0xff]  ;;  %v7604_v6 = vld [vmem:[#allocation15_spill] sm:$0xff] }
 0x1b4   :  { %7594 = vst [vmem:[#allocation44_spill] sm:$0xff] %v5401_v47  ;;  %2930 = vmatpush1.bf16.msra.mxu0 %v2404_v30  ;;  %v1706_v12 = vmul.f32 %v5371_v54, %v5401_v47  ;;  %v1662_v61 = vmul.f32 %v7571_v43, %v7599_v20  ;;  %v7601_v21 = vld [vmem:[#allocation14_spill] sm:$0xff]  ;;  %v2034_v26 = vmul.f32 %v7603_v4, %v7602_v8  ;;  %vm637_vm6 = vcmp.ge.f32.partialorder %v7604_v6, -0.2 }
 0x1b5   :  { %7597 = vst [vmem:[#allocation29_spill] sm:$0xff] %v5409_v31  ;;  %v2031_v28 = vmul.f32 %v7601_v21, %v7600_v27  ;;  %v2250_v33 = vsub.f32 %v2226_v36, %v2238_v34  ;;  %v2259_v58 = vmul.f32 0.8333333, %v2247_v40  ;;  %v1709_v9 = vmul.f32 %v5379_v14, %v5409_v31  ;;  %v3424_v2 = vld [vmem:[#allocation6 + $0x4] ss:$16 sps:$4 sm:$0xff]  }
 0x1b6   :  { %v1671_v53 = vsub.f32 %v1647_v11, %v1659_v16  ;;  %v1718_v30 = vsub.f32 %v1694_v51, %v1706_v12  ;;  %v1674_v39 = vsub.f32 %v1650_v60, %v1662_v61  ;;  %v7605_v47 = vld [vmem:[#allocation26_spill] sm:$0xff]  ;;  %3057 = vmatprep.mubr.bf16.mxu1 %v3424_v2  ;;  %2951 = vmatprep.mubr.bf16.mxu0 %v3424_v2  ;;  %vm649_vm8 = vcmp.lt.f32.partialorder %v7604_v6, 0.2 }
 0x1b7   :  { %vm640_vm7 = vcmp.ge.f32.partialorder %v7605_v47, -0.2  ;;  %v2262_v20 = vmul.f32 0.8333333, %v2250_v33  ;;  %v2487_v3 = vmul.f32 %v2259_v58, %v4763_v32  ;;  %v1721_v27 = vsub.f32 %v1697_v35, %v1709_v9  ;;  %vm661_vm10 = vmand %vm637_vm6, %vm649_vm8  ;;  %v7610_v35 = vld [vmem:[#allocation45_spill] sm:$0xff]  ;;  %v7611_v60 = vld [vmem:[#allocation54_spill] sm:$0xff] }
 0x1b8   :  { %v5426_v21 = vmul.f32 1.25, %v1671_v53  ;;  %v5428_v36 = vmul.f32 1.25, %v1718_v30  ;;  %v5430_v34 = vmul.f32 1.25, %v1674_v39  ;;  %vm652_vm9 = vcmp.lt.f32.partialorder %v7605_v47, 0.2  ;;  %v7613_v61 = vld [vmem:[#allocation58_spill] sm:$0xff] }
 0x1b9   :  { %v2490_v51 = vmul.f32 %v2262_v20, %v4763_v32  ;;  %v5435_v11 = vmul.f32 1.25, %v1721_v27  ;;  %v1189_v40 = vmul.f32 %v7611_v60, %v7610_v35  ;;  %vm664_vm11 = vmand %vm640_vm7, %vm652_vm9  ;;  %v5450_v12 = vsel %vm661_vm10, 1.0, %v7363_v41 }
 0x1ba   :  { %7606 = vst [vmem:[#allocation18_spill] sm:$0xff] %v5426_v21  ;;  %7607 = vst [vmem:[#allocation19_spill] sm:$0xff] %v5428_v36  ;;  %v2043_v33 = vmul.f32 %v7455_v22, %v5426_v21  ;;  %v2090_v39 = vmul.f32 %v5371_v54, %v5428_v36  ;;  %v2046_v16 = vmul.f32 %v7571_v43, %v5430_v34  ;;  %v7614_v22 = vld [vmem:[#allocation55_spill] sm:$0xff]  ;;  %v5457_v53 = vsel %vm664_vm11, 1.0, %v7363_v41  ;;  %v7620_v54 = vld [vmem:[#allocation57_spill] sm:$0xff] }
 0x1bb   :  { %7608 = vst [vmem:[#allocation12_spill] sm:$0xff] %v5430_v34  ;;  %7609 = vst [vmem:[#allocation22_spill] sm:$0xff] %v5435_v11  ;;  %v1192_v8 = vmul.f32 %v7614_v22, %v7613_v61  ;;  %v2499_v4 = vpack.c.bf16 %v2490_v51, %v2487_v3  ;;  %v2093_v58 = vmul.f32 %v5379_v14, %v5435_v11  ;;  %v5460_v43 = vadd.f32 -0.2, %v7604_v6  ;;  %v7618_v61 = vld [vmem:[#allocation56_spill] sm:$0xff]  ;;  %v7621_v14 = vld [vmem:[#allocation53_spill] sm:$0xff] }
 0x1bc   :  { %7612 = vst [vmem:[#allocation13_spill] sm:$0xff] %v5450_v12  ;;  %v2055_v9 = vsub.f32 %v2031_v28, %v2043_v33  ;;  %7615 = vst [vmem:[#allocation24_spill] sm:$0xff] %v5457_v53  ;;  %v2102_v2 = vsub.f32 %v2078_v37, %v2090_v39  ;;  %v2058_v30 = vsub.f32 %v2034_v26, %v2046_v16  ;;  %v5463_v20 = vadd.f32 -0.2, %v7605_v47  ;;  %v7619_v3 = vld [vmem:[#allocation52_spill] sm:$0xff]  ;;  %v7622_v39 = vld [vmem:[#allocation66_spill] sm:$0xff] }
 0x1bd   :  { %7616 = vst [vmem:[#allocation37_spill] sm:$0xff] %v5460_v43  ;;  %3348 = vmatprep.subr.bf16.mxu1 %v2499_v4  ;;  %v2105_v27 = vsub.f32 %v2081_v56, %v2093_v58  ;;  %v1693_v51 = vmul.f32 %v7619_v3, %v7618_v61  ;;  %v1696_v28 = vmul.f32 %v7621_v14, %v7620_v54  ;;  %v7623_v56 = vld [vmem:[#allocation48_spill] sm:$0xff]  ;;  %v7624_v4 = vld [vmem:[#allocation67_spill] sm:$0xff]  ;;  %v7625_v58 = vld [vmem:[#allocation49_spill] sm:$0xff]  ;;  %vm789_vm12 = vcmp.ge.f32.partialorder %v5202_v44, 1.0 }
 0x1be   :  { %7617 = vst [vmem:[#allocation38_spill] sm:$0xff] %v5463_v20  ;;  %v2067_v35 = vmul.f32 0.8333333, %v2055_v9  ;;  %v2114_v33 = vmul.f32 0.8333333, %v2102_v2  ;;  %v1213_v26 = vmul.f32 %v5460_v43, %v5450_v12  ;;  %v1216_v6 = vmul.f32 %v5463_v20, %v5457_v53  ;;  %v7640_v3 = vld [vmem:[#allocation65_spill] sm:$0xff] }
 0x1bf   :  { %v2070_v22 = vmul.f32 0.8333333, %v2058_v30  ;;  %v2117_v37 = vmul.f32 0.8333333, %v2105_v27  ;;  %v5476_v16 = vmul.f32 %v7623_v56, %v7622_v39  ;;  %v5480_v9 = vmul.f32 %v7625_v58, %v7624_v4  ;;  %v7626_v27 = vld [vmem:[#allocation98_spill] sm:$0xff]  ;;  %v7641_v53 = vld [vmem:[#allocation83_spill] sm:$0xff] }
 0x1c0   :  { %v2391_v47 = vmul.f32 %v2067_v35, %v4763_v32  ;;  %v2414_v54 = vmul.f32 %v2114_v33, %v4720_v10  ;;  %v1225_v30 = vsub.f32 %v1189_v40, %v1213_v26  ;;  %v1228_v61 = vsub.f32 %v1192_v8, %v1216_v6  ;;  %v7631_v8 = vld [vmem:[#allocation71_spill] sm:$0xff]  ;;  %v7632_v6 = vld [vmem:[#allocation60_spill] sm:$0xff]  ;;  %v7664_v21 = vld [vmem:[#allocation86_spill] sm:$0xff] }
 0x1c1   :  { %v2394_v2 = vmul.f32 %v2070_v22, %v4763_v32  ;;  %v2417_v14 = vmul.f32 %v2117_v37, %v4720_v10  ;;  %vm792_vm13 = vcmp.ge.f32.partialorder %v7626_v27, 1.0  ;;  %vm801_vm14 = vcmp.lt.f32.partialorder %v5202_v44, 1.4  ;;  %v7630_v22 = vld [vmem:[#allocation59_spill] sm:$0xff]  ;;  %v7633_v37 = vld [vmem:[#allocation72_spill] sm:$0xff] }
 0x1c2   :  { %v5488_v39 = vmul.f32 2.5, %v1225_v30  ;;  %v5490_v56 = vmul.f32 2.5, %v1228_v61  ;;  %vm804_vm15 = vcmp.lt.f32.partialorder %v7626_v27, 1.4  ;;  %vm813_vm0 = vmand %vm789_vm12, %vm801_vm14  ;;  %v1377_v26 = vmul.f32 %v7631_v8, %v7630_v22  ;;  %v7635_v30 = vld [vmem:[#allocation75_spill] sm:$0xff]  ;;  %v7636_v61 = vld [vmem:[#allocation69_spill] sm:$0xff] }
 0x1c3   :  { %v2403_v35 = vpack.c.bf16 %v2394_v2, %v2391_v47  ;;  %v2426_v33 = vpack.c.bf16 %v2417_v14, %v2414_v54  ;;  %vm816_vm1 = vmand %vm792_vm13, %vm804_vm15  ;;  %v5494_v40 = vsel %vm813_vm0, 1.0, %v7363_v41  ;;  %v1380_v4 = vmul.f32 %v7633_v37, %v7632_v6  ;;  %v7638_v6 = vld [vmem:[#allocation70_spill] sm:$0xff] }
 0x1c4   :  { %7627 = vst [vmem:[#allocation46_spill] sm:$0xff] %v5488_v39  ;;  %7628 = vst [vmem:[#allocation14_spill] sm:$0xff] %v5490_v56  ;;  %v1705_v47 = vmul.f32 %v5460_v43, %v5488_v39  ;;  %v1708_v58 = vmul.f32 %v5463_v20, %v5490_v56  ;;  %v5505_v2 = vsel %vm816_vm1, 1.0, %v7363_v41  ;;  %v5508_v14 = vadd.f32 -1.4, %v5202_v44  ;;  %v7639_v8 = vld [vmem:[#allocation82_spill] sm:$0xff] }
 0x1c5   :  { %7629 = vst [vmem:[#allocation110_spill] sm:$0xff] %v5494_v40  ;;  %3349 = vmatpush3.bf16.msra.mxu1 %v2403_v35  ;;  %7634 = vst [vmem:[#allocation27_spill] sm:$0xff] %v5505_v2  ;;  %2931 = vmatprep.subr.bf16.mxu0 %v2426_v33  ;;  %v5511_v54 = vadd.f32 -1.4, %v7626_v27  ;;  %v1845_v22 = vmul.f32 %v7636_v61, %v7635_v30  ;;  %v7637_v35 = vld [vmem:[#allocation76_spill] sm:$0xff]  ;;  %v5519_v60 = vmul.f32 %v7640_v3, %v7639_v8  ;;  %v5529_v30 = vld [vmem:[#allocation3 + $0x38] sm:$0xff] }
 0x1c6   :  { %v1848_v37 = vmul.f32 %v7638_v6, %v7637_v35  ;;  %v1717_v56 = vsub.f32 %v1693_v51, %v1705_v47  ;;  %v1720_v39 = vsub.f32 %v1696_v28, %v1708_v58  ;;  %v1401_v44 = vmul.f32 %v5508_v14, %v5494_v40  ;;  %v7642_v33 = vld [vmem:[#allocation68_spill] sm:$0xff]  ;;  %7643 = vst [vmem:[#allocation15_spill] sm:$0xff] %v5529_v30  ;;  %v5532_v35 = vld [vmem:[#allocation3 + $0x50] sm:$0xff]  ;;  %v7651_v40 = vld [vmem:[#allocation93_spill] sm:$0xff] }
 0x1c7   :  { %v5525_v12 = vmul.f32 %v7642_v33, %v7641_v53  ;;  %v1404_v27 = vmul.f32 %v5511_v54, %v5505_v2  ;;  %vm644_vm2 = vcmp.ge.f32.partialorder %v5529_v30, -0.2  ;;  %7644 = vst [vmem:[#allocation26_spill] sm:$0xff] %v5532_v35  ;;  %vm647_vm3 = vcmp.ge.f32.partialorder %v5532_v35, -0.2  ;;  %v7648_v58 = vld [vmem:[#allocation80_spill] sm:$0xff] }
 0x1c8   :  { %vm656_vm4 = vcmp.lt.f32.partialorder %v5529_v30, 0.2  ;;  %v5536_v51 = vmul.f32 1.25, %v1717_v56  ;;  %v5538_v28 = vmul.f32 1.25, %v1720_v39  ;;  %v1413_v8 = vsub.f32 %v1377_v26, %v1401_v44  ;;  %v7649_v6 = vld [vmem:[#allocation92_spill] sm:$0xff]  ;;  %v7650_v2 = vld [vmem:[#allocation81_spill] sm:$0xff] }
 0x1c9   :  { %vm659_vm5 = vcmp.lt.f32.partialorder %v5532_v35, 0.2  ;;  %vm668_vm6 = vmand %vm644_vm2, %vm656_vm4  ;;  %v1416_v53 = vsub.f32 %v1380_v4, %v1404_v27  ;;  %v1196_v61 = vmul.f32 %v7649_v6, %v7648_v58  ;;  %v1199_v11 = vmul.f32 %v7651_v40, %v7650_v2  ;;  %v7657_v2 = vld [vmem:[#allocation85_spill] sm:$0xff] }
 0x1ca   :  { %7645 = vst [vmem:[#allocation45_spill] sm:$0xff] %v5536_v51  ;;  %7646 = vst [vmem:[#allocation58_spill] sm:$0xff] %v5538_v28  ;;  %v5542_v47 = vsel %vm668_vm6, 1.0, %v7363_v41  ;;  %v2089_v56 = vmul.f32 %v5460_v43, %v5536_v51  ;;  %v2092_v44 = vmul.f32 %v5463_v20, %v5538_v28  ;;  %v5552_v39 = vmul.f32 2.5, %v1413_v8  ;;  %v7658_v40 = vld [vmem:[#allocation89_spill] sm:$0xff]  ;;  %v7659_v28 = vld [vmem:[#allocation91_spill] sm:$0xff] }
 0x1cb   :  { %vm671_vm7 = vmand %vm647_vm3, %vm659_vm5  ;;  %7647 = vst [vmem:[#allocation56_spill] sm:$0xff] %v5542_v47  ;;  %v5557_v26 = vmul.f32 2.5, %v1416_v53  ;;  %v5560_v4 = vadd.f32 -0.2, %v5529_v30  ;;  %v5563_v58 = vadd.f32 -0.2, %v5532_v35  ;;  %v1700_v6 = vmul.f32 %v7658_v40, %v7657_v2 }
 0x1cc   :  { %7652 = vst [vmem:[#allocation57_spill] sm:$0xff] %v5552_v39  ;;  %v5555_v27 = vsel %vm671_vm7, 1.0, %v7363_v41  ;;  %v2101_v43 = vsub.f32 %v5476_v16, %v2089_v56  ;;  %v2104_v20 = vsub.f32 %v5480_v9, %v2092_v44  ;;  %v1857_v8 = vmul.f32 %v5508_v14, %v5552_v39  ;;  %v7660_v51 = vld [vmem:[#allocation90_spill] sm:$0xff]  ;;  %v7662_v40 = vld [vmem:[#allocation84_spill] sm:$0xff] }
 0x1cd   :  { %7653 = vst [vmem:[#allocation66_spill] sm:$0xff] %v5555_v27  ;;  %7654 = vst [vmem:[#allocation48_spill] sm:$0xff] %v5557_v26  ;;  %v1703_v53 = vmul.f32 %v7660_v51, %v7659_v28  ;;  %v1860_v30 = vmul.f32 %v5511_v54, %v5557_v26  ;;  %v1220_v35 = vmul.f32 %v5560_v4, %v5542_v47  ;;  %v7661_v2 = vld [vmem:[#allocation94_spill] sm:$0xff]  ;;  %v7663_v39 = vld [vmem:[#allocation96_spill] sm:$0xff]  ;;  %vm643_vm8 = vcmp.ge.f32.partialorder %v5234_v23, -0.2 }
 0x1ce   :  { %7655 = vst [vmem:[#allocation67_spill] sm:$0xff] %v5560_v4  ;;  %7656 = vst [vmem:[#allocation49_spill] sm:$0xff] %v5563_v58  ;;  %v1223_v34 = vmul.f32 %v5563_v58, %v5555_v27  ;;  %v5581_v16 = vmul.f32 %v7662_v40, %v7661_v2  ;;  %v2113_v9 = vmul.f32 0.8333333, %v2101_v43  ;;  %v2116_v56 = vmul.f32 0.8333333, %v2104_v20 }
 0x1cf   :  { %v1869_v44 = vsub.f32 %v1845_v22, %v1857_v8  ;;  %v2087_v36 = vmul.f32 %v7664_v21, %v7663_v39  ;;  %v1872_v28 = vsub.f32 %v1848_v37, %v1860_v30  ;;  %v1232_v51 = vsub.f32 %v1196_v61, %v1220_v35  ;;  %v7665_v26 = vld [vmem:[#allocation87_spill] sm:$0xff]  ;;  %v7666_v37 = vld [vmem:[#allocation73_spill] sm:$0xff]  ;;  %v7667_v61 = vld [vmem:[#allocation74_spill] sm:$0xff] }
 0x1d0   :  { %v1235_v31 = vsub.f32 %v1199_v11, %v1223_v34  ;;  %v1653_v17 = vmul.f32 %v7665_v26, %v5239_v57  ;;  %v2413_v47 = vmul.f32 %v2113_v9, %v4706_v62  ;;  %v2416_v27 = vmul.f32 %v2116_v56, %v4706_v62 }
 0x1d1   :  { %v5589_v29 = vmul.f32 1.25, %v1869_v44  ;;  %v1656_v43 = vmul.f32 %v5215_v42, %v5244_v45  ;;  %v5593_v20 = vmul.f32 1.25, %v1872_v28  ;;  %v5595_v40 = vmul.f32 2.5, %v1232_v51 }
 0x1d2   :  { %v5597_v21 = vmul.f32 2.5, %v1235_v31  ;;  %v1665_v34 = vmul.f32 %v7640_v3, %v7666_v37  ;;  %v2425_v11 = vpack.c.bf16 %v2416_v27, %v2413_v47  ;;  %v1668_v22 = vmul.f32 %v7642_v33, %v7667_v61 }
 0x1d3   :  { %v2241_v57 = vmul.f32 %v5508_v14, %v5589_v29  ;;  %v2037_v30 = vmul.f32 %v5219_v1, %v5279_v59  ;;  %v2244_v45 = vmul.f32 %v5511_v54, %v5593_v20  ;;  %v1712_v31 = vmul.f32 %v5560_v4, %v5595_v40 }
 0x1d4   :  { %v1715_v35 = vmul.f32 %v5563_v58, %v5597_v21  ;;  %v1677_v51 = vsub.f32 %v1653_v17, %v1665_v34  ;;  %2932 = vmatpush1.bf16.msra.mxu0 %v2425_v11  ;;  %v1680_v39 = vsub.f32 %v1656_v43, %v1668_v22  ;;  %v2040_v27 = vmul.f32 %v5222_v38, %v5281_v0  ;;  %v7668_v17 = vld [vmem:[#allocation100_spill] sm:$0xff]  ;;  %v7669_v34 = vld [vmem:[#allocation101_spill] sm:$0xff] }
 0x1d5   :  { %v2253_v47 = vsub.f32 %v5519_v60, %v2241_v57  ;;  %v2256_v1 = vsub.f32 %v5525_v12, %v2244_v45  ;;  %v1724_v59 = vsub.f32 %v1700_v6, %v1712_v31  ;;  %vm646_vm9 = vcmp.ge.f32.partialorder %v5241_v25, -0.2 }
 0x1d6   :  { %v1727_v8 = vsub.f32 %v1703_v53, %v1715_v35  ;;  %v5618_v2 = vmul.f32 1.25, %v1677_v51  ;;  %v5620_v56 = vmul.f32 1.25, %v1680_v39  ;;  %v1195_v60 = vmul.f32 %v7668_v17, %v5260_v19 }
 0x1d7   :  { %v2265_v9 = vmul.f32 0.8333333, %v2253_v47  ;;  %v2268_v44 = vmul.f32 0.8333333, %v2256_v1  ;;  %v5625_v28 = vmul.f32 1.25, %v1724_v59  ;;  %v1198_v11 = vmul.f32 %v7669_v34, %v5265_v52 }
 0x1d8   :  { %v5627_v38 = vmul.f32 1.25, %v1727_v8  ;;  %v2049_v0 = vmul.f32 %v7640_v3, %v5618_v2  ;;  %v2052_v6 = vmul.f32 %v7642_v33, %v5620_v56  ;;  %vm655_vm10 = vcmp.lt.f32.partialorder %v5234_v23, 0.2 }
 0x1d9   :  { %v2493_v12 = vmul.f32 %v2265_v9, %v4763_v32  ;;  %vm658_vm11 = vcmp.lt.f32.partialorder %v5241_v25, 0.2  ;;  %v2496_v53 = vmul.f32 %v2268_v44, %v4763_v32  ;;  %v2096_v19 = vmul.f32 %v5560_v4, %v5625_v28  ;;  %vm667_vm12 = vmand %vm643_vm8, %vm655_vm10 }
 0x1da   :  { %v2099_v43 = vmul.f32 %v5563_v58, %v5627_v38  ;;  %v2061_v37 = vsub.f32 %v2037_v30, %v2049_v0  ;;  %v2064_v3 = vsub.f32 %v2040_v27, %v2052_v6  ;;  %vm670_vm13 = vmand %vm646_vm9, %vm658_vm11  ;;  %v5646_v33 = vsel %vm667_vm12, 1.0, %v7363_v41  ;;  %v5676_v6 = vld [vmem:[#allocation3 + $0x10] sm:$0xff] }
 0x1db   :  { %v5651_v57 = vadd.f32 -0.2, %v5234_v23  ;;  %v2502_v61 = vpack.c.bf16 %v2496_v53, %v2493_v12  ;;  %v2108_v22 = vsub.f32 %v5581_v16, %v2096_v19  ;;  %v5655_v35 = vsel %vm670_vm13, 1.0, %v7363_v41  ;;  %7672 = vst [vmem:[#allocation75_spill] sm:$0xff] %v5676_v6  ;;  %v7674_v53 = vld [vmem:[#allocation108_spill] sm:$0xff] }
 0x1dc   :  { %v2111_v30 = vsub.f32 %v2087_v36, %v2099_v43  ;;  %v2073_v45 = vmul.f32 0.8333333, %v2061_v37  ;;  %v2076_v31 = vmul.f32 0.8333333, %v2064_v3  ;;  %v5658_v51 = vadd.f32 -0.2, %v5241_v25 }
 0x1dd   :  { %7670 = vst [vmem:[#allocation59_spill] sm:$0xff] %v5651_v57  ;;  %v1219_v47 = vmul.f32 %v5651_v57, %v5646_v33  ;;  %3350 = vmatprep.subr.bf16.mxu1 %v2502_v61  ;;  %v2120_v52 = vmul.f32 0.8333333, %v2108_v22  ;;  %v1699_v1 = vmul.f32 %v4655_v7, %v5305_v46  ;;  %v1702_v8 = vmul.f32 %v4658_v24, %v5307_v18  ;;  %v5679_v46 = vld [vmem:[#allocation3 + $0x28] sm:$0xff]  ;;  %v7675_v37 = vld [vmem:[#allocation32_spill] sm:$0xff] }
 0x1de   :  { %7671 = vst [vmem:[#allocation60_spill] sm:$0xff] %v5658_v51  ;;  %v2123_v39 = vmul.f32 0.8333333, %v2111_v30  ;;  %v2397_v23 = vmul.f32 %v2073_v45, %v4763_v32  ;;  %v2400_v27 = vmul.f32 %v2076_v31, %v4763_v32  ;;  %v1222_v36 = vmul.f32 %v5658_v51, %v5655_v35  ;;  %7673 = vst [vmem:[#allocation76_spill] sm:$0xff] %v5679_v46 }
 0x1df   :  { %v1231_v16 = vsub.f32 %v1195_v60, %v1219_v47  ;;  %v2420_v25 = vmul.f32 %v2120_v52, %v4720_v10  ;;  %v2083_v9 = vmul.f32 %v4631_v13, %v5341_v48  ;;  %vm831_vm14 = vcmp.ge.f32.partialorder %v5676_v6, 1.4  ;;  %v7678_v47 = vld [vmem:[#allocation62_spill] sm:$0xff] }
 0x1e0   :  { %v2423_v59 = vmul.f32 %v2123_v39, %v4720_v10  ;;  %v2406_v44 = vpack.c.bf16 %v2400_v27, %v2397_v23  ;;  %v1234_v0 = vsub.f32 %v1198_v11, %v1222_v36  ;;  %vm834_vm15 = vcmp.ge.f32.partialorder %v5679_v46, 1.4  ;;  %v7680_v27 = vld [vmem:[#allocation77_spill] sm:$0xff]  ;;  %v7681_v36 = vld [vmem:[#allocation36_spill] sm:$0xff] }
 0x1e1   :  { %v5674_v12 = vmul.f32 2.5, %v1231_v16  ;;  %vm843_vm0 = vcmp.lt.f32.partialorder %v5676_v6, 1.8  ;;  %vm846_vm1 = vcmp.lt.f32.partialorder %v5679_v46, 1.8  ;;  %v2086_v48 = vmul.f32 %v7568_v5, %v5343_v49 }
 0x1e2   :  { %v2429_v60 = vpack.c.bf16 %v2423_v59, %v2420_v25  ;;  %3351 = vmatpush3.bf16.msra.mxu1 %v2406_v44  ;;  %v5684_v18 = vmul.f32 2.5, %v1234_v0  ;;  %vm855_vm2 = vmand %vm831_vm14, %vm843_vm0  ;;  %v1431_v19 = vmul.f32 %v7674_v53, %v5310_v15  ;;  %v1434_v3 = vmul.f32 %v7675_v37, %v5324_v50  ;;  %v7679_v50 = vld [vmem:[#allocation35_spill] sm:$0xff]  ;;  %v7683_v25 = vld [vmem:[#allocation33_spill] sm:$0xff] }
 0x1e3   :  { %v1711_v13 = vmul.f32 %v5651_v57, %v5674_v12  ;;  %vm858_vm3 = vmand %vm834_vm15, %vm846_vm1  ;;  %v867_v43 = vsel %vm855_vm2, 1.0, %v7363_v41  ;;  %v3289_v11 = vadd.f32 -1.8, %v5676_v6  ;;  %v3292_v61 = vadd.f32 -1.8, %v5679_v46  ;;  %v5716_v0 = vld [vmem:[#allocation3 + $0x8] sm:$0xff] }
 0x1e4   :  { %2933 = vmatprep.subr.bf16.mxu0 %v2429_v60  ;;  %v1714_v22 = vmul.f32 %v5658_v51, %v5684_v18  ;;  %v870_v5 = vsel %vm858_vm3, 1.0, %v7363_v41  ;;  %v5701_v49 = vmul.f32 %v5317_v55, %v867_v43  ;;  %v1887_v52 = vmul.f32 %v7679_v50, %v7678_v47  ;;  %v7694_v37 = vld [vmem:[#allocation44_spill] sm:$0xff] }
 0x1e5   :  { %v1723_v30 = vsub.f32 %v1699_v1, %v1711_v13  ;;  %v1455_v15 = vmul.f32 %v3289_v11, %v867_v43  ;;  %v1458_v45 = vmul.f32 %v3292_v61, %v870_v5  ;;  %v5704_v31 = vmul.f32 %v5327_v63, %v870_v5  ;;  %v7682_v1 = vld [vmem:[#allocation30_spill] sm:$0xff]  ;;  %v5719_v63 = vld [vmem:[#allocation3 + $0x20] sm:$0xff]  ;;  %v7686_v43 = vld [vmem:[#allocation95_spill] sm:$0xff] }
 0x1e6   :  { %7676 = vst [vmem:[#allocation82_spill] sm:$0xff] %v5701_v49  ;;  %v1726_v39 = vsub.f32 %v1702_v8, %v1714_v22  ;;  %v1890_v16 = vmul.f32 %v7681_v36, %v7680_v27  ;;  %v5714_v59 = vmul.f32 %v7683_v25, %v7682_v1  ;;  %vm686_vm4 = vcmp.ge.f32.partialorder %v5716_v0, 0.2  ;;  %v7689_v5 = vld [vmem:[#allocation28_spill] sm:$0xff] }
 0x1e7   :  { %7677 = vst [vmem:[#allocation65_spill] sm:$0xff] %v5704_v31  ;;  %v5708_v23 = vmul.f32 1.25, %v1723_v30  ;;  %v1467_v55 = vsub.f32 %v1431_v19, %v1455_v15  ;;  %v1470_v44 = vsub.f32 %v1434_v3, %v1458_v45  ;;  %vm689_vm5 = vcmp.ge.f32.partialorder %v5719_v63, 0.2  ;;  %v7687_v3 = vld [vmem:[#allocation42_spill] sm:$0xff]  ;;  %v7688_v30 = vld [vmem:[#allocation31_spill] sm:$0xff] }
 0x1e8   :  { %v5722_v8 = vmul.f32 1.25, %v1726_v39  ;;  %vm698_vm6 = vcmp.lt.f32.partialorder %v5716_v0, 0.6  ;;  %vm701_vm7 = vcmp.lt.f32.partialorder %v5719_v63, 0.6  ;;  %v1250_v22 = vmul.f32 %v7687_v3, %v7686_v43 }
 0x1e9   :  { %v2095_v60 = vmul.f32 %v5651_v57, %v5708_v23  ;;  %v5728_v13 = vmul.f32 2.5, %v1467_v55  ;;  %v5730_v19 = vmul.f32 2.5, %v1470_v44  ;;  %vm710_vm8 = vmand %vm686_vm4, %vm698_vm6  ;;  %v1253_v15 = vmul.f32 %v7689_v5, %v7688_v30 }
 0x1ea   :  { %v2098_v45 = vmul.f32 %v5658_v51, %v5722_v8  ;;  %vm713_vm9 = vmand %vm689_vm5, %vm701_vm7  ;;  %v5739_v39 = vsel %vm710_vm8, 1.0, %v7363_v41  ;;  %v5742_v27 = vadd.f32 -0.6, %v5716_v0  ;;  %v5750_v43 = vadd.f32 -0.6, %v5719_v63 }
 0x1eb   :  { %7684 = vst [vmem:[#allocation83_spill] sm:$0xff] %v5728_v13  ;;  %7685 = vst [vmem:[#allocation68_spill] sm:$0xff] %v5730_v19  ;;  %v2107_v47 = vsub.f32 %v2083_v9, %v2095_v60  ;;  %v1899_v1 = vmul.f32 %v3289_v11, %v5728_v13  ;;  %v1902_v55 = vmul.f32 %v3292_v61, %v5730_v19  ;;  %v5747_v44 = vsel %vm713_vm9, 1.0, %v7363_v41  ;;  %v7692_v9 = vld [vmem:[#allocation40_spill] sm:$0xff]  ;;  %v7693_v60 = vld [vmem:[#allocation34_spill] sm:$0xff] }
 0x1ec   :  { %7690 = vst [vmem:[#allocation80_spill] sm:$0xff] %v5742_v27  ;;  %7691 = vst [vmem:[#allocation81_spill] sm:$0xff] %v5750_v43  ;;  %v2110_v30 = vsub.f32 %v2086_v48, %v2098_v45  ;;  %v2274_v57 = vmul.f32 %v7693_v60, %v7692_v9  ;;  %v1274_v58 = vmul.f32 %v5742_v27, %v5739_v39  ;;  %v7695_v19 = vld [vmem:[#allocation20_spill] sm:$0xff]  ;;  %v7696_v48 = vld [vmem:[#allocation29_spill] sm:$0xff] }
 0x1ed   :  { %v2119_v51 = vmul.f32 0.8333333, %v2107_v47  ;;  %v1911_v4 = vsub.f32 %v1887_v52, %v1899_v1  ;;  %v1914_v36 = vsub.f32 %v1890_v16, %v1902_v55  ;;  %v1277_v50 = vmul.f32 %v5750_v43, %v5747_v44  ;;  %v7697_v45 = vld [vmem:[#allocation21_spill] sm:$0xff]  ;;  %v7700_v52 = vld [vmem:[#allocation19_spill] sm:$0xff]  ;;  %v7701_v16 = vld [vmem:[#allocation16_spill] sm:$0xff] }
 0x1ee   :  { %v1742_v31 = vmul.f32 %v7695_v19, %v7694_v37  ;;  %v2122_v53 = vmul.f32 0.8333333, %v2110_v30  ;;  %v1286_v49 = vsub.f32 %v1250_v22, %v1274_v58  ;;  %v1745_v47 = vmul.f32 %v7697_v45, %v7696_v48  ;;  %v7702_v37 = vld [vmem:[#allocation18_spill] sm:$0xff]  ;;  %v7703_v30 = vld [vmem:[#allocation23_spill] sm:$0xff]  ;;  %v7705_v58 = vld [vmem:[#allocation25_spill] sm:$0xff] }
 0x1ef   :  { %v2419_v13 = vmul.f32 %v2119_v51, %v4706_v62  ;;  %v5763_v46 = vmul.f32 1.25, %v1911_v4  ;;  %v5765_v9 = vmul.f32 1.25, %v1914_v36  ;;  %v1289_v6 = vsub.f32 %v1253_v15, %v1277_v50  ;;  %v7704_v51 = vld [vmem:[#allocation12_spill] sm:$0xff]  ;;  %v7707_v50 = vld [vmem:[#allocation41_spill] sm:$0xff] }
 0x1f0   :  { %v2126_v1 = vmul.f32 %v7701_v16, %v7700_v52  ;;  %v2422_v55 = vmul.f32 %v2122_v53, %v4706_v62  ;;  %v5770_v5 = vmul.f32 2.5, %v1286_v49  ;;  %v2079_v19 = vmul.f32 %v7703_v30, %v7702_v37  ;;  %v7708_v49 = vld [vmem:[#allocation43_spill] sm:$0xff]  ;;  %v5786_v37 = vld [vmem:[#allocation3] sm:$0xff] }
 0x1f1   :  { %7698 = vst [vmem:[#allocation85_spill] sm:$0xff] %v5763_v46  ;;  %7699 = vst [vmem:[#allocation91_spill] sm:$0xff] %v5765_v9  ;;  %v2082_v22 = vmul.f32 %v7705_v58, %v7704_v51  ;;  %v2283_v48 = vmul.f32 %v3289_v11, %v5763_v46  ;;  %v2286_v4 = vmul.f32 %v3292_v61, %v5765_v9  ;;  %v5778_v36 = vmul.f32 2.5, %v1289_v6  ;;  %v7738_v46 = vld [vmem:[#allocation53_spill] sm:$0xff]  ;;  %v7743_v45 = vld [vmem:[#allocation72_spill] sm:$0xff] }
 0x1f2   :  { %v2091_v15 = vmul.f32 %v7683_v25, %v7707_v50  ;;  %v2428_v52 = vpack.c.bf16 %v2422_v55, %v2419_v13  ;;  %v1754_v53 = vmul.f32 %v5742_v27, %v5770_v5  ;;  %v2094_v16 = vmul.f32 %v7693_v60, %v7708_v49  ;;  %7709 = vst [vmem:[#allocation84_spill] sm:$0xff] %v5786_v37  ;;  %v5792_v55 = vld [vmem:[#allocation3 + $0x18] sm:$0xff] }
 0x1f3   :  { %7706 = vst [vmem:[#allocation94_spill] sm:$0xff] %v5778_v36  ;;  %vm685_vm10 = vcmp.ge.f32.partialorder %v5786_v37, 0.2  ;;  %v2295_v11 = vsub.f32 %v5714_v59, %v2283_v48  ;;  %v2298_v30 = vsub.f32 %v2274_v57, %v2286_v4  ;;  %v1757_v6 = vmul.f32 %v5750_v43, %v5778_v36  ;;  %7710 = vst [vmem:[#allocation96_spill] sm:$0xff] %v5792_v55  ;;  %v7712_v59 = vld [vmem:[#allocation22_spill] sm:$0xff] }
 0x1f4   :  { %v2103_v61 = vsub.f32 %v2079_v19, %v2091_v15  ;;  %2934 = vmatpush1.bf16.msra.mxu0 %v2428_v52  ;;  %v1766_v25 = vsub.f32 %v1742_v31, %v1754_v53  ;;  %v2106_v13 = vsub.f32 %v2082_v22, %v2094_v16  ;;  %vm688_vm11 = vcmp.ge.f32.partialorder %v5792_v55, 0.2  ;;  %v7713_v19 = vld [vmem:[#allocation17_spill] sm:$0xff] }
 0x1f5   :  { %vm697_vm12 = vcmp.lt.f32.partialorder %v5786_v37, 0.6  ;;  %v2307_v60 = vmul.f32 0.8333333, %v2295_v11  ;;  %v2310_v51 = vmul.f32 0.8333333, %v2298_v30  ;;  %v1769_v58 = vsub.f32 %v1745_v47, %v1757_v6 }
 0x1f6   :  { %v2115_v50 = vmul.f32 0.8333333, %v2103_v61  ;;  %vm709_vm13 = vmand %vm685_vm10, %vm697_vm12  ;;  %v5798_v57 = vmul.f32 1.25, %v1766_v25  ;;  %v2129_v48 = vmul.f32 %v7713_v19, %v7712_v59  ;;  %v2118_v31 = vmul.f32 0.8333333, %v2106_v13  ;;  %v7717_v6 = vld [vmem:[#allocation13_spill] sm:$0xff] }
 0x1f7   :  { %vm700_vm14 = vcmp.lt.f32.partialorder %v5792_v55, 0.6  ;;  %v2511_v22 = vmul.f32 %v2307_v60, %v4763_v32  ;;  %v2514_v4 = vmul.f32 %v2310_v51, %v4763_v32  ;;  %v5805_v15 = vmul.f32 1.25, %v1769_v58  ;;  %v7718_v61 = vld [vmem:[#allocation47_spill] sm:$0xff]  ;;  %v7720_v58 = vld [vmem:[#allocation24_spill] sm:$0xff] }
 0x1f8   :  { %7711 = vst [vmem:[#allocation86_spill] sm:$0xff] %v5798_v57  ;;  %v2415_v47 = vmul.f32 %v2115_v50, %v4763_v32  ;;  %vm712_vm15 = vmand %vm688_vm11, %vm700_vm14  ;;  %v2138_v52 = vmul.f32 %v5742_v27, %v5798_v57  ;;  %v2418_v53 = vmul.f32 %v2118_v31, %v4763_v32  ;;  %v5814_v49 = vsel %vm709_vm13, 1.0, %v7363_v41  ;;  %v7721_v50 = vld [vmem:[#allocation109_spill] sm:$0xff]  ;;  %v7745_v57 = vld [vmem:[#allocation15_spill] sm:$0xff] }
 0x1f9   :  { %7714 = vst [vmem:[#allocation87_spill] sm:$0xff] %v5805_v15  ;;  %7715 = vst [vmem:[#allocation73_spill] sm:$0xff] %v5814_v49  ;;  %v5817_v16 = vsel %vm712_vm15, 1.0, %v7363_v41  ;;  %v2523_v11 = vpack.c.bf16 %v2514_v4, %v2511_v22  ;;  %v2141_v30 = vmul.f32 %v5750_v43, %v5805_v15  ;;  %v1249_v25 = vmul.f32 %v7718_v61, %v7717_v6  ;;  %v7723_v4 = vld [vmem:[#allocation46_spill] sm:$0xff] }
 0x1fa   :  { %7716 = vst [vmem:[#allocation74_spill] sm:$0xff] %v5817_v16  ;;  %v5824_v13 = vadd.f32 -0.6, %v5786_v37  ;;  %v2150_v60 = vsub.f32 %v2126_v1, %v2138_v52  ;;  %v2427_v51 = vpack.c.bf16 %v2418_v53, %v2415_v47  ;;  %v1252_v59 = vmul.f32 %v7721_v50, %v7720_v58  ;;  %v7724_v43 = vld [vmem:[#allocation54_spill] sm:$0xff]  ;;  %v7726_v52 = vld [vmem:[#allocation55_spill] sm:$0xff]  ;;  %v7727_v58 = vld [vmem:[#allocation97_spill] sm:$0xff] }
 0x1fb   :  { %v5829_v19 = vadd.f32 -0.6, %v5792_v55  ;;  %3352 = vmatprep.subr.bf16.mxu1 %v2523_v11  ;;  %v2153_v31 = vsub.f32 %v2129_v48, %v2141_v30  ;;  %v1741_v27 = vmul.f32 %v7724_v43, %v7723_v4  ;;  %v7725_v47 = vld [vmem:[#allocation14_spill] sm:$0xff]  ;;  %vm837_vm0 = vcmp.ge.f32.partialorder %v7727_v58, 1.4  ;;  %v7742_v37 = vld [vmem:[#allocation48_spill] sm:$0xff] }
 0x1fc   :  { %7719 = vst [vmem:[#allocation62_spill] sm:$0xff] %v5824_v13  ;;  %v1273_v22 = vmul.f32 %v5824_v13, %v5814_v49  ;;  %v2162_v6 = vmul.f32 0.8333333, %v2150_v60  ;;  %3353 = vmatpush3.bf16.msra.mxu1 %v2427_v51  ;;  %v1744_v53 = vmul.f32 %v7726_v52, %v7725_v47  ;;  %v7728_v11 = vld [vmem:[#allocation98_spill] sm:$0xff]  ;;  %vm849_vm2 = vcmp.lt.f32.partialorder %v7727_v58, 1.8 }
 0x1fd   :  { %7722 = vst [vmem:[#allocation77_spill] sm:$0xff] %v5829_v19  ;;  %v1276_v1 = vmul.f32 %v5829_v19, %v5817_v16  ;;  %v2165_v50 = vmul.f32 0.8333333, %v2153_v31  ;;  %vm840_vm1 = vcmp.ge.f32.partialorder %v7728_v11, 1.4  ;;  %vm861_vm4 = vmand %vm837_vm0, %vm849_vm2  ;;  %v7729_v60 = vld [vmem:[#allocation110_spill] sm:$0xff] }
 0x1fe   :  { %v1285_v61 = vsub.f32 %v1249_v25, %v1273_v22  ;;  %v2438_v48 = vmul.f32 %v2162_v6, %v4720_v10  ;;  %vm852_vm3 = vcmp.lt.f32.partialorder %v7728_v11, 1.8  ;;  %v7730_v51 = vld [vmem:[#allocation50_spill] sm:$0xff]  ;;  %v873_v25 = vsel %vm861_vm4, 1.0, %v7363_v41  ;;  %v7732_v31 = vld [vmem:[#allocation27_spill] sm:$0xff] }
 0x1ff   :  { %v1288_v30 = vsub.f32 %v1252_v59, %v1276_v1  ;;  %v1437_v4 = vmul.f32 %v7730_v51, %v7729_v60  ;;  %v2441_v43 = vmul.f32 %v2165_v50, %v4720_v10  ;;  %vm864_vm5 = vmand %vm840_vm1, %vm852_vm3  ;;  %v7733_v22 = vld [vmem:[#allocation51_spill] sm:$0xff]  ;;  %v3295_v6 = vadd.f32 -1.8, %v7727_v58  ;;  %v7735_v50 = vld [vmem:[#allocation45_spill] sm:$0xff] }
 0x200   :  { %v5847_v47 = vmul.f32 2.5, %v1285_v61  ;;  %v1440_v52 = vmul.f32 %v7733_v22, %v7732_v31  ;;  %v5855_v59 = vsel %vm864_vm5, 1.0, %v7363_v41  ;;  %v3298_v1 = vadd.f32 -1.8, %v7728_v11  ;;  %v7736_v51 = vld [vmem:[#allocation52_spill] sm:$0xff]  ;;  %v7737_v49 = vld [vmem:[#allocation58_spill] sm:$0xff] }
 0x201   :  { %v5852_v16 = vmul.f32 2.5, %v1288_v30  ;;  %v2450_v60 = vpack.c.bf16 %v2441_v43, %v2438_v48  ;;  %v2125_v9 = vmul.f32 %v7736_v51, %v7735_v50  ;;  %v2128_v55 = vmul.f32 %v7738_v46, %v7737_v49  ;;  %v7740_v11 = vld [vmem:[#allocation57_spill] sm:$0xff]  ;;  %v7741_v48 = vld [vmem:[#allocation71_spill] sm:$0xff] }
 0x202   :  { %7731 = vst [vmem:[#allocation30_spill] sm:$0xff] %v5847_v47  ;;  %v1753_v61 = vmul.f32 %v5824_v13, %v5847_v47  ;;  %v1461_v31 = vmul.f32 %v3295_v6, %v873_v25  ;;  %v1464_v22 = vmul.f32 %v3298_v1, %v5855_v59  ;;  %v5869_v58 = vmul.f32 %v5508_v14, %v873_v25  ;;  %v7744_v50 = vld [vmem:[#allocation69_spill] sm:$0xff]  ;;  %v7747_v14 = vld [vmem:[#allocation70_spill] sm:$0xff] }
 0x203   :  { %7734 = vst [vmem:[#allocation33_spill] sm:$0xff] %v5852_v16  ;;  %v1756_v30 = vmul.f32 %v5829_v19, %v5852_v16  ;;  %2935 = vmatprep.subr.bf16.mxu0 %v2450_v60  ;;  %v1893_v47 = vmul.f32 %v7741_v48, %v7740_v11  ;;  %v1896_v51 = vmul.f32 %v7743_v45, %v7742_v37  ;;  %vm692_vm6 = vcmp.ge.f32.partialorder %v7745_v57, 0.2  ;;  %v7755_v11 = vld [vmem:[#allocation66_spill] sm:$0xff] }
 0x204   :  { %7739 = vst [vmem:[#allocation95_spill] sm:$0xff] %v5869_v58  ;;  %v1765_v43 = vsub.f32 %v1741_v27, %v1753_v61  ;;  %v2277_v46 = vmul.f32 %v7744_v50, %v5589_v29  ;;  %v1473_v15 = vsub.f32 %v1437_v4, %v1461_v31  ;;  %v1476_v16 = vsub.f32 %v1440_v52, %v1464_v22  ;;  %v7748_v27 = vld [vmem:[#allocation26_spill] sm:$0xff] }
 0x205   :  { %v1768_v49 = vsub.f32 %v1744_v53, %v1756_v30  ;;  %v2280_v25 = vmul.f32 %v7747_v14, %v5593_v20  ;;  %vm695_vm7 = vcmp.ge.f32.partialorder %v7748_v27, 0.2  ;;  %vm704_vm8 = vcmp.lt.f32.partialorder %v7745_v57, 0.6  ;;  %v7752_v20 = vld [vmem:[#allocation56_spill] sm:$0xff]  ;;  %v7753_v53 = vld [vmem:[#allocation63_spill] sm:$0xff] }
 0x206   :  { %v5878_v36 = vmul.f32 1.25, %v1765_v43  ;;  %v5886_v37 = vmul.f32 2.5, %v1473_v15  ;;  %v5888_v61 = vmul.f32 2.5, %v1476_v16  ;;  %vm707_vm9 = vcmp.lt.f32.partialorder %v7748_v27, 0.6  ;;  %vm716_vm10 = vmand %vm692_vm6, %vm704_vm8 }
 0x207   :  { %v5884_v60 = vmul.f32 1.25, %v1768_v49  ;;  %vm719_vm11 = vmand %vm695_vm7, %vm707_vm9  ;;  %v5894_v52 = vsel %vm716_vm10, 1.0, %v7363_v41  ;;  %v1256_v4 = vmul.f32 %v7753_v53, %v7752_v20  ;;  %v5899_v22 = vadd.f32 -0.6, %v7745_v57  ;;  %v7756_v49 = vld [vmem:[#allocation64_spill] sm:$0xff] }
 0x208   :  { %7746 = vst [vmem:[#allocation31_spill] sm:$0xff] %v5878_v36  ;;  %7750 = vst [vmem:[#allocation34_spill] sm:$0xff] %v5886_v37  ;;  %v2137_v29 = vmul.f32 %v5824_v13, %v5878_v36  ;;  %v1905_v16 = vmul.f32 %v3295_v6, %v5886_v37  ;;  %v1908_v30 = vmul.f32 %v3298_v1, %v5888_v61  ;;  %v5906_v31 = vsel %vm719_vm11, 1.0, %v7363_v41  ;;  %v7758_v37 = vld [vmem:[#allocation92_spill] sm:$0xff] }
 0x209   :  { %7749 = vst [vmem:[#allocation40_spill] sm:$0xff] %v5884_v60  ;;  %7751 = vst [vmem:[#allocation44_spill] sm:$0xff] %v5888_v61  ;;  %v2140_v15 = vmul.f32 %v5829_v19, %v5884_v60  ;;  %v1259_v13 = vmul.f32 %v7756_v49, %v7755_v11  ;;  %v5911_v45 = vadd.f32 -0.6, %v7748_v27  ;;  %v1280_v20 = vmul.f32 %v5899_v22, %v5894_v52 }
 0x20a   :  { %7754 = vst [vmem:[#allocation29_spill] sm:$0xff] %v5899_v22  ;;  %v2149_v43 = vsub.f32 %v2125_v9, %v2137_v29  ;;  %v1917_v58 = vsub.f32 %v1893_v47, %v1905_v16  ;;  %v1920_v19 = vsub.f32 %v1896_v51, %v1908_v30  ;;  %v1748_v53 = vmul.f32 %v7758_v37, %v5595_v40  ;;  %v7759_v29 = vld [vmem:[#allocation93_spill] sm:$0xff] }
 0x20b   :  { %7757 = vst [vmem:[#allocation19_spill] sm:$0xff] %v5911_v45  ;;  %v2152_v48 = vsub.f32 %v2128_v55, %v2140_v15  ;;  %v1283_v60 = vmul.f32 %v5911_v45, %v5906_v31  ;;  %v1292_v9 = vsub.f32 %v1256_v4, %v1280_v20  ;;  %v1751_v11 = vmul.f32 %v7759_v29, %v5597_v21  ;;  %v7760_v55 = vld [vmem:[#allocation89_spill] sm:$0xff] }
 0x20c   :  { %v2161_v61 = vmul.f32 0.8333333, %v2149_v43  ;;  %v5921_v36 = vmul.f32 1.25, %v1917_v58  ;;  %v5923_v27 = vmul.f32 1.25, %v1920_v19  ;;  %v2132_v47 = vmul.f32 %v7760_v55, %v5625_v28 }
 0x20d   :  { %v2164_v49 = vmul.f32 0.8333333, %v2152_v48  ;;  %v1295_v15 = vsub.f32 %v1259_v13, %v1283_v60  ;;  %v5928_v40 = vmul.f32 2.5, %v1292_v9  ;;  %v2085_v16 = vmul.f32 %v7665_v26, %v5618_v2  ;;  %v7761_v13 = vld [vmem:[#allocation78_spill] sm:$0xff] }
 0x20e   :  { %v2437_v51 = vmul.f32 %v2161_v61, %v4706_v62  ;;  %v2289_v21 = vmul.f32 %v3295_v6, %v5921_v36  ;;  %v2292_v58 = vmul.f32 %v3298_v1, %v5923_v27  ;;  %v2088_v19 = vmul.f32 %v5215_v42, %v5620_v56  ;;  %v7762_v61 = vld [vmem:[#allocation79_spill] sm:$0xff]  ;;  %v5945_v6 = vld [vmem:[#allocation3 + $0x30] sm:$0xff] }
 0x20f   :  { %v2440_v4 = vmul.f32 %v2164_v49, %v4706_v62  ;;  %v5937_v48 = vmul.f32 2.5, %v1295_v15  ;;  %v1760_v28 = vmul.f32 %v5899_v22, %v5928_v40  ;;  %v2097_v60 = vmul.f32 %v7744_v50, %v7761_v13  ;;  %v7763_v50 = vld [vmem:[#allocation90_spill] sm:$0xff] }
 0x210   :  { %v2100_v26 = vmul.f32 %v7747_v14, %v7762_v61  ;;  %v2301_v30 = vsub.f32 %v2277_v46, %v2289_v21  ;;  %v2304_v43 = vsub.f32 %v2280_v25, %v2292_v58  ;;  %vm691_vm12 = vcmp.ge.f32.partialorder %v5945_v6, 0.2  ;;  %v5952_v14 = vld [vmem:[#allocation3 + $0x48] sm:$0xff] }
 0x211   :  { %v2449_v2 = vpack.c.bf16 %v2440_v4, %v2437_v51  ;;  %v1763_v42 = vmul.f32 %v5911_v45, %v5937_v48  ;;  %v1772_v56 = vsub.f32 %v1748_v53, %v1760_v28  ;;  %v2109_v1 = vsub.f32 %v2085_v16, %v2097_v60  ;;  %v7764_v28 = vld [vmem:[#allocation88_spill] sm:$0xff] }
 0x212   :  { %v2112_v49 = vsub.f32 %v2088_v19, %v2100_v26  ;;  %v2313_v20 = vmul.f32 0.8333333, %v2301_v30  ;;  %v2316_v9 = vmul.f32 0.8333333, %v2304_v43  ;;  %v2135_v55 = vmul.f32 %v7763_v50, %v5627_v38 }
 0x213   :  { %2936 = vmatpush1.bf16.msra.mxu0 %v2449_v2  ;;  %vm694_vm13 = vcmp.ge.f32.partialorder %v5952_v14, 0.2  ;;  %v1775_v46 = vsub.f32 %v1751_v11, %v1763_v42  ;;  %v5955_v25 = vmul.f32 1.25, %v1772_v56  ;;  %v2121_v51 = vmul.f32 0.8333333, %v2109_v1  ;;  %v7766_v42 = vld [vmem:[#allocation61_spill] sm:$0xff] }
 0x214   :  { %v2124_v15 = vmul.f32 0.8333333, %v2112_v49  ;;  %v2517_v4 = vmul.f32 %v2313_v20, %v4763_v32  ;;  %v2520_v53 = vmul.f32 %v2316_v9, %v4763_v32  ;;  %vm703_vm14 = vcmp.lt.f32.partialorder %v5945_v6, 0.6  ;;  %v3422_v49 = vld [vmem:[#allocation6] ss:$16 sps:$4 sm:$0xff]  }
 0x215   :  { %vm706_vm15 = vcmp.lt.f32.partialorder %v5952_v14, 0.6  ;;  %v5961_v16 = vmul.f32 1.25, %v1775_v46  ;;  %v2144_v38 = vmul.f32 %v5899_v22, %v5955_v25  ;;  %v2421_v21 = vmul.f32 %v2121_v51, %v4763_v32  ;;  %vm715_vm0 = vmand %vm691_vm12, %vm703_vm14 }
 0x216   :  { %v2424_v11 = vmul.f32 %v2124_v15, %v4763_v32  ;;  %v2526_v58 = vpack.c.bf16 %v2520_v53, %v2517_v4  ;;  %vm718_vm1 = vmand %vm694_vm13, %vm706_vm15  ;;  %v5972_v19 = vsel %vm715_vm0, 1.0, %v7363_v41  ;;  %v1255_v13 = vmul.f32 %v7764_v28, %v5646_v33  ;;  %v7769_v15 = vld [vmem:[#allocation99_spill] sm:$0xff] }
 0x217   :  { %v5977_v60 = vadd.f32 -0.6, %v5945_v6  ;;  %v2147_v61 = vmul.f32 %v5911_v45, %v5961_v16  ;;  %v2156_v26 = vsub.f32 %v2132_v47, %v2144_v38  ;;  %v5982_v30 = vsel %vm718_vm1, 1.0, %v7363_v41  ;;  %v7770_v53 = vld [vmem:[#allocation39_spill] sm:$0xff] }
 0x218   :  { %v2430_v2 = vpack.c.bf16 %v2424_v11, %v2421_v21  ;;  %v5986_v43 = vmul.f32 %v5511_v54, %v5855_v59  ;;  %3354 = vmatprep.subr.bf16.mxu1 %v2526_v58  ;;  %v1258_v56 = vmul.f32 %v7766_v42, %v5655_v35  ;;  %v5991_v33 = vadd.f32 -0.6, %v5952_v14  ;;  %v3425_v59 = vld [vmem:[#allocation6 + $0x24] ss:$16 sps:$4 sm:$0xff]  }
 0x219   :  { %7765 = vst [vmem:[#allocation16_spill] sm:$0xff] %v5977_v60  ;;  %v1279_v1 = vmul.f32 %v5977_v60, %v5972_v19  ;;  %v2159_v47 = vsub.f32 %v2135_v55, %v2147_v61  ;;  %v2168_v20 = vmul.f32 0.8333333, %v2156_v26  ;;  %v1747_v9 = vmul.f32 %v7668_v17, %v5674_v12 }
 0x21a   :  { %7767 = vst [vmem:[#allocation18_spill] sm:$0xff] %v5991_v33  ;;  %3355 = vmatpush3.bf16.msra.mxu1 %v2430_v2  ;;  %v1750_v54 = vmul.f32 %v7669_v34, %v5684_v18  ;;  %v1282_v35 = vmul.f32 %v5991_v33, %v5982_v30  ;;  %vm734_vm2 = vcmp.ge.f32.partialorder %v5716_v0, 0.6  ;;  %vm737_vm3 = vcmp.ge.f32.partialorder %v5719_v63, 0.6  ;;  %v7788_v34 = vld [vmem:[#allocation65_spill] sm:$0xff] }
 0x21b   :  { %v1291_v50 = vsub.f32 %v1255_v13, %v1279_v1  ;;  %v7768_v46 = vmov 0   ;;  %v2171_v55 = vmul.f32 0.8333333, %v2159_v47  ;;  %v2444_v51 = vmul.f32 %v2168_v20, %v4720_v10 }
 0x21c   :  { %3074 = vmatprep.subr.bf16.mxu1 %v7768_v46  ;;  %vm746_vm4 = vcmp.lt.f32.partialorder %v5716_v0, 1.0  ;;  %vm749_vm5 = vcmp.lt.f32.partialorder %v5719_v63, 1.0  ;;  %v1294_v12 = vsub.f32 %v1258_v56, %v1282_v35  ;;  %v1310_v4 = vmul.f32 %v7769_v15, %v5739_v39 }
 0x21d   :  { %v6007_v18 = vmul.f32 2.5, %v1291_v50  ;;  %vm758_vm6 = vmand %vm734_vm2, %vm746_vm4  ;;  %v1313_v38 = vmul.f32 %v7770_v53, %v5747_v44  ;;  %3058 = vmatmul.mubr.bf16.vlgmr.msra.gmra.mrb[4].mxu1 %v3422_v49  ;;  %v2447_v21 = vmul.f32 %v2171_v55, %v4720_v10  ;;  %v6018_v58 = vadd.f32 -1.0, %v5716_v0  ;;  %v3427_v50 = vld [vmem:[#allocation6 + $0x20] ss:$16 sps:$4 sm:$0xff]  }
 0x21e   :  { %vm761_vm7 = vmand %vm737_vm3, %vm749_vm5  ;;  %v6015_v11 = vsel %vm758_vm6, 1.0, %v7363_v41  ;;  %v6021_v13 = vadd.f32 -1.0, %v5719_v63  ;;  %3065 = vmatprep.mubr.bf16.mxu1 %v3425_v59  ;;  %v6023_v61 = vmul.f32 2.5, %v1294_v12  ;;  %v2131_v44 = vmul.f32 %v4655_v7, %v5708_v23  ;;  %v7775_v23 = vld [vmem:[#allocation94_spill] sm:$0xff]  ;;  %v7776_v59 = vld [vmem:[#allocation28_spill] sm:$0xff] }
 0x21f   :  { %7771 = vst [vmem:[#allocation23_spill] sm:$0xff] %v6015_v11  ;;  %7772 = vst [vmem:[#allocation12_spill] sm:$0xff] %v6018_v58  ;;  %v1759_v39 = vmul.f32 %v5977_v60, %v6007_v18  ;;  %v6030_v26 = vsel %vm761_vm7, 1.0, %v7363_v41  ;;  %v2453_v2 = vpack.c.bf16 %v2447_v21, %v2444_v51  ;;  %v2134_v56 = vmul.f32 %v4658_v24, %v5722_v8  ;;  %v7777_v8 = vld [vmem:[#allocation75_spill] sm:$0xff]  ;;  %v7778_v51 = vld [vmem:[#allocation76_spill] sm:$0xff] }
 0x220   :  { %7773 = vst [vmem:[#allocation25_spill] sm:$0xff] %v6021_v13  ;;  %7774 = vst [vmem:[#allocation41_spill] sm:$0xff] %v6030_v26  ;;  %v1334_v1 = vmul.f32 %v6018_v58, %v6015_v11  ;;  %v1337_v49 = vmul.f32 %v6021_v13, %v6030_v26  ;;  %v1762_v47 = vmul.f32 %v5991_v33, %v6023_v61  ;;  %vm879_vm8 = vcmp.ge.f32.partialorder %v7777_v8, 1.8  ;;  %v7787_v53 = vld [vmem:[#allocation108_spill] sm:$0xff] }
 0x221   :  { %v1771_v20 = vsub.f32 %v1747_v9, %v1759_v39  ;;  %v1790_v7 = vmul.f32 %v7687_v3, %v5770_v5  ;;  %v1793_v35 = vmul.f32 %v7776_v59, %v7775_v23  ;;  %2937 = vmatprep.subr.bf16.mxu0 %v2453_v2  ;;  %vm882_vm9 = vcmp.ge.f32.partialorder %v7778_v51, 1.8  ;;  %v7781_v2 = vld [vmem:[#allocation86_spill] sm:$0xff]  ;;  %v7786_v3 = vld [vmem:[#allocation83_spill] sm:$0xff]  ;;  %v7790_v11 = vld [vmem:[#allocation32_spill] sm:$0xff] }
 0x222   :  { %v1346_v55 = vsub.f32 %v1310_v4, %v1334_v1  ;;  %v1349_v24 = vsub.f32 %v1313_v38, %v1337_v49  ;;  %v1774_v12 = vsub.f32 %v1750_v54, %v1762_v47  ;;  %vm891_vm10 = vcmp.lt.f32.partialorder %v7777_v8, 2.2  ;;  %v7782_v1 = vld [vmem:[#allocation20_spill] sm:$0xff] }
 0x223   :  { %v6046_v21 = vmul.f32 1.25, %v1771_v20  ;;  %vm894_vm11 = vcmp.lt.f32.partialorder %v7778_v51, 2.2  ;;  %vm903_vm12 = vmand %vm879_vm8, %vm891_vm10  ;;  %v3301_v39 = vadd.f32 -2.2, %v7777_v8  ;;  %v2174_v49 = vmul.f32 %v7782_v1, %v7781_v2 }
 0x224   :  { %v6050_v9 = vmul.f32 2.5, %v1346_v55  ;;  %v6052_v5 = vmul.f32 2.5, %v1349_v24  ;;  %v3304_v4 = vadd.f32 -2.2, %v7778_v51  ;;  %v6056_v38 = vmul.f32 1.25, %v1774_v12  ;;  %vm906_vm13 = vmand %vm882_vm9, %vm894_vm11  ;;  %v7783_v12 = vld [vmem:[#allocation87_spill] sm:$0xff] }
 0x225   :  { %v2143_v54 = vmul.f32 %v5977_v60, %v6046_v21  ;;  %v915_v47 = vsel %vm903_vm12, 1.0, %v7363_v41  ;;  %3066 = vmatmul.mubr.bf16.gmra.mrb[8].mxu1 %v3427_v50  ;;  %v918_v55 = vsel %vm906_vm13, 1.0, %v7363_v41  ;;  %v7784_v60 = vld [vmem:[#allocation21_spill] sm:$0xff]  ;;  %v7785_v50 = vld [vmem:[#allocation82_spill] sm:$0xff]  ;;  %v1935_v15 = vmul.f32 %v7787_v53, %v7786_v3 }
 0x226   :  { %7779 = vst [vmem:[#allocation43_spill] sm:$0xff] %v6050_v9  ;;  %7780 = vst [vmem:[#allocation22_spill] sm:$0xff] %v6052_v5  ;;  %v1802_v20 = vmul.f32 %v6018_v58, %v6050_v9  ;;  %v1805_v23 = vmul.f32 %v6021_v13, %v6052_v5  ;;  %v1515_v24 = vmul.f32 %v3301_v39, %v915_v47  ;;  %v7789_v47 = vld [vmem:[#allocation68_spill] sm:$0xff]  ;;  %vm740_vm4 = vcmp.ge.f32.partialorder %v7745_v57, 0.6 }
 0x227   :  { %v2146_v8 = vmul.f32 %v5991_v33, %v6056_v38  ;;  %v2155_v51 = vsub.f32 %v2131_v44, %v2143_v54  ;;  %v2177_v2 = vmul.f32 %v7784_v60, %v7783_v12  ;;  %v1518_v1 = vmul.f32 %v3304_v4, %v918_v55  ;;  %v7791_v54 = vld [vmem:[#allocation84_spill] sm:$0xff]  ;;  %v7795_v55 = vld [vmem:[#allocation73_spill] sm:$0xff] }
 0x228   :  { %v1814_v45 = vsub.f32 %v1790_v7, %v1802_v20  ;;  %v1817_v22 = vsub.f32 %v1793_v35, %v1805_v23  ;;  %v1527_v59 = vsub.f32 %v7785_v50, %v1515_v24  ;;  %v1938_v17 = vmul.f32 %v7790_v11, %v7789_v47  ;;  %v7792_v23 = vld [vmem:[#allocation96_spill] sm:$0xff]  ;;  %v7793_v11 = vld [vmem:[#allocation85_spill] sm:$0xff] }
 0x229   :  { %v2158_v9 = vsub.f32 %v2134_v56, %v2146_v8  ;;  %v2167_v5 = vmul.f32 0.8333333, %v2155_v51  ;;  %v1530_v26 = vsub.f32 %v7788_v34, %v1518_v1  ;;  %vm733_vm14 = vcmp.ge.f32.partialorder %v7791_v54, 0.6  ;;  %v7794_v56 = vld [vmem:[#allocation35_spill] sm:$0xff]  ;;  %v7796_v24 = vld [vmem:[#allocation37_spill] sm:$0xff] }
 0x22a   :  { %v6078_v33 = vmul.f32 1.25, %v1814_v45  ;;  %v6080_v44 = vmul.f32 1.25, %v1817_v22  ;;  %v1539_v60 = vmul.f32 2.5, %v1527_v59  ;;  %vm736_vm15 = vcmp.ge.f32.partialorder %v7792_v23, 0.6 }
 0x22b   :  { %v2170_v7 = vmul.f32 0.8333333, %v2158_v9  ;;  %v2443_v35 = vmul.f32 %v2167_v5, %v4706_v62  ;;  %v1542_v20 = vmul.f32 2.5, %v1530_v26  ;;  %vm745_vm0 = vcmp.lt.f32.partialorder %v7791_v54, 1.0 }
 0x22c   :  { %v2186_v3 = vmul.f32 %v6018_v58, %v6078_v33  ;;  %v2189_v34 = vmul.f32 %v6021_v13, %v6080_v44  ;;  %v1947_v53 = vmul.f32 %v3301_v39, %v1539_v60  ;;  %v2319_v59 = vmul.f32 %v7794_v56, %v7793_v11  ;;  %vm757_vm2 = vmand %vm733_vm14, %vm745_vm0 }
 0x22d   :  { %v2446_v45 = vmul.f32 %v2170_v7, %v4706_v62  ;;  %v1950_v22 = vmul.f32 %v3304_v4, %v1542_v20  ;;  %vm748_vm1 = vcmp.lt.f32.partialorder %v7792_v23, 1.0  ;;  %v1309_v8 = vmul.f32 %v7796_v24, %v7795_v55  ;;  %v7804_v55 = vld [vmem:[#allocation47_spill] sm:$0xff] }
 0x22e   :  { %v2198_v26 = vsub.f32 %v2174_v49, %v2186_v3  ;;  %v2201_v9 = vsub.f32 %v2177_v2, %v2189_v34  ;;  %v1959_v5 = vsub.f32 %v1935_v15, %v1947_v53  ;;  %vm760_vm3 = vmand %vm736_vm15, %vm748_vm1  ;;  %v6097_v1 = vsel %vm757_vm2, 1.0, %v7363_v41  ;;  %v7798_v49 = vld [vmem:[#allocation91_spill] sm:$0xff]  ;;  %v7799_v2 = vld [vmem:[#allocation36_spill] sm:$0xff] }
 0x22f   :  { %v2452_v51 = vpack.c.bf16 %v2446_v45, %v2443_v35  ;;  %v1962_v12 = vsub.f32 %v1938_v17, %v1950_v22  ;;  %v6100_v50 = vsel %vm760_vm3, 1.0, %v7363_v41  ;;  %v6103_v20 = vadd.f32 -1.0, %v7791_v54  ;;  %v7800_v34 = vld [vmem:[#allocation74_spill] sm:$0xff] }
 0x230   :  { %v2210_v47 = vmul.f32 0.8333333, %v2198_v26  ;;  %v2213_v60 = vmul.f32 0.8333333, %v2201_v9  ;;  %v1971_v7 = vmul.f32 1.25, %v1959_v5  ;;  %v2322_v3 = vmul.f32 %v7799_v2, %v7798_v49  ;;  %v7801_v35 = vld [vmem:[#allocation38_spill] sm:$0xff] }
 0x231   :  { %7797 = vst [vmem:[#allocation17_spill] sm:$0xff] %v6103_v20  ;;  %2938 = vmatpush1.bf16.msra.mxu0 %v2452_v51  ;;  %v1974_v15 = vmul.f32 1.25, %v1962_v12  ;;  %v1312_v17 = vmul.f32 %v7801_v35, %v7800_v34  ;;  %v6110_v53 = vadd.f32 -1.0, %v7792_v23  ;;  %v1333_v56 = vmul.f32 %v6103_v20, %v6097_v1  ;;  %v7803_v5 = vld [vmem:[#allocation30_spill] sm:$0xff]  ;;  %v7805_v12 = vld [vmem:[#allocation33_spill] sm:$0xff] }
 0x232   :  { %v2462_v45 = vmul.f32 %v2210_v47, %v4720_v10  ;;  %v2465_v22 = vmul.f32 %v2213_v60, %v4720_v10  ;;  %v2331_v11 = vmul.f32 %v3301_v39, %v1971_v7  ;;  %v1789_v51 = vmul.f32 %v7804_v55, %v7803_v5  ;;  %v7806_v49 = vld [vmem:[#allocation109_spill] sm:$0xff]  ;;  %v7807_v60 = vld [vmem:[#allocation26_spill] sm:$0xff] }
 0x233   :  { %7802 = vst [vmem:[#allocation13_spill] sm:$0xff] %v6110_v53  ;;  %v2334_v26 = vmul.f32 %v3304_v4, %v1974_v15  ;;  %v1336_v9 = vmul.f32 %v6110_v53, %v6100_v50  ;;  %v1792_v2 = vmul.f32 %v7806_v49, %v7805_v12  ;;  %v1345_v58 = vsub.f32 %v1309_v8, %v1333_v56  ;;  %v7808_v15 = vld [vmem:[#allocation31_spill] sm:$0xff]  ;;  %v7809_v5 = vld [vmem:[#allocation54_spill] sm:$0xff] }
 0x234   :  { %v2474_v34 = vpack.c.bf16 %v2465_v22, %v2462_v45  ;;  %v2343_v13 = vsub.f32 %v2319_v59, %v2331_v11  ;;  %vm743_vm5 = vcmp.ge.f32.partialorder %v7807_v60, 0.6  ;;  %vm752_vm6 = vcmp.lt.f32.partialorder %v7745_v57, 1.0 }
 0x235   :  { %v2346_v47 = vsub.f32 %v2322_v3, %v2334_v26  ;;  %v1348_v39 = vsub.f32 %v1312_v17, %v1336_v9  ;;  %v6125_v7 = vmul.f32 2.5, %v1345_v58  ;;  %v2173_v55 = vmul.f32 %v7809_v5, %v7808_v15  ;;  %vm764_vm8 = vmand %vm740_vm4, %vm752_vm6  ;;  %v7810_v17 = vld [vmem:[#allocation67_spill] sm:$0xff]  ;;  %v7812_v9 = vld [vmem:[#allocation49_spill] sm:$0xff] }
 0x236   :  { %2939 = vmatprep.subr.bf16.mxu0 %v2474_v34  ;;  %v2355_v4 = vmul.f32 0.8333333, %v2343_v13  ;;  %vm755_vm7 = vcmp.lt.f32.partialorder %v7807_v60, 1.0  ;;  %v6133_v3 = vsel %vm764_vm8, 1.0, %v7363_v41  ;;  %v1316_v45 = vmul.f32 %v7810_v17, %v5894_v52 }
 0x237   :  { %v2358_v59 = vmul.f32 0.8333333, %v2346_v47  ;;  %v6130_v8 = vmul.f32 2.5, %v1348_v39  ;;  %vm767_vm9 = vmand %vm743_vm5, %vm755_vm7  ;;  %v1801_v58 = vmul.f32 %v6103_v20, %v6125_v7  ;;  %v6144_v11 = vadd.f32 -1.0, %v7745_v57  ;;  %v7814_v47 = vld [vmem:[#allocation40_spill] sm:$0xff]  ;;  %v7815_v39 = vld [vmem:[#allocation55_spill] sm:$0xff] }
 0x238   :  { %v2535_v13 = vmul.f32 %v2355_v4, %v4763_v32  ;;  %v6141_v22 = vsel %vm767_vm9, 1.0, %v7363_v41  ;;  %v1319_v12 = vmul.f32 %v7812_v9, %v5906_v31  ;;  %v6152_v52 = vadd.f32 -1.0, %v7807_v60  ;;  %v7816_v57 = vld [vmem:[#allocation63_spill] sm:$0xff]  ;;  %v7817_v31 = vld [vmem:[#allocation64_spill] sm:$0xff] }
 0x239   :  { %7811 = vst [vmem:[#allocation24_spill] sm:$0xff] %v6144_v11  ;;  %v2538_v56 = vmul.f32 %v2358_v59, %v4763_v32  ;;  %v1804_v26 = vmul.f32 %v6110_v53, %v6130_v8  ;;  %v1813_v34 = vsub.f32 %v1789_v51, %v1801_v58  ;;  %v2176_v4 = vmul.f32 %v7815_v39, %v7814_v47  ;;  %v6166_v58 = vld [vmem:[#allocation3 + $0x40] sm:$0xff]  ;;  %v6169_v47 = vld [vmem:[#allocation3 + $0x58] sm:$0xff] }
 0x23a   :  { %7813 = vst [vmem:[#allocation46_spill] sm:$0xff] %v6152_v52  ;;  %v1340_v15 = vmul.f32 %v6144_v11, %v6133_v3  ;;  %v1796_v5 = vmul.f32 %v7816_v57, %v5928_v40  ;;  %v1343_v49 = vmul.f32 %v6152_v52, %v6141_v22  ;;  %v1799_v9 = vmul.f32 %v7817_v31, %v5937_v48  ;;  %v7824_v31 = vld [vmem:[#allocation95_spill] sm:$0xff] }
 0x23b   :  { %v2547_v59 = vpack.c.bf16 %v2538_v56, %v2535_v13  ;;  %v1816_v17 = vsub.f32 %v1792_v2, %v1804_v26  ;;  %v6164_v60 = vmul.f32 1.25, %v1813_v34  ;;  %7819 = vst [vmem:[#allocation97_spill] sm:$0xff] %v6166_v58  ;;  %vm885_vm10 = vcmp.ge.f32.partialorder %v6166_v58, 1.8  ;;  %7820 = vst [vmem:[#allocation98_spill] sm:$0xff] %v6169_v47 }
 0x23c   :  { %v1352_v51 = vsub.f32 %v1316_v45, %v1340_v15  ;;  %vm888_vm11 = vcmp.ge.f32.partialorder %v6169_v47, 1.8  ;;  %v1355_v2 = vsub.f32 %v1319_v12, %v1343_v49  ;;  %vm897_vm12 = vcmp.lt.f32.partialorder %v6166_v58, 2.2 }
 0x23d   :  { %7818 = vst [vmem:[#allocation14_spill] sm:$0xff] %v6164_v60  ;;  %3075 = vmatpush1.bf16.msra.mxu1 %v2547_v59  ;;  %v6172_v40 = vmul.f32 1.25, %v1816_v17  ;;  %vm900_vm13 = vcmp.lt.f32.partialorder %v6169_v47, 2.2  ;;  %v2185_v48 = vmul.f32 %v6103_v20, %v6164_v60  ;;  %vm909_vm14 = vmand %vm885_vm10, %vm897_vm12  ;;  %v3307_v13 = vadd.f32 -2.2, %v6166_v58 }
 0x23e   :  { %v6178_v45 = vmul.f32 2.5, %v1352_v51  ;;  %3076 = vmatprep.subr.bf16.mxu1 %v7768_v46  ;;  %v3310_v56 = vadd.f32 -2.2, %v6169_v47  ;;  %v6185_v49 = vmul.f32 2.5, %v1355_v2  ;;  %v2180_v26 = vmul.f32 %v7758_v37, %v5955_v25  ;;  %vm912_vm15 = vmand %vm888_vm11, %vm900_vm13  ;;  %v7825_v47 = vld [vmem:[#allocation34_spill] sm:$0xff] }
 0x23f   :  { %7821 = vst [vmem:[#allocation110_spill] sm:$0xff] %v6172_v40  ;;  %v2188_v17 = vmul.f32 %v6110_v53, %v6172_v40  ;;  %v921_v12 = vsel %vm909_vm14, 1.0, %v7363_v41  ;;  %v2197_v34 = vsub.f32 %v2173_v55, %v2185_v48  ;;  %v924_v15 = vsel %vm912_vm15, 1.0, %v7363_v41  ;;  %v7826_v55 = vld [vmem:[#allocation50_spill] sm:$0xff] }
 0x240   :  { %7822 = vst [vmem:[#allocation27_spill] sm:$0xff] %v6178_v45  ;;  %7823 = vst [vmem:[#allocation45_spill] sm:$0xff] %v6185_v49  ;;  %v1808_v39 = vmul.f32 %v6144_v11, %v6178_v45  ;;  %v1521_v59 = vmul.f32 %v3307_v13, %v921_v12  ;;  %v1811_v2 = vmul.f32 %v6152_v52, %v6185_v49  ;;  %v7827_v12 = vld [vmem:[#allocation44_spill] sm:$0xff]  ;;  %vm739_vm0 = vcmp.ge.f32.partialorder %v5945_v6, 0.6 }
 0x241   :  { %v2200_v51 = vsub.f32 %v2176_v4, %v2188_v17  ;;  %v2183_v53 = vmul.f32 %v7759_v29, %v5961_v16  ;;  %v1524_v37 = vmul.f32 %v3310_v56, %v924_v15  ;;  %v2209_v25 = vmul.f32 0.8333333, %v2197_v34  ;;  %v7828_v4 = vld [vmem:[#allocation51_spill] sm:$0xff] }
 0x242   :  { %v1820_v20 = vsub.f32 %v1796_v5, %v1808_v39  ;;  %v1533_v57 = vsub.f32 %v7824_v31, %v1521_v59  ;;  %v1941_v48 = vmul.f32 %v7826_v55, %v7825_v47  ;;  %v1823_v45 = vsub.f32 %v1799_v9, %v1811_v2  ;;  %v7830_v15 = vld [vmem:[#allocation59_spill] sm:$0xff] }
 0x243   :  { %v2212_v58 = vmul.f32 0.8333333, %v2200_v51  ;;  %v1536_v40 = vsub.f32 %v5986_v43, %v1524_v37  ;;  %v1944_v17 = vmul.f32 %v7828_v4, %v7827_v12  ;;  %v2461_v49 = vmul.f32 %v2209_v25, %v4706_v62 }
 0x244   :  { %v6206_v60 = vmul.f32 1.25, %v1820_v20  ;;  %v1545_v29 = vmul.f32 2.5, %v1533_v57  ;;  %v6210_v5 = vmul.f32 1.25, %v1823_v45  ;;  %vm742_vm1 = vcmp.ge.f32.partialorder %v5952_v14, 0.6 }
 0x245   :  { %v2464_v16 = vmul.f32 %v2212_v58, %v4706_v62  ;;  %v1548_v31 = vmul.f32 2.5, %v1536_v40  ;;  %vm751_vm2 = vcmp.lt.f32.partialorder %v5945_v6, 1.0  ;;  %vm754_vm3 = vcmp.lt.f32.partialorder %v5952_v14, 1.0  ;;  %v7829_v58 = vld [vmem:[#allocation71_spill] sm:$0xff] }
 0x246   :  { %v2192_v43 = vmul.f32 %v6144_v11, %v6206_v60  ;;  %v1953_v9 = vmul.f32 %v3307_v13, %v1545_v29  ;;  %v2195_v57 = vmul.f32 %v6152_v52, %v6210_v5  ;;  %v2325_v45 = vmul.f32 %v7829_v58, %v5921_v36  ;;  %vm763_vm4 = vmand %vm739_vm0, %vm751_vm2 }
 0x247   :  { %v2473_v20 = vpack.c.bf16 %v2464_v16, %v2461_v49  ;;  %v1956_v47 = vmul.f32 %v3310_v56, %v1548_v31  ;;  %vm766_vm5 = vmand %vm742_vm1, %vm754_vm3  ;;  %v6222_v39 = vsel %vm763_vm4, 1.0, %v7363_v41  ;;  %v1315_v59 = vmul.f32 %v7830_v15, %v5972_v19  ;;  %v7834_v19 = vld [vmem:[#allocation72_spill] sm:$0xff] }
 0x248   :  { %v2204_v40 = vsub.f32 %v2180_v26, %v2192_v43  ;;  %v1965_v34 = vsub.f32 %v1941_v48, %v1953_v9  ;;  %v2207_v51 = vsub.f32 %v2183_v53, %v2195_v57  ;;  %v6227_v2 = vsel %vm766_vm5, 1.0, %v7363_v41  ;;  %v7832_v26 = vld [vmem:[#allocation60_spill] sm:$0xff] }
 0x249   :  { %2940 = vmatpush1.bf16.msra.mxu0 %v2473_v20  ;;  %v1968_v49 = vsub.f32 %v1944_v17, %v1956_v47  ;;  %v6230_v37 = vadd.f32 -1.0, %v5945_v6  ;;  %v1318_v55 = vmul.f32 %v7832_v26, %v5982_v30  ;;  %v6235_v48 = vadd.f32 -1.0, %v5952_v14 }
 0x24a   :  { %v2216_v36 = vmul.f32 0.8333333, %v2204_v40  ;;  %v1977_v25 = vmul.f32 1.25, %v1965_v34  ;;  %v2219_v12 = vmul.f32 0.8333333, %v2207_v51  ;;  %v2328_v53 = vmul.f32 %v7834_v19, %v5923_v27 }
 0x24b   :  { %7831 = vst [vmem:[#allocation52_spill] sm:$0xff] %v6230_v37  ;;  %7833 = vst [vmem:[#allocation58_spill] sm:$0xff] %v6235_v48  ;;  %v1980_v4 = vmul.f32 1.25, %v1968_v49  ;;  %v1339_v17 = vmul.f32 %v6230_v37, %v6222_v39  ;;  %v1342_v31 = vmul.f32 %v6235_v48, %v6227_v2  ;;  %v1795_v30 = vmul.f32 %v7764_v28, %v6007_v18  ;;  %v7836_v49 = vld [vmem:[#allocation23_spill] sm:$0xff] }
 0x24c   :  { %v2468_v29 = vmul.f32 %v2216_v36, %v4720_v10  ;;  %v2337_v16 = vmul.f32 %v3307_v13, %v1977_v25  ;;  %v2471_v43 = vmul.f32 %v2219_v12, %v4720_v10  ;;  %v1798_v57 = vmul.f32 %v7766_v42, %v6023_v61  ;;  %v7837_v36 = vld [vmem:[#allocation80_spill] sm:$0xff] }
 0x24d   :  { %v2340_v9 = vmul.f32 %v3310_v56, %v1980_v4  ;;  %v1351_v20 = vsub.f32 %v1315_v59, %v1339_v17  ;;  %v1354_v47 = vsub.f32 %v1318_v55, %v1342_v31  ;;  %vm782_vm6 = vcmp.ge.f32.partialorder %v5716_v0, 1.0  ;;  %v7835_v56 = vld [vmem:[#allocation100_spill] sm:$0xff]  ;;  %v7839_v17 = vld [vmem:[#allocation41_spill] sm:$0xff] }
 0x24e   :  { %v2349_v27 = vsub.f32 %v2325_v45, %v2337_v16  ;;  %vm785_vm7 = vcmp.ge.f32.partialorder %v5719_v63, 1.0  ;;  %v2477_v13 = vpack.c.bf16 %v2471_v43, %v2468_v29  ;;  %vm794_vm8 = vcmp.lt.f32.partialorder %v5716_v0, 1.4  ;;  %v7840_v29 = vld [vmem:[#allocation81_spill] sm:$0xff] }
 0x24f   :  { %v2352_v58 = vsub.f32 %v2328_v53, %v2340_v9  ;;  %v6251_v40 = vmul.f32 2.5, %v1351_v20  ;;  %v6254_v34 = vmul.f32 2.5, %v1354_v47  ;;  %v2179_v59 = vmul.f32 %v7835_v56, %v6046_v21  ;;  %vm806_vm10 = vmand %vm782_vm6, %vm794_vm8  ;;  %v7842_v9 = vld [vmem:[#allocation101_spill] sm:$0xff]  ;;  %v7843_v47 = vld [vmem:[#allocation43_spill] sm:$0xff] }
 0x250   :  { %v2361_v18 = vmul.f32 0.8333333, %v2349_v27  ;;  %vm797_vm9 = vcmp.lt.f32.partialorder %v5719_v63, 1.4  ;;  %2941 = vmatprep.subr.bf16.mxu0 %v2477_v13  ;;  %v6262_v51 = vsel %vm806_vm10, 1.0, %v7363_v41  ;;  %v1370_v25 = vmul.f32 %v7837_v36, %v7836_v49  ;;  %v7844_v13 = vld [vmem:[#allocation99_spill] sm:$0xff] }
 0x251   :  { %v2364_v61 = vmul.f32 0.8333333, %v2352_v58  ;;  %v1807_v45 = vmul.f32 %v6230_v37, %v6251_v40  ;;  %vm809_vm11 = vmand %vm785_vm7, %vm797_vm9  ;;  %v1810_v21 = vmul.f32 %v6235_v48, %v6254_v34  ;;  %v6273_v4 = vadd.f32 -1.4, %v5716_v0  ;;  %v7846_v56 = vld [vmem:[#allocation39_spill] sm:$0xff] }
 0x252   :  { %v2541_v55 = vmul.f32 %v2361_v18, %v4763_v32  ;;  %v6270_v12 = vsel %vm809_vm11, 1.0, %v7363_v41  ;;  %v1373_v16 = vmul.f32 %v7840_v29, %v7839_v17  ;;  %v6279_v31 = vadd.f32 -1.4, %v5719_v63 }
 0x253   :  { %7838 = vst [vmem:[#allocation53_spill] sm:$0xff] %v6273_v4  ;;  %v2544_v19 = vmul.f32 %v2364_v61, %v4763_v32  ;;  %v1819_v53 = vsub.f32 %v1795_v30, %v1807_v45  ;;  %v1822_v43 = vsub.f32 %v1798_v57, %v1810_v21  ;;  %v2182_v20 = vmul.f32 %v7842_v9, %v6056_v38  ;;  %v7845_v30 = vld [vmem:[#allocation22_spill] sm:$0xff]  ;;  %v7848_v38 = vld [vmem:[#allocation107_spill] sm:$0xff]  ;;  %v6299_v21 = vld [vmem:[#allocation3 + $0x28] sm:$0xff] }
 0x254   :  { %7841 = vst [vmem:[#allocation57_spill] sm:$0xff] %v6279_v31  ;;  %v1394_v27 = vmul.f32 %v6273_v4, %v6262_v51  ;;  %v1838_v0 = vmul.f32 %v7844_v13, %v7843_v47  ;;  %v1397_v32 = vmul.f32 %v6279_v31, %v6270_v12  ;;  %v1841_v63 = vmul.f32 %v7846_v56, %v7845_v30  ;;  %v6295_v45 = vld [vmem:[#allocation3 + $0x10] sm:$0xff] }
 0x255   :  { %v2550_v58 = vpack.c.bf16 %v2544_v19, %v2541_v55  ;;  %v6287_v18 = vmul.f32 1.25, %v1819_v53  ;;  %v6293_v61 = vmul.f32 1.25, %v1822_v43  ;;  %7847 = vst [vmem:[#allocation48_spill] sm:$0xff] %v6295_v45  ;;  %v2571_v49 = vmul.f32 %v6295_v45, %v7848_v38  ;;  %7849 = vst [vmem:[#allocation69_spill] sm:$0xff] %v6299_v21  ;;  %v7850_v43 = vld [vmem:[#allocation42_spill] sm:$0xff] }
 0x256   :  { %v1406_v57 = vsub.f32 %v1370_v25, %v1394_v27  ;;  %v2574_v55 = vmul.f32 %v6299_v21, %v7848_v38  ;;  %v1409_v53 = vsub.f32 %v1373_v16, %v1397_v32  ;;  %vm781_vm12 = vcmp.ge.f32.partialorder %v7791_v54, 1.0 }
 0x257   :  { %3077 = vmatpush1.bf16.msra.mxu1 %v2550_v58  ;;  %v2191_v19 = vmul.f32 %v6230_v37, %v6287_v18  ;;  %vm784_vm13 = vcmp.ge.f32.partialorder %v7792_v23, 1.0  ;;  %v2194_v25 = vmul.f32 %v6235_v48, %v6293_v61  ;;  %v2222_v9 = vmul.f32 %v7850_v43, %v6078_v33  ;;  %v7851_v33 = vld [vmem:[#allocation62_spill] sm:$0xff] }
 0x258   :  { %v6309_v17 = vmul.f32 2.5, %v1406_v57  ;;  %3078 = vmatprep.subr.bf16.mxu1 %v7768_v46  ;;  %vm793_vm14 = vcmp.lt.f32.partialorder %v7791_v54, 1.4  ;;  %v6315_v47 = vmul.f32 2.5, %v1409_v53  ;;  %v2583_v16 = vpack.c.bf16 %v2574_v55, %v2571_v49  ;;  %v7852_v53 = vld [vmem:[#allocation77_spill] sm:$0xff] }
 0x259   :  { %v2203_v27 = vsub.f32 %v2179_v59, %v2191_v19  ;;  %vm796_vm15 = vcmp.lt.f32.partialorder %v7792_v23, 1.4  ;;  %vm805_vm0 = vmand %vm781_vm12, %vm793_vm14  ;;  %v2206_v58 = vsub.f32 %v2182_v20, %v2194_v25  ;;  %v1369_v57 = vmul.f32 %v7851_v33, %v6097_v1 }
 0x25a   :  { %v1850_v32 = vmul.f32 %v6273_v4, %v6309_v17  ;;  %vm808_vm1 = vmand %vm784_vm13, %vm796_vm15  ;;  %v6321_v30 = vsel %vm805_vm0, 1.0, %v7363_v41  ;;  %v1853_v59 = vmul.f32 %v6279_v31, %v6315_v47  ;;  %v6331_v20 = vadd.f32 -1.4, %v7791_v54 }
 0x25b   :  { %v2215_v43 = vmul.f32 0.8333333, %v2203_v27  ;;  %3079 = vmatpush1.bf16.msra.mxu1 %v2583_v16  ;;  %v6328_v49 = vsel %vm808_vm1, 1.0, %v7363_v41  ;;  %v2218_v55 = vmul.f32 0.8333333, %v2206_v58  ;;  %v1372_v25 = vmul.f32 %v7852_v53, %v6100_v50  ;;  %v7853_v16 = vld [vmem:[#allocation28_spill] sm:$0xff] }
 0x25c   :  { %v1862_v19 = vsub.f32 %v1838_v0, %v1850_v32  ;;  %v6336_v21 = vadd.f32 -1.4, %v7792_v23  ;;  %3080 = vmatprep.subr.bf16.mxu1 %v7768_v46  ;;  %v1865_v27 = vsub.f32 %v1841_v63, %v1853_v59  ;;  %v2225_v45 = vmul.f32 %v7853_v16, %v6080_v44  ;;  %v6355_v44 = vld [vmem:[#allocation3 + $0x38] sm:$0xff]  ;;  %v6360_v16 = vld [vmem:[#allocation3 + $0x50] sm:$0xff] }
 0x25d   :  { %v2467_v1 = vmul.f32 %v2215_v43, %v4706_v62  ;;  %v1393_v54 = vmul.f32 %v6331_v20, %v6321_v30  ;;  %v2470_v58 = vmul.f32 %v2218_v55, %v4706_v62  ;;  %v1837_v23 = vmul.f32 %v7796_v24, %v6125_v7  ;;  %7854 = vst [vmem:[#allocation15_spill] sm:$0xff] %v6355_v44 }
 0x25e   :  { %v6345_v0 = vmul.f32 1.25, %v1862_v19  ;;  %v1396_v50 = vmul.f32 %v6336_v21, %v6328_v49  ;;  %v6351_v32 = vmul.f32 1.25, %v1865_v27  ;;  %v1840_v63 = vmul.f32 %v7801_v35, %v6130_v8  ;;  %7855 = vst [vmem:[#allocation70_spill] sm:$0xff] %v6360_v16  ;;  %v7865_v35 = vld [vmem:[#allocation109_spill] sm:$0xff] }
 0x25f   :  { %v1405_v43 = vsub.f32 %v1369_v57, %v1393_v54  ;;  %vm788_vm2 = vcmp.ge.f32.partialorder %v6355_v44, 1.0  ;;  %v2476_v59 = vpack.c.bf16 %v2470_v58, %v2467_v1  ;;  %vm791_vm3 = vcmp.ge.f32.partialorder %v6360_v16, 1.0  ;;  %v7857_v54 = vld [vmem:[#allocation19_spill] sm:$0xff] }
 0x260   :  { %v2234_v55 = vmul.f32 %v6273_v4, %v6345_v0  ;;  %v1408_v19 = vsub.f32 %v1372_v25, %v1396_v50  ;;  %v2237_v7 = vmul.f32 %v6279_v31, %v6351_v32  ;;  %vm800_vm4 = vcmp.lt.f32.partialorder %v6355_v44, 1.4  ;;  %v7856_v25 = vld [vmem:[#allocation29_spill] sm:$0xff]  ;;  %v7863_v4 = vld [vmem:[#allocation47_spill] sm:$0xff] }
 0x261   :  { %v6365_v57 = vmul.f32 2.5, %v1405_v43  ;;  %vm803_vm5 = vcmp.lt.f32.partialorder %v6360_v16, 1.4  ;;  %2942 = vmatpush1.bf16.msra.mxu0 %v2476_v59  ;;  %vm812_vm6 = vmand %vm788_vm2, %vm800_vm4  ;;  %v1376_v27 = vmul.f32 %v7856_v25, %v6133_v3  ;;  %v1379_v58 = vmul.f32 %v7857_v54, %v6141_v22  ;;  %v7864_v25 = vld [vmem:[#allocation110_spill] sm:$0xff] }
 0x262   :  { %v2246_v8 = vsub.f32 %v2222_v9, %v2234_v55  ;;  %v6369_v1 = vmul.f32 2.5, %v1408_v19  ;;  %v2249_v50 = vsub.f32 %v2225_v45, %v2237_v7  ;;  %vm815_vm7 = vmand %vm791_vm3, %vm803_vm5  ;;  %v6378_v31 = vsel %vm812_vm6, 1.0, %v7363_v41  ;;  %v7862_v7 = vld [vmem:[#allocation14_spill] sm:$0xff] }
 0x263   :  { %v1849_v43 = vmul.f32 %v6331_v20, %v6365_v57  ;;  %7858 = vst [vmem:[#allocation56_spill] sm:$0xff] %v6378_v31  ;;  %v6381_v59 = vadd.f32 -1.4, %v6355_v44  ;;  %v6386_v3 = vsel %vm815_vm7, 1.0, %v7363_v41  ;;  %v6389_v22 = vadd.f32 -1.4, %v6360_v16 }
 0x264   :  { %v2258_v9 = vmul.f32 0.8333333, %v2246_v8  ;;  %v1852_v55 = vmul.f32 %v6336_v21, %v6369_v1  ;;  %7860 = vst [vmem:[#allocation92_spill] sm:$0xff] %v6386_v3  ;;  %v2261_v45 = vmul.f32 0.8333333, %v2249_v50  ;;  %v2221_v48 = vmul.f32 %v7863_v4, %v7862_v7  ;;  %v7866_v50 = vld [vmem:[#allocation27_spill] sm:$0xff] }
 0x265   :  { %7859 = vst [vmem:[#allocation66_spill] sm:$0xff] %v6381_v59  ;;  %7861 = vst [vmem:[#allocation93_spill] sm:$0xff] %v6389_v22  ;;  %v1861_v19 = vsub.f32 %v1837_v23, %v1849_v43  ;;  %v1400_v37 = vmul.f32 %v6381_v59, %v6378_v31  ;;  %v2224_v52 = vmul.f32 %v7865_v35, %v7864_v25  ;;  %v7867_v43 = vld [vmem:[#allocation67_spill] sm:$0xff]  ;;  %v7868_v44 = vld [vmem:[#allocation45_spill] sm:$0xff]  ;;  %vm787_vm8 = vcmp.ge.f32.partialorder %v5945_v6, 1.0 }
 0x266   :  { %v2486_v54 = vmul.f32 %v2258_v9, %v4720_v10  ;;  %v1864_v8 = vsub.f32 %v1840_v63, %v1852_v55  ;;  %v1403_v11 = vmul.f32 %v6389_v22, %v6386_v3  ;;  %v2489_v24 = vmul.f32 %v2261_v45, %v4720_v10  ;;  %v7869_v9 = vld [vmem:[#allocation49_spill] sm:$0xff] }
 0x267   :  { %v6401_v16 = vmul.f32 1.25, %v1861_v19  ;;  %v1412_v23 = vsub.f32 %v1376_v27, %v1400_v37  ;;  %v1844_v4 = vmul.f32 %v7867_v43, %v7866_v50  ;;  %v1847_v63 = vmul.f32 %v7869_v9, %v7868_v44  ;;  %v7870_v55 = vld [vmem:[#allocation97_spill] sm:$0xff]  ;;  %v7871_v37 = vld [vmem:[#allocation98_spill] sm:$0xff] }
 0x268   :  { %v6405_v7 = vmul.f32 1.25, %v1864_v8  ;;  %v1415_v31 = vsub.f32 %v1379_v58, %v1403_v11  ;;  %v2577_v35 = vmul.f32 %v7870_v55, %v7848_v38  ;;  %v2498_v25 = vpack.c.bf16 %v2489_v24, %v2486_v54 }
 0x269   :  { %v2233_v3 = vmul.f32 %v6331_v20, %v6401_v16  ;;  %v6413_v45 = vmul.f32 2.5, %v1412_v23  ;;  %v2580_v27 = vmul.f32 %v7871_v37, %v7848_v38  ;;  %vm790_vm9 = vcmp.ge.f32.partialorder %v5952_v14, 1.0  ;;  %v7872_v23 = vld [vmem:[#allocation63_spill] sm:$0xff]  ;;  %v6471_v38 = vld [vmem:[#allocation3 + $0x20] sm:$0xff] }
 0x26a   :  { %v2236_v19 = vmul.f32 %v6336_v21, %v6405_v7  ;;  %v6419_v8 = vmul.f32 2.5, %v1415_v31  ;;  %2943 = vmatprep.subr.bf16.mxu0 %v2498_v25  ;;  %vm799_vm10 = vcmp.lt.f32.partialorder %v5945_v6, 1.4  ;;  %v2228_v31 = vmul.f32 %v7872_v23, %v6206_v60  ;;  %7878 = vst [vmem:[#allocation79_spill] sm:$0xff] %v6471_v38 }
 0x26b   :  { %v2245_v11 = vsub.f32 %v2221_v48, %v2233_v3  ;;  %v1856_v24 = vmul.f32 %v6381_v59, %v6413_v45  ;;  %v2586_v44 = vpack.c.bf16 %v2580_v27, %v2577_v35  ;;  %vm802_vm11 = vcmp.lt.f32.partialorder %v5952_v14, 1.4  ;;  %vm811_vm12 = vmand %vm787_vm8, %vm799_vm10  ;;  %v7873_v3 = vld [vmem:[#allocation16_spill] sm:$0xff] }
 0x26c   :  { %v2248_v54 = vsub.f32 %v2224_v52, %v2236_v19  ;;  %v1859_v58 = vmul.f32 %v6389_v22, %v6419_v8  ;;  %vm814_vm13 = vmand %vm790_vm9, %vm802_vm11  ;;  %v6432_v48 = vsel %vm811_vm12, 1.0, %v7363_v41  ;;  %v1375_v35 = vmul.f32 %v7873_v3, %v6222_v39  ;;  %v7875_v19 = vld [vmem:[#allocation18_spill] sm:$0xff] }
 0x26d   :  { %v2257_v50 = vmul.f32 0.8333333, %v2245_v11  ;;  %v1868_v55 = vsub.f32 %v1844_v4, %v1856_v24  ;;  %3081 = vmatpush1.bf16.msra.mxu1 %v2586_v44  ;;  %v6437_v37 = vsel %vm814_vm13, 1.0, %v7363_v41  ;;  %v6440_v60 = vadd.f32 -1.4, %v5945_v6  ;;  %v7877_v44 = vld [vmem:[#allocation64_spill] sm:$0xff] }
 0x26e   :  { %v2260_v52 = vmul.f32 0.8333333, %v2248_v54  ;;  %v1871_v25 = vsub.f32 %v1847_v63, %v1859_v58  ;;  %3082 = vmatprep.subr.bf16.mxu1 %v7768_v46  ;;  %v1378_v11 = vmul.f32 %v7875_v19, %v6227_v2  ;;  %v6449_v24 = vadd.f32 -1.4, %v5952_v14 }
 0x26f   :  { %7874 = vst [vmem:[#allocation89_spill] sm:$0xff] %v6440_v60  ;;  %v2485_v4 = vmul.f32 %v2257_v50, %v4706_v62  ;;  %v6444_v27 = vmul.f32 1.25, %v1868_v55  ;;  %v2231_v6 = vmul.f32 %v7877_v44, %v6210_v5  ;;  %v1399_v54 = vmul.f32 %v6440_v60, %v6432_v48 }
 0x270   :  { %7876 = vst [vmem:[#allocation78_spill] sm:$0xff] %v6449_v24  ;;  %v2488_v39 = vmul.f32 %v2260_v52, %v4706_v62  ;;  %v6452_v63 = vmul.f32 1.25, %v1871_v25  ;;  %v1402_v23 = vmul.f32 %v6449_v24, %v6437_v37  ;;  %v1843_v14 = vmul.f32 %v7830_v15, %v6251_v40  ;;  %v6468_v52 = vld [vmem:[#allocation3 + $0x8] sm:$0xff] }
 0x271   :  { %v2240_v58 = vmul.f32 %v6381_v59, %v6444_v27  ;;  %v1846_v2 = vmul.f32 %v7832_v26, %v6254_v34  ;;  %v1411_v5 = vsub.f32 %v1375_v35, %v1399_v54  ;;  %vm830_vm14 = vcmp.ge.f32.partialorder %v6468_v52, 1.4 }
 0x272   :  { %v2497_v50 = vpack.c.bf16 %v2488_v39, %v2485_v4  ;;  %v2243_v55 = vmul.f32 %v6389_v22, %v6452_v63  ;;  %v1414_v44 = vsub.f32 %v1378_v11, %v1402_v23  ;;  %vm833_vm15 = vcmp.ge.f32.partialorder %v6471_v38, 1.4  ;;  %v7879_v11 = vld [vmem:[#allocation12_spill] sm:$0xff] }
 0x273   :  { %v2252_v25 = vsub.f32 %v2228_v31, %v2240_v58  ;;  %vm842_vm0 = vcmp.lt.f32.partialorder %v6468_v52, 1.8  ;;  %v6475_v34 = vmul.f32 2.5, %v1411_v5  ;;  %v2227_v4 = vmul.f32 %v7764_v28, %v6287_v18 }
 0x274   :  { %2944 = vmatpush1.bf16.msra.mxu0 %v2497_v50  ;;  %v2255_v40 = vsub.f32 %v2231_v6, %v2243_v55  ;;  %vm845_vm1 = vcmp.lt.f32.partialorder %v6471_v38, 1.8  ;;  %vm854_vm2 = vmand %vm830_vm14, %vm842_vm0  ;;  %v6480_v39 = vmul.f32 2.5, %v1414_v44  ;;  %v1430_v54 = vmul.f32 %v7879_v11, %v6262_v51  ;;  %v7880_v55 = vld [vmem:[#allocation25_spill] sm:$0xff] }
 0x275   :  { %v2264_v35 = vmul.f32 0.8333333, %v2252_v25  ;;  %vm857_vm3 = vmand %vm833_vm15, %vm845_vm1  ;;  %v6483_v31 = vsel %vm854_vm2, 1.0, %v7363_v41  ;;  %v1855_v6 = vmul.f32 %v6440_v60, %v6475_v34  ;;  %v3288_v28 = vadd.f32 -1.8, %v6468_v52 }
 0x276   :  { %v2267_v58 = vmul.f32 0.8333333, %v2255_v40  ;;  %v6490_v23 = vsel %vm857_vm3, 1.0, %v7363_v41  ;;  %v1858_v50 = vmul.f32 %v6449_v24, %v6480_v39  ;;  %v1433_v5 = vmul.f32 %v7880_v55, %v6270_v12 }
 0x277   :  { %v2492_v18 = vmul.f32 %v2264_v35, %v4720_v10  ;;  %v3291_v25 = vadd.f32 -1.8, %v6471_v38  ;;  %v1867_v44 = vsub.f32 %v1843_v14, %v1855_v6  ;;  %v2230_v40 = vmul.f32 %v7766_v42, %v6293_v61  ;;  %v6514_v61 = vld [vmem:[#allocation3] sm:$0xff] }
 0x278   :  { %v2495_v51 = vmul.f32 %v2267_v58, %v4720_v10  ;;  %v1454_v22 = vmul.f32 %v3288_v28, %v6483_v31  ;;  %v1870_v59 = vsub.f32 %v1846_v2, %v1858_v50  ;;  %v1886_v35 = vmul.f32 %v7837_v36, %v6309_v17  ;;  %v7881_v58 = vld [vmem:[#allocation106_spill] sm:$0xff]  ;;  %v6517_v2 = vld [vmem:[#allocation3 + $0x18] sm:$0xff] }
 0x279   :  { %v1457_v11 = vmul.f32 %v3291_v25, %v6490_v23  ;;  %v1889_v26 = vmul.f32 %v7840_v29, %v6315_v47  ;;  %v6508_v55 = vmul.f32 1.25, %v1867_v44  ;;  %v2607_v14 = vpack.c.bf16 %v7881_v58, %v7881_v58  ;;  %7882 = vst [vmem:[#allocation90_spill] sm:$0xff] %v6517_v2 }
 0x27a   :  { %v2501_v12 = vpack.c.bf16 %v2495_v51, %v2492_v18  ;;  %v1466_v38 = vsub.f32 %v1430_v54, %v1454_v22  ;;  %v6512_v6 = vmul.f32 1.25, %v1870_v59  ;;  %vm829_vm4 = vcmp.ge.f32.partialorder %v6514_v61, 1.4  ;;  %v7884_v18 = vld [vmem:[#allocation13_spill] sm:$0xff] }
 0x27b   :  { %v1469_v42 = vsub.f32 %v1433_v5, %v1457_v11  ;;  %vm832_vm5 = vcmp.ge.f32.partialorder %v6517_v2, 1.4  ;;  %v2239_v17 = vmul.f32 %v6440_v60, %v6508_v55  ;;  %3083 = vmatpush1.bf16.msra.mxu1 %v2607_v14  ;;  %vm841_vm6 = vcmp.lt.f32.partialorder %v6514_v61, 1.8  ;;  %v7883_v11 = vld [vmem:[#allocation17_spill] sm:$0xff] }
 0x27c   :  { %2945 = vmatprep.subr.bf16.mxu0 %v2501_v12  ;;  %v6522_v47 = vmul.f32 2.5, %v1466_v38  ;;  %vm844_vm7 = vcmp.lt.f32.partialorder %v6517_v2, 1.8  ;;  %v2242_v59 = vmul.f32 %v6449_v24, %v6512_v6  ;;  %vm853_vm8 = vmand %vm829_vm4, %vm841_vm6  ;;  %v1429_v54 = vmul.f32 %v7883_v11, %v6321_v30  ;;  %3084 = vmatprep.subr.bf16.mxu1 %v7768_v46 }
 0x27d   :  { %v6528_v22 = vmul.f32 2.5, %v1469_v42  ;;  %v1432_v50 = vmul.f32 %v7884_v18, %v6328_v49  ;;  %v2251_v38 = vsub.f32 %v2227_v4, %v2239_v17  ;;  %vm856_vm9 = vmand %vm832_vm5, %vm844_vm7  ;;  %v865_v51 = vsel %vm853_vm8, 1.0, %v7363_v41 }
 0x27e   :  { %v1898_v5 = vmul.f32 %v3288_v28, %v6522_v47  ;;  %v3287_v44 = vadd.f32 -1.8, %v6514_v61  ;;  %v2254_v12 = vsub.f32 %v2230_v40, %v2242_v59  ;;  %v868_v30 = vsel %vm856_vm9, 1.0, %v7363_v41 }
 0x27f   :  { %v1901_v42 = vmul.f32 %v3291_v25, %v6528_v22  ;;  %v3290_v24 = vadd.f32 -1.8, %v6517_v2  ;;  %v2263_v49 = vmul.f32 0.8333333, %v2251_v38  ;;  %3085 = vmatpush1.bf16.msra.mxu1 %v2607_v14  ;;  %v2270_v18 = vmul.f32 %v7844_v13, %v6345_v0 }
 0x280   :  { %v1910_v60 = vsub.f32 %v1886_v35, %v1898_v5  ;;  %v1453_v58 = vmul.f32 %v3287_v44, %v865_v51  ;;  %v2266_v4 = vmul.f32 0.8333333, %v2254_v12  ;;  %3086 = vmatprep.subr.bf16.mxu1 %v7768_v46  ;;  %v2273_v29 = vmul.f32 %v7846_v56, %v6351_v32  ;;  %v7888_v12 = vld [vmem:[#allocation56_spill] sm:$0xff]  ;;  %v6607_v46 = vld [vmem:[#allocation3 + $0x48] sm:$0xff] }
 0x281   :  { %v1913_v17 = vsub.f32 %v1889_v26, %v1901_v42  ;;  %v1456_v11 = vmul.f32 %v3290_v24, %v868_v30  ;;  %v2491_v40 = vmul.f32 %v2263_v49, %v4706_v62  ;;  %v6555_v26 = vmul.f32 %v6331_v20, %v865_v51  ;;  %v7889_v42 = vld [vmem:[#allocation24_spill] sm:$0xff]  ;;  %7894 = vst [vmem:[#allocation88_spill] sm:$0xff] %v6607_v46 }
 0x282   :  { %v6547_v59 = vmul.f32 1.25, %v1910_v60  ;;  %v1465_v2 = vsub.f32 %v1429_v54, %v1453_v58  ;;  %v2494_v35 = vmul.f32 %v2266_v4, %v4706_v62  ;;  %v1885_v60 = vmul.f32 %v7851_v33, %v6365_v57  ;;  %v7885_v54 = vld [vmem:[#allocation15_spill] sm:$0xff] }
 0x283   :  { %v6552_v38 = vmul.f32 1.25, %v1913_v17  ;;  %v1468_v14 = vsub.f32 %v1432_v50, %v1456_v11  ;;  %v1888_v5 = vmul.f32 %v7852_v53, %v6369_v1  ;;  %vm836_vm10 = vcmp.ge.f32.partialorder %v7885_v54, 1.4  ;;  %v7886_v50 = vld [vmem:[#allocation70_spill] sm:$0xff]  ;;  %v7887_v1 = vld [vmem:[#allocation37_spill] sm:$0xff] }
 0x284   :  { %v2282_v13 = vmul.f32 %v3288_v28, %v6547_v59  ;;  %v6558_v0 = vmul.f32 2.5, %v1465_v2  ;;  %v2500_v56 = vpack.c.bf16 %v2494_v35, %v2491_v40  ;;  %vm839_vm11 = vcmp.ge.f32.partialorder %v7886_v50, 1.4 }
 0x285   :  { %v2285_v32 = vmul.f32 %v3291_v25, %v6552_v38  ;;  %v6565_v58 = vmul.f32 2.5, %v1468_v14  ;;  %vm848_vm12 = vcmp.lt.f32.partialorder %v7885_v54, 1.8  ;;  %v2269_v2 = vmul.f32 %v7887_v1, %v6401_v16  ;;  %v7890_v14 = vld [vmem:[#allocation92_spill] sm:$0xff] }
 0x286   :  { %v2294_v11 = vsub.f32 %v2270_v18, %v2282_v13  ;;  %v1897_v20 = vmul.f32 %v3287_v44, %v6558_v0  ;;  %2946 = vmatpush1.bf16.msra.mxu0 %v2500_v56  ;;  %vm851_vm13 = vcmp.lt.f32.partialorder %v7886_v50, 1.8  ;;  %vm860_vm14 = vmand %vm836_vm10, %vm848_vm12  ;;  %v1436_v49 = vmul.f32 %v7889_v42, %v7888_v12  ;;  %v7891_v13 = vld [vmem:[#allocation46_spill] sm:$0xff] }
 0x287   :  { %v2297_v28 = vsub.f32 %v2273_v29, %v2285_v32  ;;  %v1900_v57 = vmul.f32 %v3290_v24, %v6565_v58  ;;  %vm863_vm15 = vmand %vm839_vm11, %vm851_vm13  ;;  %v6576_v18 = vsel %vm860_vm14, 1.0, %v7363_v41  ;;  %v3294_v40 = vadd.f32 -1.8, %v7885_v54 }
 0x288   :  { %v2306_v25 = vmul.f32 0.8333333, %v2294_v11  ;;  %v1909_v51 = vsub.f32 %v1885_v60, %v1897_v20  ;;  %v6581_v29 = vsel %vm863_vm15, 1.0, %v7363_v41  ;;  %v1439_v60 = vmul.f32 %v7891_v13, %v7890_v14  ;;  %v6604_v13 = vld [vmem:[#allocation3 + $0x30] sm:$0xff] }
 0x289   :  { %v2309_v4 = vmul.f32 0.8333333, %v2297_v28  ;;  %v1912_v17 = vsub.f32 %v1888_v5, %v1900_v57  ;;  %v3297_v56 = vadd.f32 -1.8, %v7886_v50  ;;  %v7892_v5 = vld [vmem:[#allocation38_spill] sm:$0xff]  ;;  %v1460_v28 = vmul.f32 %v3294_v40, %v6576_v18 }
 0x28a   :  { %v2510_v16 = vmul.f32 %v2306_v25, %v4720_v10  ;;  %v6585_v35 = vmul.f32 1.25, %v1909_v51  ;;  %v2272_v20 = vmul.f32 %v7892_v5, %v6405_v7  ;;  %v6597_v57 = vmul.f32 %v6336_v21, %v868_v30  ;;  %v7893_v51 = vld [vmem:[#allocation29_spill] sm:$0xff] }
 0x28b   :  { %v2513_v32 = vmul.f32 %v2309_v4, %v4720_v10  ;;  %v6591_v11 = vmul.f32 1.25, %v1912_v17  ;;  %v1463_v25 = vmul.f32 %v3297_v56, %v6581_v29  ;;  %v1892_v12 = vmul.f32 %v7893_v51, %v6413_v45  ;;  %v7895_v45 = vld [vmem:[#allocation19_spill] sm:$0xff] }
 0x28c   :  { %v2281_v1 = vmul.f32 %v3287_v44, %v6585_v35  ;;  %v1472_v17 = vsub.f32 %v1436_v49, %v1460_v28  ;;  %vm835_vm0 = vcmp.ge.f32.partialorder %v6604_v13, 1.4  ;;  %vm838_vm1 = vcmp.ge.f32.partialorder %v6607_v46, 1.4 }
 0x28d   :  { %v2522_v14 = vpack.c.bf16 %v2513_v32, %v2510_v16  ;;  %v2284_v4 = vmul.f32 %v3290_v24, %v6591_v11  ;;  %v1475_v5 = vsub.f32 %v1439_v60, %v1463_v25  ;;  %vm847_vm2 = vcmp.lt.f32.partialorder %v6604_v13, 1.8  ;;  %v7896_v16 = vld [vmem:[#allocation52_spill] sm:$0xff] }
 0x28e   :  { %v2293_v7 = vsub.f32 %v2269_v2, %v2281_v1  ;;  %v6611_v44 = vmul.f32 2.5, %v1472_v17  ;;  %v1895_v24 = vmul.f32 %v7895_v45, %v6419_v8  ;;  %vm850_vm3 = vcmp.lt.f32.partialorder %v6607_v46, 1.8  ;;  %vm859_vm4 = vmand %vm835_vm0, %vm847_vm2 }
 0x28f   :  { %2947 = vmatprep.subr.bf16.mxu0 %v2522_v14  ;;  %v2296_v21 = vsub.f32 %v2272_v20, %v2284_v4  ;;  %v6616_v49 = vmul.f32 2.5, %v1475_v5  ;;  %vm862_vm5 = vmand %vm838_vm1, %vm850_vm3  ;;  %v6619_v2 = vsel %vm859_vm4, 1.0, %v7363_v41  ;;  %v1435_v60 = vmul.f32 %v7896_v16, %v6432_v48  ;;  %v7897_v14 = vld [vmem:[#allocation58_spill] sm:$0xff] }
 0x290   :  { %v2305_v30 = vmul.f32 0.8333333, %v2293_v7  ;;  %v1904_v20 = vmul.f32 %v3294_v40, %v6611_v44  ;;  %v6625_v28 = vsel %vm862_vm5, 1.0, %v7363_v41  ;;  %v3293_v8 = vadd.f32 -1.8, %v6604_v13 }
 0x291   :  { %v2308_v32 = vmul.f32 0.8333333, %v2296_v21  ;;  %v1907_v25 = vmul.f32 %v3297_v56, %v6616_v49  ;;  %v1438_v4 = vmul.f32 %v7897_v14, %v6437_v37  ;;  %v3296_v17 = vadd.f32 -1.8, %v6607_v46 }
 0x292   :  { %v2509_v1 = vmul.f32 %v2305_v30, %v4706_v62  ;;  %v1916_v48 = vsub.f32 %v1892_v12, %v1904_v20  ;;  %v2276_v5 = vmul.f32 %v7867_v43, %v6444_v27  ;;  %v1459_v21 = vmul.f32 %v3293_v8, %v6619_v2 }
 0x293   :  { %v2512_v7 = vmul.f32 %v2308_v32, %v4706_v62  ;;  %v1919_v16 = vsub.f32 %v1895_v24, %v1907_v25  ;;  %v2279_v45 = vmul.f32 %v7869_v9, %v6452_v63  ;;  %v1462_v30 = vmul.f32 %v3296_v17, %v6625_v28 }
 0x294   :  { %v1891_v51 = vmul.f32 %v7873_v3, %v6475_v34  ;;  %v6642_v14 = vmul.f32 1.25, %v1916_v48  ;;  %v1471_v46 = vsub.f32 %v1435_v60, %v1459_v21  ;;  %v1894_v12 = vmul.f32 %v7875_v19, %v6480_v39  ;;  %v7898_v34 = vld [vmem:[#allocation79_spill] sm:$0xff]  ;;  %v7901_v48 = vld [vmem:[#allocation57_spill] sm:$0xff] }
 0x295   :  { %v2521_v37 = vpack.c.bf16 %v2512_v7, %v2509_v1  ;;  %v6646_v32 = vmul.f32 1.25, %v1919_v16  ;;  %v1474_v43 = vsub.f32 %v1438_v4, %v1462_v30  ;;  %v2275_v27 = vmul.f32 %v7830_v15, %v6508_v55  ;;  %v7899_v16 = vld [vmem:[#allocation60_spill] sm:$0xff] }
 0x296   :  { %vm878_vm6 = vcmp.ge.f32.partialorder %v6468_v52, 1.8  ;;  %v2288_v9 = vmul.f32 %v3294_v40, %v6642_v14  ;;  %v6652_v63 = vmul.f32 2.5, %v1471_v46  ;;  %vm881_vm7 = vcmp.ge.f32.partialorder %v7898_v34, 1.8  ;;  %v7900_v40 = vld [vmem:[#allocation53_spill] sm:$0xff] }
 0x297   :  { %2948 = vmatpush1.bf16.msra.mxu0 %v2521_v37  ;;  %vm890_vm8 = vcmp.lt.f32.partialorder %v6468_v52, 2.2  ;;  %v2291_v24 = vmul.f32 %v3297_v56, %v6646_v32  ;;  %v6657_v39 = vmul.f32 2.5, %v1474_v43  ;;  %v2278_v60 = vmul.f32 %v7899_v16, %v6512_v6 }
 0x298   :  { %vm893_vm9 = vcmp.lt.f32.partialorder %v7898_v34, 2.2  ;;  %vm902_vm10 = vmand %vm878_vm6, %vm890_vm8  ;;  %v2300_v15 = vsub.f32 %v2276_v5, %v2288_v9  ;;  %v1903_v55 = vmul.f32 %v3293_v8, %v6652_v63  ;;  %v1490_v20 = vmul.f32 %v7900_v40, %v6483_v31  ;;  %v7902_v9 = vld [vmem:[#allocation12_spill] sm:$0xff]  ;;  %v7903_v40 = vld [vmem:[#allocation25_spill] sm:$0xff] }
 0x299   :  { %vm905_vm11 = vmand %vm881_vm7, %vm893_vm9  ;;  %v914_v46 = vsel %vm902_vm10, 1.0, %v7363_v41  ;;  %v2303_v1 = vsub.f32 %v2279_v45, %v2291_v24  ;;  %v1906_v56 = vmul.f32 %v3296_v17, %v6657_v39  ;;  %v3300_v4 = vadd.f32 -2.2, %v6468_v52 }
 0x29a   :  { %v917_v25 = vsel %vm905_vm11, 1.0, %v7363_v41  ;;  %v2312_v6 = vmul.f32 0.8333333, %v2300_v15  ;;  %v1915_v7 = vsub.f32 %v1891_v51, %v1903_v55  ;;  %v1493_v5 = vmul.f32 %v7901_v48, %v6490_v23 }
 0x29b   :  { %v3303_v21 = vadd.f32 -2.2, %v7898_v34  ;;  %v2315_v30 = vmul.f32 0.8333333, %v2303_v1  ;;  %v1918_v37 = vsub.f32 %v1894_v12, %v1906_v56  ;;  %v1514_v43 = vmul.f32 %v3300_v4, %v914_v46 }
 0x29c   :  { %v1934_v31 = vmul.f32 %v7902_v9, %v6522_v47  ;;  %v2516_v45 = vmul.f32 %v2312_v6, %v4720_v10  ;;  %v6675_v24 = vmul.f32 1.25, %v1915_v7  ;;  %v1937_v15 = vmul.f32 %v7903_v40, %v6528_v22  ;;  %v7904_v47 = vld [vmem:[#allocation48_spill] sm:$0xff]  ;;  %v7905_v22 = vld [vmem:[#allocation69_spill] sm:$0xff] }
 0x29d   :  { %v1517_v16 = vmul.f32 %v3303_v21, %v917_v25  ;;  %v2519_v51 = vmul.f32 %v2315_v30, %v4720_v10  ;;  %v6680_v55 = vmul.f32 1.25, %v1918_v37  ;;  %v1526_v23 = vsub.f32 %v1490_v20, %v1514_v43  ;;  %v7906_v30 = vld [vmem:[#allocation90_spill] sm:$0xff]  ;;  %v7907_v40 = vld [vmem:[#allocation81_spill] sm:$0xff] }
 0x29e   :  { %v2318_v12 = vmul.f32 %v7837_v36, %v6547_v59  ;;  %v2287_v46 = vmul.f32 %v3293_v8, %v6675_v24  ;;  %3494 = vtanh.f32 %v7904_v47  ;;  %vm877_vm12 = vcmp.ge.f32.partialorder %v6514_v61, 1.8 }
 0x29f   :  { %v1529_v1 = vsub.f32 %v1493_v5, %v1517_v16  ;;  %v2525_v56 = vpack.c.bf16 %v2519_v51, %v2516_v45  ;;  %v2290_v25 = vmul.f32 %v3296_v17, %v6680_v55  ;;  %v1538_v6 = vmul.f32 2.5, %v1526_v23 }
 0x2a0   :  { %3496 = vtanh.f32 %v7905_v22  ;;  %v2299_v7 = vsub.f32 %v2275_v27, %v2287_v46  ;;  %vm880_vm13 = vcmp.ge.f32.partialorder %v7906_v30, 1.8  ;;  %vm889_vm14 = vcmp.lt.f32.partialorder %v6514_v61, 2.2  ;;  %v7909_v22 = vld [vmem:[#allocation13_spill] sm:$0xff] }
 0x2a1   :  { %v1541_v48 = vmul.f32 2.5, %v1529_v1  ;;  %2949 = vmatprep.subr.bf16.mxu0 %v2525_v56  ;;  %v2302_v36 = vsub.f32 %v2278_v60, %v2290_v25  ;;  %v1946_v59 = vmul.f32 %v3300_v4, %v1538_v6  ;;  %vm892_vm15 = vcmp.lt.f32.partialorder %v7906_v30, 2.2  ;;  %vm901_vm0 = vmand %vm877_vm12, %vm889_vm14  ;;  %v7908_v56 = vld [vmem:[#allocation17_spill] sm:$0xff] }
 0x2a2   :  { %v6693_v8 = vadd.f32 -2.2, %v6514_v61  ;;  %v2311_v20 = vmul.f32 0.8333333, %v2299_v7  ;;  %vm904_vm1 = vmand %vm880_vm13, %vm892_vm15  ;;  %v913_v5 = vsel %vm901_vm0, 1.0, %v7363_v41  ;;  %v2321_v51 = vmul.f32 %v7907_v40, %v6552_v38 }
 0x2a3   :  { %v1949_v17 = vmul.f32 %v3303_v21, %v1541_v48  ;;  %v6697_v27 = vadd.f32 -2.2, %v7906_v30  ;;  %v2314_v37 = vmul.f32 0.8333333, %v2302_v36  ;;  %v1958_v43 = vsub.f32 %v1934_v31, %v1946_v59  ;;  %v3556_v40 = vld [vmem:[#allocation6] ss:$16 sps:$4 sm:$0xff]  }
 0x2a4   :  { %v916_v9 = vsel %vm904_vm1, 1.0, %v7363_v41  ;;  %v1513_v60 = vmul.f32 %v6693_v8, %v913_v5  ;;  %v2515_v45 = vmul.f32 %v2311_v20, %v4706_v62  ;;  %v1933_v31 = vmul.f32 %v7908_v56, %v6558_v0 }
 0x2a5   :  { %v1961_v16 = vsub.f32 %v1937_v15, %v1949_v17  ;;  %v1516_v23 = vmul.f32 %v6697_v27, %v916_v9  ;;  %v2518_v46 = vmul.f32 %v2314_v37, %v4706_v62  ;;  %v1970_v1 = vmul.f32 1.25, %v1958_v43  ;;  %v7911_v9 = vld [vmem:[#allocation66_spill] sm:$0xff] }
 0x2a6   :  { %v1525_v47 = vsub.f32 %v6555_v26, %v1513_v60  ;;  %v1936_v7 = vmul.f32 %v7909_v22, %v6565_v58  ;;  %v2317_v15 = vmul.f32 %v7851_v33, %v6585_v35  ;;  %vm884_vm2 = vcmp.ge.f32.partialorder %v7885_v54, 1.8 }
 0x2a7   :  { %v1973_v25 = vmul.f32 1.25, %v1961_v16  ;;  %v1528_v6 = vsub.f32 %v6597_v57, %v1516_v23  ;;  %v2524_v38 = vpack.c.bf16 %v2518_v46, %v2515_v45  ;;  %v2330_v48 = vmul.f32 %v3300_v4, %v1970_v1  ;;  %v7910_v57 = vld [vmem:[#allocation106_spill] sm:$0xff]  ;;  %v7912_v23 = vld [vmem:[#allocation93_spill] sm:$0xff] }
 0x2a8   :  { %v1537_v36 = vmul.f32 2.5, %v1525_v47  ;;  %v6715_v59 = vpop.eup %3494  ;;  %vm887_vm3 = vcmp.ge.f32.partialorder %v7886_v50, 1.8  ;;  %vm896_vm4 = vcmp.lt.f32.partialorder %v7885_v54, 2.2  ;;  %v1496_v60 = vmul.f32 %v7911_v9, %v6576_v18 }
 0x2a9   :  { %v2333_v26 = vmul.f32 %v3303_v21, %v1973_v25  ;;  %v1540_v20 = vmul.f32 2.5, %v1528_v6  ;;  %2950 = vmatpush1.bf16.msra.mxu0 %v2524_v38  ;;  %v2342_v58 = vsub.f32 %v2318_v12, %v2330_v48  ;;  %v2616_v33 = vmul.f32 %v6715_v59, %v7910_v57  ;;  %vm908_vm6 = vmand %vm884_vm2, %vm896_vm4  ;;  %v3557_v25 = vld [vmem:[#allocation6 + $0x24] ss:$16 sps:$4 sm:$0xff]  }
 0x2aa   :  { %v6719_v0 = vpop.eup %3496  ;;  %v1945_v35 = vmul.f32 %v6693_v8, %v1537_v36  ;;  %vm899_vm5 = vcmp.lt.f32.partialorder %v7886_v50, 2.2  ;;  %v920_v5 = vsel %vm908_vm6, 1.0, %v7363_v41  ;;  %v1499_v46 = vmul.f32 %v7912_v23, %v6581_v29 }
 0x2ab   :  { %v2345_v4 = vsub.f32 %v2321_v51, %v2333_v26  ;;  %v2619_v21 = vmul.f32 %v6719_v0, %v7910_v57  ;;  %v1948_v17 = vmul.f32 %v6697_v27, %v1540_v20  ;;  %vm911_vm7 = vmand %vm887_vm3, %vm899_vm5  ;;  %v2354_v37 = vmul.f32 0.8333333, %v2342_v58  ;;  %v7914_v58 = vld [vmem:[#allocation46_spill] sm:$0xff] }
 0x2ac   :  { %v1957_v43 = vsub.f32 %v1933_v31, %v1945_v35  ;;  %v923_v12 = vsel %vm911_vm7, 1.0, %v7363_v41  ;;  %2952 = vmatmul.mubr.bf16.vlgmr.msra.gmra.mrb[0].mxu0 %v3556_v40  ;;  %v6736_v56 = vadd.f32 -2.2, %v7885_v54  ;;  %v6739_v31 = vadd.f32 -2.2, %v7886_v50  ;;  %v3558_v35 = vld [vmem:[#allocation3 + $0x40] sm:$0xff] }
 0x2ad   :  { %v2357_v45 = vmul.f32 0.8333333, %v2345_v4  ;;  %v2628_v16 = vpack.c.bf16 %v2619_v21, %v2616_v33  ;;  %v1960_v51 = vsub.f32 %v1936_v7, %v1948_v17  ;;  %v2534_v1 = vmul.f32 %v2354_v37, %v4720_v10  ;;  %2961 = vmatprep.mubr.bf16.mxu0 %v3557_v25  ;;  %v3559_v4 = vld [vmem:[#allocation3 + $0x58] sm:$0xff]  ;;  %v7917_v40 = vld [vmem:[#allocation78_spill] sm:$0xff] }
 0x2ae   :  { %v1969_v47 = vmul.f32 1.25, %v1957_v43  ;;  %v2320_v22 = vmul.f32 %v7852_v53, %v6591_v11  ;;  %v1520_v7 = vmul.f32 %v6736_v56, %v920_v5  ;;  %v1523_v38 = vmul.f32 %v6739_v31, %v923_v12  ;;  %v3560_v12 = vld [vmem:[#allocation6 + $0x20] ss:$16 sps:$4 sm:$0xff]  }
 0x2af   :  { %v2537_v18 = vmul.f32 %v2357_v45, %v4720_v10  ;;  %3087 = vmatpush1.bf16.msra.mxu1 %v2628_v16  ;;  %v1972_v6 = vmul.f32 1.25, %v1960_v51  ;;  %v1940_v48 = vmul.f32 %v7889_v42, %v6611_v44  ;;  %v7913_v36 = vmov 0   ;;  %v7915_v42 = vld [vmem:[#allocation88_spill] sm:$0xff] }
 0x2b0   :  { %v2329_v29 = vmul.f32 %v6693_v8, %v1969_v47  ;;  %3088 = vmatprep.subr.bf16.mxu1 %v7913_v36  ;;  %v1943_v33 = vmul.f32 %v7914_v58, %v6616_v49  ;;  %3498 = vtanh.f32 %v3558_v35  ;;  %v1532_v11 = vsub.f32 %v1496_v60, %v1520_v7  ;;  %v7916_v49 = vld [vmem:[#allocation89_spill] sm:$0xff] }
 0x2b1   :  { %v2546_v26 = vpack.c.bf16 %v2537_v18, %v2534_v1  ;;  %v2332_v20 = vmul.f32 %v6697_v27, %v1972_v6  ;;  %v1535_v8 = vsub.f32 %v1499_v46, %v1523_v38  ;;  %3500 = vtanh.f32 %v3559_v4  ;;  %v7918_v18 = vld [vmem:[#allocation29_spill] sm:$0xff]  ;;  %v7921_v4 = vld [vmem:[#allocation58_spill] sm:$0xff] }
 0x2b2   :  { %v2341_v53 = vsub.f32 %v2317_v15, %v2329_v29  ;;  %vm883_vm8 = vcmp.ge.f32.partialorder %v6604_v13, 1.8  ;;  %vm886_vm9 = vcmp.ge.f32.partialorder %v7915_v42, 1.8  ;;  %vm895_vm10 = vcmp.lt.f32.partialorder %v6604_v13, 2.2 }
 0x2b3   :  { %2972 = vmatprep.subr.bf16.mxu0 %v2546_v26  ;;  %v2344_v21 = vsub.f32 %v2320_v22, %v2332_v20  ;;  %v1544_v27 = vmul.f32 2.5, %v1532_v11  ;;  %v1547_v17 = vmul.f32 2.5, %v1535_v8  ;;  %vm898_vm11 = vcmp.lt.f32.partialorder %v7915_v42, 2.2  ;;  %vm907_vm12 = vmand %vm883_vm8, %vm895_vm10 }
 0x2b4   :  { %v2353_v44 = vmul.f32 0.8333333, %v2341_v53  ;;  %v1495_v15 = vmul.f32 %v7916_v49, %v6619_v2  ;;  %vm910_vm13 = vmand %vm886_vm9, %vm898_vm11  ;;  %v919_v37 = vsel %vm907_vm12, 1.0, %v7363_v41  ;;  %v3305_v43 = vadd.f32 -2.2, %v6604_v13  ;;  %2962 = vmatmul.mubr.bf16.gmra.mrb[4].mxu0 %v3560_v12 }
 0x2b5   :  { %v2356_v5 = vmul.f32 0.8333333, %v2344_v21  ;;  %v1952_v60 = vmul.f32 %v6736_v56, %v1544_v27  ;;  %v1955_v45 = vmul.f32 %v6739_v31, %v1547_v17  ;;  %v922_v16 = vsel %vm910_vm13, 1.0, %v7363_v41  ;;  %v7919_v41 = vld [vmem:[#allocation19_spill] sm:$0xff] }
 0x2b6   :  { %v2533_v9 = vmul.f32 %v2353_v44, %v4706_v62  ;;  %v1498_v51 = vmul.f32 %v7917_v40, %v6625_v28  ;;  %v3308_v23 = vadd.f32 -2.2, %v7915_v42  ;;  %v1519_v46 = vmul.f32 %v3305_v43, %v919_v37 }
 0x2b7   :  { %v2536_v2 = vmul.f32 %v2356_v5, %v4706_v62  ;;  %v1964_v1 = vsub.f32 %v1940_v48, %v1952_v60  ;;  %v1967_v47 = vsub.f32 %v1943_v33, %v1955_v45  ;;  %v2324_v6 = vmul.f32 %v7918_v18, %v6642_v14  ;;  %v7920_v48 = vld [vmem:[#allocation52_spill] sm:$0xff] }
 0x2b8   :  { %v1522_v22 = vmul.f32 %v3308_v23, %v922_v16  ;;  %v1531_v29 = vsub.f32 %v1495_v15, %v1519_v46  ;;  %v2327_v26 = vmul.f32 %v7919_v41, %v6646_v32  ;;  %v2640_v28 = vmul.f32 2.0, %v6715_v59 }
 0x2b9   :  { %v2545_v25 = vpack.c.bf16 %v2536_v2, %v2533_v9  ;;  %v1976_v7 = vmul.f32 1.25, %v1964_v1  ;;  %v1979_v38 = vmul.f32 1.25, %v1967_v47  ;;  %v1939_v33 = vmul.f32 %v7920_v48, %v6652_v63 }
 0x2ba   :  { %v6774_v20 = vpop.eup %3498  ;;  %v1534_v58 = vsub.f32 %v1498_v51, %v1522_v22  ;;  %v1543_v35 = vmul.f32 2.5, %v1531_v29  ;;  %v2643_v53 = vmul.f32 2.0, %v6719_v0  ;;  %v1942_v21 = vmul.f32 %v7921_v4, %v6657_v39 }
 0x2bb   :  { %2973 = vmatpush1.bf16.msra.mxu0 %v2545_v25  ;;  %v6779_v14 = vpop.eup %3500  ;;  %v2336_v11 = vmul.f32 %v6736_v56, %v1976_v7  ;;  %v2339_v8 = vmul.f32 %v6739_v31, %v1979_v38  ;;  %v2622_v32 = vmul.f32 %v6774_v20, %v7910_v57  ;;  %v2652_v63 = vmul.f32 %v6715_v59, %v2640_v28 }
 0x2bc   :  { %v2625_v44 = vmul.f32 %v6779_v14, %v7910_v57  ;;  %v1546_v27 = vmul.f32 2.5, %v1534_v58  ;;  %v1951_v17 = vmul.f32 %v3305_v43, %v1543_v35  ;;  %v2655_v5 = vmul.f32 %v6719_v0, %v2643_v53  ;;  %v7922_v58 = vld [vmem:[#allocation105_spill] sm:$0xff] }
 0x2bd   :  { %v2348_v49 = vsub.f32 %v2324_v6, %v2336_v11  ;;  %v2351_v15 = vsub.f32 %v2327_v26, %v2339_v8  ;;  %v3313_v12 = vadd.f32 -1.0, %v2652_v63  ;;  %v2323_v40 = vmul.f32 %v7873_v3, %v6675_v24  ;;  %v3430_v11 = vld [vmem:[#allocation6 + $0xc] ss:$16 sps:$4 sm:$0xff]  }
 0x2be   :  { %v2631_v56 = vpack.c.bf16 %v2625_v44, %v2622_v32  ;;  %v1954_v37 = vmul.f32 %v3308_v23, %v1546_v27  ;;  %v1963_v31 = vsub.f32 %v1939_v33, %v1951_v17  ;;  %v3316_v45 = vadd.f32 -1.0, %v2655_v5 }
 0x2bf   :  { %v2360_v9 = vmul.f32 0.8333333, %v2348_v49  ;;  %v2363_v60 = vmul.f32 0.8333333, %v2351_v15  ;;  %v2676_v51 = vmul.f32 %v3313_v12, %v7910_v57  ;;  %v2326_v1 = vmul.f32 %v7875_v19, %v6680_v55  ;;  %v7923_v15 = vld [vmem:[#allocation103_spill] sm:$0xff] }
 0x2c0   :  { %3089 = vmatpush1.bf16.msra.mxu1 %v2631_v56  ;;  %v1966_v39 = vsub.f32 %v1942_v21, %v1954_v37  ;;  %v1975_v16 = vmul.f32 1.25, %v1963_v31  ;;  %v2679_v47 = vmul.f32 %v3316_v45, %v7910_v57  ;;  %v2646_v6 = vmul.f32 2.0, %v6774_v20 }
 0x2c1   :  { %v2540_v2 = vmul.f32 %v2360_v9, %v4720_v10  ;;  %v2543_v46 = vmul.f32 %v2363_v60, %v4720_v10  ;;  %3090 = vmatprep.subr.bf16.mxu1 %v7913_v36  ;;  %v2649_v22 = vmul.f32 2.0, %v6779_v14  ;;  %v2700_v19 = vmul.f32 %v3313_v12, %v2640_v28  ;;  %v6848_v60 = vld [vmem:[#allocation6 + $0x8] ss:$16 sps:$4 sm:$0xff]  }
 0x2c2   :  { %v1978_v25 = vmul.f32 1.25, %v1966_v39  ;;  %v2335_v18 = vmul.f32 %v3305_v43, %v1975_v16  ;;  %v2688_v24 = vpack.c.bf16 %v2679_v47, %v2676_v51  ;;  %v2658_v38 = vmul.f32 %v6774_v20, %v2646_v6 }
 0x2c3   :  { %v2549_v3 = vpack.c.bf16 %v2543_v46, %v2540_v2  ;;  %v2661_v10 = vmul.f32 %v6779_v14, %v2649_v22  ;;  %3502 = vtanh.f32 %v6468_v52  ;;  %v2570_v35 = vmul.f32 %v6468_v52, %v7922_v58 }
 0x2c4   :  { %v2338_v29 = vmul.f32 %v3308_v23, %v1978_v25  ;;  %v2347_v7 = vsub.f32 %v2323_v40, %v2335_v18  ;;  %3091 = vmatpush1.bf16.msra.mxu1 %v2688_v24  ;;  %v3319_v43 = vadd.f32 -1.0, %v2658_v38  ;;  %v2573_v23 = vmul.f32 %v7898_v34, %v7922_v58  ;;  %v7924_v40 = vld [vmem:[#allocation104_spill] sm:$0xff] }
 0x2c5   :  { %2974 = vmatprep.subr.bf16.mxu0 %v2549_v3  ;;  %3092 = vmatprep.subr.bf16.mxu1 %v7913_v36  ;;  %v3322_v26 = vadd.f32 -1.0, %v2661_v10  ;;  %v2703_v48 = vmul.f32 %v3316_v45, %v2643_v53  ;;  %v2712_v33 = vsub.f32 %v2700_v19, %v6715_v59  ;;  %3504 = vtanh.f32 %v7898_v34 }
 0x2c6   :  { %v2350_v55 = vsub.f32 %v2326_v1, %v2338_v29  ;;  %v2359_v41 = vmul.f32 0.8333333, %v2347_v7  ;;  %v2682_v32 = vmul.f32 %v3319_v43, %v7910_v57  ;;  %v2706_v27 = vmul.f32 %v3319_v43, %v2646_v6  ;;  %v7925_v6 = vld [vmem:[#allocation102_spill] sm:$0xff] }
 0x2c7   :  { %v2685_v4 = vmul.f32 %v3322_v26, %v7910_v57  ;;  %v2715_v21 = vsub.f32 %v2703_v48, %v6719_v0  ;;  %v2724_v44 = vmul.f32 %v2712_v33, %v7910_v57  ;;  %v2709_v52 = vmul.f32 %v3322_v26, %v2649_v22  ;;  %v6888_v26 = vld [vmem:[#allocation6 + $0x28] ss:$16 sps:$4 sm:$0xff]  }
 0x2c8   :  { %v2362_v8 = vmul.f32 0.8333333, %v2350_v55  ;;  %v2539_v28 = vmul.f32 %v2359_v41, %v4706_v62  ;;  %vm2912_vm14 = vcmask 523264   ;;  %v2718_v53 = vsub.f32 %v2706_v27, %v6774_v20 }
 0x2c9   :  { %v2691_v63 = vpack.c.bf16 %v2685_v4, %v2682_v32  ;;  %v2727_v59 = vmul.f32 %v2715_v21, %v7910_v57  ;;  %v2721_v49 = vsub.f32 %v2709_v52, %v6779_v14  ;;  %3333 = vmatprep.mubr.msk.bf16.mxu1 %vm2912_vm14, %v3430_v11  ;;  %3506 = vtanh.f32 %v6514_v61  ;;  %3331 = vmatprep.mubr.msk.bf16.mxu0 %vm2912_vm14, %v3430_v11 }
 0x2ca   :  { %v2542_v17 = vmul.f32 %v2362_v8, %v4706_v62  ;;  %v2569_v62 = vmul.f32 %v6514_v61, %v7923_v15  ;;  %v2572_v34 = vmul.f32 %v7906_v30, %v7923_v15  ;;  %3508 = vtanh.f32 %v7906_v30 }
 0x2cb   :  { %3093 = vmatpush1.bf16.msra.mxu1 %v2691_v63  ;;  %v2582_v5 = vpack.c.bf16 %v2573_v23, %v2570_v35  ;;  %v2576_v20 = vmul.f32 %v7885_v54, %v7922_v58  ;;  %v2579_v14 = vmul.f32 %v7886_v50, %v7922_v58  ;;  %3510 = vtanh.f32 %v7885_v54 }
 0x2cc   :  { %v2548_v0 = vpack.c.bf16 %v2542_v17, %v2539_v28  ;;  %3094 = vmatprep.subr.bf16.mxu1 %v7913_v36  ;;  %v2736_v56 = vpack.c.bf16 %v2727_v59, %v2724_v44  ;;  %v2730_v61 = vmul.f32 %v2718_v53, %v7910_v57  ;;  %v2733_v37 = vmul.f32 %v2721_v49, %v7910_v57 }
 0x2cd   :  { %3512 = vtanh.f32 %v7886_v50  ;;  %v6838_v30 = vpop.eup %3502  ;;  %v2581_v31 = vpack.c.bf16 %v2572_v34, %v2569_v62  ;;  %v2575_v12 = vmul.f32 %v6604_v13, %v7923_v15  ;;  %v2578_v54 = vmul.f32 %v7915_v42, %v7923_v15 }
 0x2ce   :  { %2975 = vmatpush1.bf16.msra.mxu0 %v2548_v0  ;;  %3514 = vtanh.f32 %v6604_v13  ;;  %v2585_v9 = vpack.c.bf16 %v2579_v14, %v2576_v20  ;;  %v2739_v50 = vpack.c.bf16 %v2733_v37, %v2730_v61  ;;  %v2639_v57 = vmul.f32 2.0, %v6838_v30  ;;  %v6852_v13 = vld [vmem:[#allocation6 + $0x2c] ss:$16 sps:$4 sm:$0xff]  }
 0x2cf   :  { %2976 = vmatprep.subr.bf16.mxu0 %v2582_v5  ;;  %3095 = vmatpush1.bf16.msra.mxu1 %v2736_v56  ;;  %3516 = vtanh.f32 %v7915_v42  ;;  %v6850_v45 = vpop.eup %3504  ;;  %v2584_v39 = vpack.c.bf16 %v2578_v54, %v2575_v12  ;;  %v2606_v42 = vpack.c.bf16 %v7924_v40, %v7924_v40  ;;  %v2615_v1 = vmul.f32 %v6838_v30, %v7924_v40 }
 0x2d0   :  { %3096 = vmatprep.subr.bf16.mxu1 %v7913_v36  ;;  %v2642_v36 = vmul.f32 2.0, %v6850_v45  ;;  %v2651_v2 = vmul.f32 %v6838_v30, %v2639_v57  ;;  %v2618_v47 = vmul.f32 %v6850_v45, %v7924_v40  ;;  %v2605_v22 = vpack.c.bf16 %v7925_v6, %v7925_v6 }
 0x2d2   :  { %2977 = vmatpush1.bf16.msra.mxu0 %v2581_v31  ;;  %v2654_v29 = vmul.f32 %v6850_v45, %v2642_v36  ;;  %v3312_v10 = vadd.f32 -1.0, %v2651_v2  ;;  %v2627_v55 = vpack.c.bf16 %v2618_v47, %v2615_v1 }
 0x2d3   :  { %2978 = vmatprep.subr.bf16.mxu0 %v2585_v9  ;;  %3097 = vmatpush1.bf16.msra.mxu1 %v2739_v50  ;;  %v6854_v16 = vpop.eup %3506 }
 0x2d4   :  { %v6859_v51 = vpop.eup %3508  ;;  %v2638_v25 = vmul.f32 2.0, %v6854_v16  ;;  %v2614_v41 = vmul.f32 %v6854_v16, %v7925_v6  ;;  %v3315_v8 = vadd.f32 -1.0, %v2654_v29  ;;  %v2675_v21 = vmul.f32 %v3312_v10, %v7924_v40 }
 0x2d5   :  { %v6862_v46 = vpop.eup %3510  ;;  %v2641_v3 = vmul.f32 2.0, %v6859_v51  ;;  %v2617_v43 = vmul.f32 %v6859_v51, %v7925_v6  ;;  %v2699_v44 = vmul.f32 %v3312_v10, %v2639_v57 }
 0x2d6   :  { %2979 = vmatpush1.bf16.msra.mxu0 %v2584_v39  ;;  %3107 = vmatmul.mubr.bf16.vlgmr.msra.gmra.mrb[12].mxu1 %v6848_v60  ;;  %v2645_v7 = vmul.f32 2.0, %v6862_v46  ;;  %v2650_v35 = vmul.f32 %v6854_v16, %v2638_v25  ;;  %v2621_v23 = vmul.f32 %v6862_v46, %v7924_v40  ;;  %v2678_v17 = vmul.f32 %v3315_v8, %v7924_v40 }
 0x2d7   :  { %2980 = vmatprep.subr.bf16.mxu0 %v2606_v42  ;;  %v6870_v18 = vpop.eup %3512  ;;  %3334 = vmatprep.mubr.msk.bf16.mxu1 %vm2912_vm14, %v6852_v13  ;;  %v2653_v33 = vmul.f32 %v6859_v51, %v2641_v3  ;;  %v2626_v59 = vpack.c.bf16 %v2617_v43, %v2614_v41  ;;  %v2702_v20 = vmul.f32 %v3315_v8, %v2642_v36 }
 0x2d8   :  { %v6877_v24 = vpop.eup %3514  ;;  %v2648_v19 = vmul.f32 2.0, %v6870_v18  ;;  %v2624_v48 = vmul.f32 %v6870_v18, %v7924_v40  ;;  %v2657_v28 = vmul.f32 %v6862_v46, %v2645_v7  ;;  %v3311_v63 = vadd.f32 -1.0, %v2650_v35 }
 0x2d9   :  { %v6881_v38 = vpop.eup %3516  ;;  %v2644_v11 = vmul.f32 2.0, %v6877_v24  ;;  %v2620_v27 = vmul.f32 %v6877_v24, %v7925_v6  ;;  %v3314_v53 = vadd.f32 -1.0, %v2653_v33  ;;  %v2711_v56 = vsub.f32 %v2699_v44, %v6838_v30 }
 0x2da   :  { %2981 = vmatpush1.bf16.msra.mxu0 %v2605_v22  ;;  %v2660_v32 = vmul.f32 %v6870_v18, %v2648_v19  ;;  %v2647_v4 = vmul.f32 2.0, %v6881_v38  ;;  %v2623_v52 = vmul.f32 %v6881_v38, %v7925_v6  ;;  %v2630_v62 = vpack.c.bf16 %v2624_v48, %v2621_v23 }
 0x2db   :  { %2982 = vmatprep.subr.bf16.mxu0 %v2606_v42  ;;  %v2656_v49 = vmul.f32 %v6877_v24, %v2644_v11  ;;  %v3318_v34 = vadd.f32 -1.0, %v2657_v28  ;;  %v2674_v14 = vmul.f32 %v3311_v63, %v7925_v6  ;;  %v2687_v37 = vpack.c.bf16 %v2678_v17, %v2675_v21 }
 0x2dc   :  { %v2659_v0 = vmul.f32 %v6881_v38, %v2647_v4  ;;  %v3321_v5 = vadd.f32 -1.0, %v2660_v32  ;;  %v2629_v61 = vpack.c.bf16 %v2623_v52, %v2620_v27  ;;  %v2677_v31 = vmul.f32 %v3314_v53, %v7925_v6 }
 0x2dd   :  { %v2698_v12 = vmul.f32 %v3311_v63, %v2638_v25  ;;  %v2681_v54 = vmul.f32 %v3318_v34, %v7924_v40  ;;  %v3317_v9 = vadd.f32 -1.0, %v2656_v49  ;;  %v2701_v57 = vmul.f32 %v3314_v53, %v2641_v3  ;;  %v7926_v53 = vld [vmem:[#allocation107_spill] sm:$0xff] }
 0x2de   :  { %2983 = vmatpush1.bf16.msra.mxu0 %v2605_v22  ;;  %3115 = vmatmul.mubr.bf16.gmra.mrb[16].mxu1 %v6888_v26  ;;  %v3320_v50 = vadd.f32 -1.0, %v2659_v0  ;;  %v2684_v39 = vmul.f32 %v3321_v5, %v7924_v40  ;;  %v2714_v42 = vsub.f32 %v2702_v20, %v6850_v45  ;;  %v2705_v36 = vmul.f32 %v3318_v34, %v2645_v7  ;;  %v2850_v0 = vpop.permute.xlu1 %2849 }
 0x2df   :  { %2984 = vmatprep.subr.bf16.mxu0 %v2627_v55  ;;  %v2708_v2 = vmul.f32 %v3321_v5, %v2648_v19  ;;  %v2686_v30 = vpack.c.bf16 %v2677_v31, %v2674_v14  ;;  %v2680_v1 = vmul.f32 %v3317_v9, %v7925_v6  ;;  %v2723_v47 = vmul.f32 %v2711_v56, %v7924_v40 }
 0x2e0   :  { %v2710_v25 = vsub.f32 %v2698_v12, %v6854_v16  ;;  %v2683_v22 = vmul.f32 %v3320_v50, %v7925_v6  ;;  %v2713_v29 = vsub.f32 %v2701_v57, %v6859_v51  ;;  %v2704_v3 = vmul.f32 %v3317_v9, %v2644_v11 }
 0x2e1   :  { %v2707_v10 = vmul.f32 %v3320_v50, %v2647_v4  ;;  %v2690_v55 = vpack.c.bf16 %v2684_v39, %v2681_v54  ;;  %v2726_v45 = vmul.f32 %v2714_v42, %v7924_v40  ;;  %v2717_v7 = vsub.f32 %v2705_v36, %v6862_v46 }
 0x2e2   :  { %2985 = vmatpush1.bf16.msra.mxu0 %v2626_v59  ;;  %v2720_v19 = vsub.f32 %v2708_v2, %v6870_v18  ;;  %v2722_v41 = vmul.f32 %v2710_v25, %v7925_v6  ;;  %v2689_v43 = vpack.c.bf16 %v2683_v22, %v2680_v1  ;;  %v2725_v16 = vmul.f32 %v2713_v29, %v7925_v6  ;;  %v2845_v59 = vpop.permute.xlu0 %2844 }
 0x2e3   :  { %2986 = vmatprep.subr.bf16.mxu0 %v2630_v62  ;;  %v2716_v35 = vsub.f32 %v2704_v3, %v6877_v24  ;;  %v2719_v51 = vsub.f32 %v2707_v10, %v6881_v38  ;;  %v2735_v23 = vpack.c.bf16 %v2726_v45, %v2723_v47  ;;  %v2729_v48 = vmul.f32 %v2717_v7, %v7924_v40 }
 0x2e4   :  { %v2732_v33 = vmul.f32 %v2720_v19, %v7924_v40  ;;  %v2734_v18 = vpack.c.bf16 %v2725_v16, %v2722_v41  ;;  %v2864_v49 = vmul.f32 %v2845_v59, %v7926_v53  ;;  %v2867_v62 = vmul.f32 %v2850_v0, %v7926_v53 }
 0x2e5   :  { %v2728_v11 = vmul.f32 %v2716_v35, %v7925_v6  ;;  %v2731_v8 = vmul.f32 %v2719_v51, %v7925_v6  ;;  %v2863_v47 = vmul.f32 %v2845_v59, %v7922_v58  ;;  %v2865_v29 = vmul.f32 %v2850_v0, %v7923_v15 }
 0x2e6   :  { %2987 = vmatpush1.bf16.msra.mxu0 %v2629_v61  ;;  %v2738_v32 = vpack.c.bf16 %v2732_v33, %v2729_v48 }
 0x2e7   :  { %2988 = vmatprep.subr.bf16.mxu0 %v2687_v37  ;;  %v2737_v44 = vpack.c.bf16 %v2731_v8, %v2728_v11 }
 0x2ea   :  { %2989 = vmatpush1.bf16.msra.mxu0 %v2686_v30  ;;  %v2862_v30 = vmul.f32 %v2845_v59, %v7923_v15 }
 0x2eb   :  { %2990 = vmatprep.subr.bf16.mxu0 %v2690_v55  ;;  %v2866_v55 = vmul.f32 %v2850_v0, %v7922_v58 }
 0x2ee   :  { %2991 = vmatpush1.bf16.msra.mxu0 %v2689_v43 }
 0x2ef   :  { %2992 = vmatprep.subr.bf16.mxu0 %v2735_v23 }
 0x2f0   :  { %v3356_v46 = vpop.f32.mrb[4].mxu1 }
 0x2f1   :  { %v3357_v28 = vpop.f32.mrb[5].mxu1 }
 0x2f2   :  { %v3358_v4 = vadd.f32 %v3357_v28, %v3356_v46  ;;  %v3359_v21 = vpop.f32.mrb[6].mxu1  ;;  %2993 = vmatpush1.bf16.msra.mxu0 %v2734_v18 }
 0x2f3   :  { %v3360_v24 = vpop.f32.mrb[7].mxu1  ;;  %2994 = vmatprep.subr.bf16.mxu0 %v2738_v32 }
 0x2f4   :  { %v3361_v38 = vadd.f32 %v3360_v24, %v3359_v21  ;;  %v3060_v34 = vadd.f32 %v3358_v4, %v2864_v49 }
 0x2f6   :  { %2995 = vmatpush1.bf16.msra.mxu0 %v2737_v44 }
 0x2f8   :  { %v3362_v27 = vpop.f32.mrb[8].mxu1 }
 0x2f9   :  { %v3363_v40 = vpop.f32.mrb[9].mxu1  ;;  %3005 = vmatmul.mubr.bf16.vlgmr.msra.gmra.mrb[0].mxu0 %v6848_v60  ;;  %v3063_v60 = vadd.f32 %v3361_v38, %v2867_v62 }
 0x2fa   :  { %v3364_v52 = vadd.f32 %v3363_v40, %v3362_v27  ;;  %v3365_v17 = vpop.f32.mrb[10].mxu1  ;;  %3332 = vmatprep.mubr.msk.bf16.mxu0 %vm2912_vm14, %v6852_v13  ;;  %v2855_v13 = vpop.permute.xlu1 %2854 }
 0x2fb   :  { %v3366_v6 = vpop.f32.mrb[11].mxu1  ;;  %v2870_v31 = vmul.f32 %v2855_v13, %v7926_v53  ;;  %v2868_v41 = vmul.f32 %v2855_v13, %v7923_v15  ;;  %v2869_v43 = vmul.f32 %v2855_v13, %v7922_v58 }
 0x2fc   :  { %v3367_v63 = vadd.f32 %v3366_v6, %v3365_v17 }
 0x2fd   :  { %v3068_v12 = vadd.f32 %v3364_v52, %v2870_v31 }
 0x301   :  { %3015 = vmatmul.mubr.bf16.gmra.mrb[4].mxu0 %v6888_v26  ;;  %v2860_v26 = vpop.permute.xlu0 %2859 }
 0x302   :  { %v2873_v54 = vmul.f32 %v2860_v26, %v7926_v53  ;;  %v2871_v35 = vmul.f32 %v2860_v26, %v7923_v15  ;;  %v2872_v46 = vmul.f32 %v2860_v26, %v7922_v58 }
 0x304   :  { %v3071_v39 = vadd.f32 %v3367_v63, %v2873_v54 }
 0x3a9   :  { %v3108_v5 = vpop.f32.mrb[12].mxu1 }
 0x3aa   :  { %v3109_v20 = vadd.f32 %v3108_v5, %v3060_v34  ;;  %v3110_v14 = vpop.f32.mrb[13].mxu1 }
 0x3ab   :  { %v3111_v56 = vpop.f32.mrb[14].mxu1 }
 0x3ac   :  { %3125 = vst [vmem:[#allocation8 + $0x10] sm:$0xff] %v3109_v20  ;;  %v3112_v61 = vadd.f32 %v3111_v56, %v3063_v60  ;;  %v3113_v37 = vpop.f32.mrb[15].mxu1 }
 0x3ae   :  { %3128 = vst [vmem:[#allocation8 + $0x28] sm:$0xff] %v3112_v61 }
 0x3b1   :  { %v3116_v9 = vpop.f32.mrb[16].mxu1 }
 0x3b2   :  { %v3117_v50 = vadd.f32 %v3116_v9, %v3068_v12  ;;  %v3118_v57 = vpop.f32.mrb[17].mxu1 }
 0x3b3   :  { %v3119_v42 = vpop.f32.mrb[18].mxu1 }
 0x3b4   :  { %3131 = vst [vmem:[#allocation8 + $0x40] sm:$0xff] %v3117_v50  ;;  %v3120_v36 = vadd.f32 %v3119_v42, %v3071_v39  ;;  %v3121_v2 = vpop.f32.mrb[19].mxu1 }
 0x3b6   :  { %3134 = vst [vmem:[#allocation8 + $0x58] sm:$0xff] %v3120_v36 }
 0x3cc   :  { %v3006_v1 = vpop.f32.mrb[0].mxu0 }
 0x3cd   :  { %v3393_v25 = vadd.f32 %v3006_v1, %v2862_v30  ;;  %v3008_v22 = vpop.f32.mrb[1].mxu0 }
 0x3ce   :  { %v3394_v3 = vadd.f32 %v3008_v22, %v2863_v47  ;;  %v3010_v10 = vpop.f32.mrb[2].mxu0 }
 0x3cf   :  { %3123 = vst [vmem:[#allocation8] sm:$0xff] %v3393_v25  ;;  %v3395_v45 = vadd.f32 %v3010_v10, %v2865_v29  ;;  %v3012_v7 = vpop.f32.mrb[3].mxu0 }
 0x3d0   :  { %3124 = vst [vmem:[#allocation8 + $0x8] sm:$0xff] %v3394_v3  ;;  %v3396_v19 = vadd.f32 %v3012_v7, %v2866_v55 }
 0x3d1   :  { %3126 = vst [vmem:[#allocation8 + $0x18] sm:$0xff] %v3395_v45 }
 0x3d2   :  { %3127 = vst [vmem:[#allocation8 + $0x20] sm:$0xff] %v3396_v19 }
 0x3d4   :  { %v3016_v16 = vpop.f32.mrb[4].mxu0 }
 0x3d5   :  { %v3397_v51 = vadd.f32 %v3016_v16, %v2868_v41  ;;  %v3018_v23 = vpop.f32.mrb[5].mxu0 }
 0x3d6   :  { %v3398_v48 = vadd.f32 %v3018_v23, %v2869_v43  ;;  %v3020_v33 = vpop.f32.mrb[6].mxu0 }
 0x3d7   :  { %3129 = vst [vmem:[#allocation8 + $0x30] sm:$0xff] %v3397_v51  ;;  %v3399_v18 = vadd.f32 %v3020_v33, %v2871_v35  ;;  %v3022_v11 = vpop.f32.mrb[7].mxu0 }
 0x3d8   :  { %3130 = vst [vmem:[#allocation8 + $0x38] sm:$0xff] %v3398_v48  ;;  %v3400_v8 = vadd.f32 %v3022_v11, %v2872_v46 }
 0x3d9   :  { %3132 = vst [vmem:[#allocation8 + $0x48] sm:$0xff] %v3399_v18 }
 0x3da   :  { %3133 = vst [vmem:[#allocation8 + $0x50] sm:$0xff] %v3400_v8 }
 0x3db   :  { %3616 = shalt.err (!%p3613_p6)
}
 0x3dc   :  { %s3617_s10 = scalar_lea.hbm %s6967_s5, 1536 }
 0x3dd   :  { %p3618_p7 = scmp.ne.s32.totalorder %s6967_s5, %s3617_s10  ;;  %p3621_p8 = scmp.lt.u32.totalorder %s3617_s10, %s6967_s5 }
 0x3df   :  { %p3623_p9 = pnand %p3621_p8, %p3618_p7 }
 0x3e1   :  { %3626 = shalt.err (!%p3623_p9)
}
 0x3e2   :  { %3146 = dma.vmem_to_hbm [thread:$0]  %s3141_s3, 1536, %s6967_s5, [#allocation5], %s3634_s28, %s3634_s28, %s3635_s29  }
 0x3e3   :  { %3631 = dma.done.wait [#allocation5], 1536  }
 0x3e4   :  { %3632 = vsyncadd [#allocation5], 4294965760 }
 0x3e5   :  { %3150 = vsyncpa [#allocation4], 1 }
 0x3e6   :  { %3151 = vsyncpa [#allocation7], 1 }
 0x3e7   :  { %3152 = vsyncpa [#allocation5], 1 }

</bundles_post_ra>
